<compile_context>
chip_gen: v7x
topology: tpu7x:2x2x1
jax: 0.10.0
libtpu: 0.0.40
codegen_flags: <defaults>
</compile_context>

<pallas_src>
import jax
import jax.numpy as jnp
from jax.experimental import pallas as pl
from jax.experimental.pallas import tpu as pltpu


# --------------------------------------------------------------------------- #
# Kernel
# --------------------------------------------------------------------------- #
def bottleneck_kernel(xt_ref, xtop_ref, xbot_ref,
                      w1_ref, s1_ref, b1_ref,
                      w2_ref, s2_ref, b2_ref,
                      w3_ref, s3_ref, b3_ref,
                      o_ref, hp_ref):
    # xt_ref  : (1, TH, W, Cinp)  bf16   row tile of x
    # xtop_ref: (1, 1,  W, Cinp)  bf16   image row just above the tile (clamped)
    # xbot_ref: (1, 1,  W, Cinp)  bf16   image row just below the tile (clamped)
    # w1_ref  : (Cinp, wp)        bf16
    # w2_ref  : (9, wp, wp)       bf16   3x3 conv taps, k = 3*dy + dx
    # w3_ref  : (wp, Coutp)       bf16
    # s*/b*   : (1, C)            f32    folded eval-mode BatchNorm scale / bias
    # o_ref   : (1, TH, W, Coutp) f32
    # hp_ref  : (TH+2, W+2, wp)   bf16   VMEM halo scratch for conv2
    _, TH, W, Cinp = xt_ref.shape
    wp = w1_ref.shape[1]
    Coutp = w3_ref.shape[1]

    t = pl.program_id(1)
    n_t = pl.num_programs(1)

    w1 = w1_ref[...]
    s1 = s1_ref[...]
    b1 = b1_ref[...]

    # ---- conv1 (1x1) + bn1 + relu on the tile's own rows --------------------
    xt = xt_ref[...].reshape(TH * W, Cinp)                        # bf16
    h1 = jnp.dot(xt, w1, preferred_element_type=jnp.float32)
    h1 = jnp.maximum(h1 * s1 + b1, 0.0)                           # (TH*W, wp)

    # ---- conv1 + bn1 + relu on the two halo rows (zero when outside image) --
    xtop = xtop_ref[...].reshape(W, Cinp)
    xbot = xbot_ref[...].reshape(W, Cinp)
    htop = jnp.maximum(
        jnp.dot(xtop, w1, preferred_element_type=jnp.float32) * s1 + b1, 0.0)
    hbot = jnp.maximum(
        jnp.dot(xbot, w1, preferred_element_type=jnp.float32) * s1 + b1, 0.0)
    htop = jnp.where(t > 0, htop, 0.0)          # conv2's zero padding acts on h1
    hbot = jnp.where(t < n_t - 1, hbot, 0.0)

    # ---- stage into the halo scratch ----------------------------------------
    # Only the two border COLUMNS need explicit zeros; every other element is
    # overwritten below (no full-scratch memset -> ~half the staging stores).
    zcol = jnp.zeros((TH + 2, 1, wp), jnp.bfloat16)
    hp_ref[:, 0:1, :] = zcol
    hp_ref[:, W + 1:W + 2, :] = zcol
    hp_ref[0:1, 1:W + 1, :] = htop.astype(jnp.bfloat16).reshape(1, W, wp)
    hp_ref[TH + 1:TH + 2, 1:W + 1, :] = hbot.astype(jnp.bfloat16).reshape(1, W, wp)
    hp_ref[1:TH + 1, 1:W + 1, :] = h1.astype(jnp.bfloat16).reshape(TH, W, wp)

    # ---- conv2 (3x3, stride 1, pad 1): 9 accumulated per-tap matmuls --------
    acc = jnp.zeros((TH * W, wp), jnp.float32)
    for dy in range(3):
        for dx in range(3):
            tap = hp_ref[dy:dy + TH, dx:dx + W, :].reshape(TH * W, wp)
            acc = acc + jnp.dot(tap, w2_ref[3 * dy + dx],
                                preferred_element_type=jnp.float32)
    h2 = jnp.maximum(acc * s2_ref[...] + b2_ref[...], 0.0)

    # ---- conv3 (1x1) + bn3 + identity residual + relu ------------------------
    h3 = jnp.dot(h2.astype(jnp.bfloat16), w3_ref[...],
                 preferred_element_type=jnp.float32)
    h3 = h3 * s3_ref[...] + b3_ref[...]
    out = jnp.maximum(h3 + xt.astype(jnp.float32), 0.0)
    o_ref[...] = out.reshape(1, TH, W, Coutp).astype(o_ref.dtype)


# --------------------------------------------------------------------------- #
# Tiling helpers (generation-aware VMEM budgeting)
# --------------------------------------------------------------------------- #
def _round_up(c, m=128):
    return ((c + m - 1) // m) * m


def _vmem_capacity_bytes():
    try:
        return int(pltpu.get_tpu_info().vmem_capacity_bytes)
    except Exception:
        return 64 * 1024 * 1024          # conservative fallback (v7x per-core VMEM)


def _estimate_step_vmem(TH, W, Cinp, wp, Coutp):
    """Rough per-grid-step live VMEM (bytes), incl. double-buffered blocks."""
    bf, f32 = 2, 4
    m = TH * W
    x_blocks = 2 * m * Cinp * bf + 4 * W * Cinp * bf          # main + halo rows
    out_blocks = 2 * m * Coutp * f32
    scratch = (TH + 2) * (W + 2) * wp * bf
    weights = 2 * (Cinp * wp + 9 * wp * wp + wp * Coutp) * bf
    temps = m * (2 * wp * f32 + wp * bf + Coutp * f32 + Cinp * f32)
    return x_blocks + out_blocks + scratch + weights + temps


def _pick_row_tile(H, W, Cinp, wp, Coutp, budget_bytes, min_tiles=1):
    """Largest divisor of H whose footprint fits the budget (>= min_tiles tiles)."""
    best = 1
    for d in range(1, H + 1):
        if H % d:
            continue
        if H // d < min_tiles:
            continue
        if _estimate_step_vmem(d, W, Cinp, wp, Coutp) <= budget_bytes:
            best = d
    return best


# --------------------------------------------------------------------------- #
# Wrapper
# --------------------------------------------------------------------------- #
def bottleneck_forward(x, params):
    """x: (N, H, W, Cin) float32, NHWC.  Returns (N, H, W, Cin) float32."""
    w1, s1, b1, w2, s2, b2, w3, s3, b3 = params
    N, H, W, Cin = x.shape
    width = w1.shape[1]
    Cout = w3.shape[1]
    assert Cout == Cin, "identity residual requires inplanes == planes*expansion"

    Cinp, wp, Coutp = _round_up(Cin), _round_up(width), _round_up(Cout)

    def padc(a, axis, new):
        pad = [(0, 0)] * a.ndim
        pad[axis] = (0, new - a.shape[axis])
        return jnp.pad(a, pad)

    # bf16 input halves input HBM DMA and the double-buffered input block.
    xb = padc(x, 3, Cinp).astype(jnp.bfloat16)
    w1p = padc(padc(w1, 0, Cinp), 1, wp).astype(jnp.bfloat16)
    w2p = padc(padc(w2, 2, wp), 3, wp).reshape(9, wp, wp).astype(jnp.bfloat16)
    w3p = padc(padc(w3, 0, wp), 1, Coutp).astype(jnp.bfloat16)
    s1p, b1p = padc(s1, 1, wp), padc(b1, 1, wp)
    s2p, b2p = padc(s2, 1, wp), padc(b2, 1, wp)
    s3p, b3p = padc(s3, 1, Coutp), padc(b3, 1, Coutp)

    # Generation-aware row tiling: biggest divisor of H fitting the VMEM budget
    # (v5e/v6e ~128 MiB, v7x ~64 MiB).  Keep >=2 grid steps when N == 1 so both
    # v7x TensorCores get work under ("parallel","parallel") semantics.
    cap = _vmem_capacity_bytes()
    vmem_limit = int(min(0.875 * cap, 112 * 1024 * 1024))
    min_tiles = 2 if N == 1 else 1
    TH = _pick_row_tile(H, W, Cinp, wp, Coutp, int(0.45 * cap), min_tiles)
    n_tiles = H // TH

    full2 = lambda n, t: (0, 0)
    full3 = lambda n, t: (0, 0, 0)

    out = pl.pallas_call(
        bottleneck_kernel,
        out_shape=jax.ShapeDtypeStruct((N, H, W, Coutp), jnp.float32),
        grid_spec=pltpu.PrefetchScalarGridSpec(
            num_scalar_prefetch=0,
            grid=(N, n_tiles),
            in_specs=[
                # Main row tile: x is read in place (no wrapper-side halo
                # gather / duplicated HBM copy of the input).
                pl.BlockSpec((1, TH, W, Cinp), lambda n, t: (n, t, 0, 0)),
                # 1-row halos above / below (block size 1 along H, so the block
                # index is the row index; clamped in-bounds, masked in-kernel).
                pl.BlockSpec((1, 1, W, Cinp),
                             lambda n, t: (n, jnp.maximum(t * TH - 1, 0), 0, 0)),
                pl.BlockSpec((1, 1, W, Cinp),
                             lambda n, t: (n, jnp.minimum(t * TH + TH, H - 1), 0, 0)),
                pl.BlockSpec((Cinp, wp), full2),
                pl.BlockSpec((1, wp), full2),
                pl.BlockSpec((1, wp), full2),
                pl.BlockSpec((9, wp, wp), full3),
                pl.BlockSpec((1, wp), full2),
                pl.BlockSpec((1, wp), full2),
                pl.BlockSpec((wp, Coutp), full2),
                pl.BlockSpec((1, Coutp), full2),
                pl.BlockSpec((1, Coutp), full2),
            ],
            out_specs=pl.BlockSpec((1, TH, W, Coutp), lambda n, t: (n, t, 0, 0)),
            scratch_shapes=[pltpu.VMEM((TH + 2, W + 2, wp), jnp.bfloat16)],
        ),
        compiler_params=pltpu.CompilerParams(
            dimension_semantics=("parallel", "parallel"),
            vmem_limit_bytes=vmem_limit),
        # TODO(synk): single-buffer the constant-index weight operands
        # (pipeline_mode=pl.Buffered(1)) to reclaim VMEM on v7x once stable.
    )(xb, xb, xb, w1p, s1p, b1p, w2p, s2p, b2p, w3p, s3p, b3p)

    return out[..., :Cout]


# --------------------------------------------------------------------------- #
# Parameters / reference
# --------------------------------------------------------------------------- #
def fold_bn(gamma, beta, mean, var, eps=1e-5):
    scale = gamma / jnp.sqrt(var + eps)
    bias = beta - mean * scale
    return scale[None, :], bias[None, :]          # (1, C) for row broadcast


def make_params(key, inplanes, planes, base_width=64, groups=1):
    width = int(planes * (base_width / 64.0)) * groups
    cout = planes * 4                              # Bottleneck.expansion = 4
    ks = jax.random.split(key, 15)

    def bn(kg, kb, km, kv, c):
        gamma = 0.5 + jax.random.uniform(kg, (c,), jnp.float32)
        beta = 0.1 * jax.random.normal(kb, (c,), jnp.float32)
        mean = 0.1 * jax.random.normal(km, (c,), jnp.float32)
        var = 0.5 + jax.random.uniform(kv, (c,), jnp.float32)
        return fold_bn(gamma, beta, mean, var)

    # conv weights stored matmul-friendly: 1x1 -> (Cin, Cout); 3x3 -> HWIO
    w1 = 0.2 * jax.random.normal(ks[0], (inplanes, width), jnp.float32)
    w2 = 0.2 * jax.random.normal(ks[1], (3, 3, width, width), jnp.float32)
    w3 = 0.2 * jax.random.normal(ks[2], (width, cout), jnp.float32)
    s1, b1 = bn(ks[3], ks[4], ks[5], ks[6], width)
    s2, b2 = bn(ks[7], ks[8], ks[9], ks[10], width)
    s3, b3 = bn(ks[11], ks[12], ks[13], ks[14], cout)
    return (w1, s1, b1, w2, s2, b2, w3, s3, b3)


def reference_forward(x, params):
    """Plain-JAX reference (NHWC) mirroring the PyTorch forward."""
    w1, s1, b1, w2, s2, b2, w3, s3, b3 = params
    dn = ('NHWC', 'HWIO', 'NHWC')

    def conv(x, w, pad):
        return jax.lax.conv_general_dilated(
            x, w, window_strides=(1, 1), padding=pad, dimension_numbers=dn)

    h = conv(x, w1[None, None], 'VALID') * s1 + b1
    h = jnp.maximum(h, 0.0)
    h = conv(h, w2, 'SAME') * s2 + b2
    h = jnp.maximum(h, 0.0)
    h = conv(h, w3[None, None], 'VALID') * s3 + b3
    return jnp.maximum(h + x, 0.0)


if __name__ == "__main__":
    key = jax.random.PRNGKey(0)
    kx, kp = jax.random.split(key)

    N, H, W = 2, 16, 16
    planes = 4
    inplanes = planes * 4        # 16 -> identity residual is valid
    x = jax.random.normal(kx, (N, H, W, inplanes), jnp.float32)

    params = make_params(kp, inplanes, planes)

    out = jax.block_until_ready(bottleneck_forward(x, params))
    ref = reference_forward(x, params)

    assert out.shape == (N, H, W, inplanes)
    assert bool(jnp.allclose(out, ref, rtol=3e-2, atol=3e-2)), "mismatch vs reference"

    print("KERNEL_OK")
</pallas_src>

<mosaic_0001>
module attributes {stable_mosaic.version = 11 : i64} {
  func.func @bottleneck_kernel(%arg0: i32, %arg1: i32, %arg2: memref<1x16x16x128xbf16, #tpu.memory_space<vmem>>, %arg3: memref<1x1x16x128xbf16, #tpu.memory_space<vmem>>, %arg4: memref<1x1x16x128xbf16, #tpu.memory_space<vmem>>, %arg5: memref<128x128xbf16, #tpu.memory_space<vmem>>, %arg6: memref<1x128xf32, #tpu.memory_space<vmem>>, %arg7: memref<1x128xf32, #tpu.memory_space<vmem>>, %arg8: memref<9x128x128xbf16, #tpu.memory_space<vmem>>, %arg9: memref<1x128xf32, #tpu.memory_space<vmem>>, %arg10: memref<1x128xf32, #tpu.memory_space<vmem>>, %arg11: memref<128x128xbf16, #tpu.memory_space<vmem>>, %arg12: memref<1x128xf32, #tpu.memory_space<vmem>>, %arg13: memref<1x128xf32, #tpu.memory_space<vmem>>, %arg14: memref<1x16x16x128xf32, #tpu.memory_space<vmem>>, %arg15: memref<18x18x128xbf16, #tpu.memory_space<vmem>>) attributes {dimension_semantics = [#tpu.dimension_semantics<parallel>, #tpu.dimension_semantics<parallel>], iteration_bounds = array<i64: 2, 1>, scalar_prefetch = 0 : i64, scratch_operands = 1 : i64, tpu.core_type = #tpu.core_type<tc>, window_params = [{transform_indices = @transform_0, window_bounds = array<i64: 1, 16, 16, 128>}, {transform_indices = @transform_1, window_bounds = array<i64: 1, 1, 16, 128>}, {transform_indices = @transform_2, window_bounds = array<i64: 1, 1, 16, 128>}, {pipeline_mode = #tpu.pipeline_mode<synchronous>, transform_indices = @transform_3, window_bounds = array<i64: 128, 128>}, {pipeline_mode = #tpu.pipeline_mode<synchronous>, transform_indices = @transform_4, window_bounds = array<i64: 1, 128>}, {pipeline_mode = #tpu.pipeline_mode<synchronous>, transform_indices = @transform_5, window_bounds = array<i64: 1, 128>}, {pipeline_mode = #tpu.pipeline_mode<synchronous>, transform_indices = @transform_6, window_bounds = array<i64: 9, 128, 128>}, {pipeline_mode = #tpu.pipeline_mode<synchronous>, transform_indices = @transform_7, window_bounds = array<i64: 1, 128>}, {pipeline_mode = #tpu.pipeline_mode<synchronous>, transform_indices = @transform_8, window_bounds = array<i64: 1, 128>}, {pipeline_mode = #tpu.pipeline_mode<synchronous>, transform_indices = @transform_9, window_bounds = array<i64: 128, 128>}, {pipeline_mode = #tpu.pipeline_mode<synchronous>, transform_indices = @transform_10, window_bounds = array<i64: 1, 128>}, {pipeline_mode = #tpu.pipeline_mode<synchronous>, transform_indices = @transform_11, window_bounds = array<i64: 1, 128>}, {transform_indices = @transform_12, window_bounds = array<i64: 1, 16, 16, 128>}]} {
    %c0 = arith.constant 0 : index
    %c0_0 = arith.constant 0 : index
    %0 = vector.load %arg5[%c0, %c0_0] : memref<128x128xbf16, #tpu.memory_space<vmem>>, vector<128x128xbf16>
    %c0_1 = arith.constant 0 : index
    %c0_2 = arith.constant 0 : index
    %1 = vector.load %arg6[%c0_1, %c0_2] : memref<1x128xf32, #tpu.memory_space<vmem>>, vector<1x128xf32>
    %c0_3 = arith.constant 0 : index
    %c0_4 = arith.constant 0 : index
    %2 = vector.load %arg7[%c0_3, %c0_4] : memref<1x128xf32, #tpu.memory_space<vmem>>, vector<1x128xf32>
    %c0_5 = arith.constant 0 : index
    %c0_6 = arith.constant 0 : index
    %c0_7 = arith.constant 0 : index
    %c0_8 = arith.constant 0 : index
    %3 = vector.load %arg2[%c0_5, %c0_6, %c0_7, %c0_8] : memref<1x16x16x128xbf16, #tpu.memory_space<vmem>>, vector<1x16x16x128xbf16>
    %4 = vector.shape_cast %3 : vector<1x16x16x128xbf16> to vector<256x128xbf16>
    %cst = arith.constant dense<0.000000e+00> : vector<256x128xf32>
    %5 = tpu.matmul %4, %0, %cst {dimension_numbers = #tpu.dot_dimension_numbers<[1], [0], [0], [1], [0, 0, 1, 1], [], []>} : vector<256x128xbf16>, vector<128x128xbf16>, vector<256x128xf32> -> vector<256x128xf32>
    %6 = vector.broadcast %1 : vector<1x128xf32> to vector<256x128xf32>
    %7 = arith.mulf %5, %6 : vector<256x128xf32>
    %8 = vector.broadcast %2 : vector<1x128xf32> to vector<256x128xf32>
    %9 = arith.addf %7, %8 : vector<256x128xf32>
    %cst_9 = arith.constant 0.000000e+00 : f32
    %10 = vector.broadcast %cst_9 : f32 to vector<256x128xf32>
    %11 = arith.maximumf %9, %10 : vector<256x128xf32>
    %c0_10 = arith.constant 0 : index
    %c0_11 = arith.constant 0 : index
    %c0_12 = arith.constant 0 : index
    %c0_13 = arith.constant 0 : index
    %12 = vector.load %arg3[%c0_10, %c0_11, %c0_12, %c0_13] : memref<1x1x16x128xbf16, #tpu.memory_space<vmem>>, vector<1x1x16x128xbf16>
    %13 = vector.shape_cast %12 : vector<1x1x16x128xbf16> to vector<16x128xbf16>
    %c0_14 = arith.constant 0 : index
    %c0_15 = arith.constant 0 : index
    %c0_16 = arith.constant 0 : index
    %c0_17 = arith.constant 0 : index
    %14 = vector.load %arg4[%c0_14, %c0_15, %c0_16, %c0_17] : memref<1x1x16x128xbf16, #tpu.memory_space<vmem>>, vector<1x1x16x128xbf16>
    %15 = vector.shape_cast %14 : vector<1x1x16x128xbf16> to vector<16x128xbf16>
    %cst_18 = arith.constant dense<0.000000e+00> : vector<16x128xf32>
    %16 = tpu.matmul %13, %0, %cst_18 {dimension_numbers = #tpu.dot_dimension_numbers<[1], [0], [0], [1], [0, 0, 1, 1], [], []>} : vector<16x128xbf16>, vector<128x128xbf16>, vector<16x128xf32> -> vector<16x128xf32>
    %17 = vector.broadcast %1 : vector<1x128xf32> to vector<16x128xf32>
    %18 = arith.mulf %16, %17 : vector<16x128xf32>
    %19 = vector.broadcast %2 : vector<1x128xf32> to vector<16x128xf32>
    %20 = arith.addf %18, %19 : vector<16x128xf32>
    %cst_19 = arith.constant 0.000000e+00 : f32
    %21 = vector.broadcast %cst_19 : f32 to vector<16x128xf32>
    %22 = arith.maximumf %20, %21 : vector<16x128xf32>
    %cst_20 = arith.constant dense<0.000000e+00> : vector<16x128xf32>
    %23 = tpu.matmul %15, %0, %cst_20 {dimension_numbers = #tpu.dot_dimension_numbers<[1], [0], [0], [1], [0, 0, 1, 1], [], []>} : vector<16x128xbf16>, vector<128x128xbf16>, vector<16x128xf32> -> vector<16x128xf32>
    %24 = vector.broadcast %1 : vector<1x128xf32> to vector<16x128xf32>
    %25 = arith.mulf %23, %24 : vector<16x128xf32>
    %26 = vector.broadcast %2 : vector<1x128xf32> to vector<16x128xf32>
    %27 = arith.addf %25, %26 : vector<16x128xf32>
    %cst_21 = arith.constant 0.000000e+00 : f32
    %28 = vector.broadcast %cst_21 : f32 to vector<16x128xf32>
    %29 = arith.maximumf %27, %28 : vector<16x128xf32>
    %c0_i32 = arith.constant 0 : i32
    %30 = arith.cmpi sgt, %arg1, %c0_i32 : i32
    %cst_22 = arith.constant 0.000000e+00 : f32
    %31 = vector.broadcast %cst_22 : f32 to vector<16x128xf32>
    %32 = arith.select %30, %22, %31 : vector<16x128xf32>
    %c0_i32_23 = arith.constant 0 : i32
    %33 = arith.cmpi slt, %arg1, %c0_i32_23 : i32
    %cst_24 = arith.constant 0.000000e+00 : f32
    %34 = vector.broadcast %cst_24 : f32 to vector<16x128xf32>
    %35 = arith.select %33, %29, %34 : vector<16x128xf32>
    %cst_25 = arith.constant 0.000000e+00 : bf16
    %36 = vector.broadcast %cst_25 : bf16 to vector<18x1x128xbf16>
    %c0_26 = arith.constant 0 : index
    %c0_27 = arith.constant 0 : index
    %c0_28 = arith.constant 0 : index
    %37 = vector.load %arg15[%c0_26, %c0_27, %c0_28] : memref<18x18x128xbf16, #tpu.memory_space<vmem>>, vector<18x1x128xbf16>
    tpu.vector_store %arg15[%c0_26, %c0_27, %c0_28], %36 {strides = array<i32>} : memref<18x18x128xbf16, #tpu.memory_space<vmem>>, vector<18x1x128xbf16>,
    %c0_29 = arith.constant 0 : index
    %c17 = arith.constant 17 : index
    %c0_30 = arith.constant 0 : index
    %38 = vector.load %arg15[%c0_29, %c17, %c0_30] : memref<18x18x128xbf16, #tpu.memory_space<vmem>>, vector<18x1x128xbf16>
    tpu.vector_store %arg15[%c0_29, %c17, %c0_30], %36 {strides = array<i32>} : memref<18x18x128xbf16, #tpu.memory_space<vmem>>, vector<18x1x128xbf16>,
    %39 = arith.truncf %32 : vector<16x128xf32> to vector<16x128xbf16>
    %40 = vector.shape_cast %39 : vector<16x128xbf16> to vector<1x16x128xbf16>
    %c0_31 = arith.constant 0 : index
    %c1 = arith.constant 1 : index
    %c0_32 = arith.constant 0 : index
    %41 = vector.load %arg15[%c0_31, %c1, %c0_32] : memref<18x18x128xbf16, #tpu.memory_space<vmem>>, vector<1x16x128xbf16>
    tpu.vector_store %arg15[%c0_31, %c1, %c0_32], %40 {strides = array<i32>} : memref<18x18x128xbf16, #tpu.memory_space<vmem>>, vector<1x16x128xbf16>,
    %42 = arith.truncf %35 : vector<16x128xf32> to vector<16x128xbf16>
    %43 = vector.shape_cast %42 : vector<16x128xbf16> to vector<1x16x128xbf16>
    %c17_33 = arith.constant 17 : index
    %c1_34 = arith.constant 1 : index
    %c0_35 = arith.constant 0 : index
    %44 = vector.load %arg15[%c17_33, %c1_34, %c0_35] : memref<18x18x128xbf16, #tpu.memory_space<vmem>>, vector<1x16x128xbf16>
    tpu.vector_store %arg15[%c17_33, %c1_34, %c0_35], %43 {strides = array<i32>} : memref<18x18x128xbf16, #tpu.memory_space<vmem>>, vector<1x16x128xbf16>,
    %45 = arith.truncf %11 : vector<256x128xf32> to vector<256x128xbf16>
    %46 = vector.shape_cast %45 : vector<256x128xbf16> to vector<16x16x128xbf16>
    %c1_36 = arith.constant 1 : index
    %c1_37 = arith.constant 1 : index
    %c0_38 = arith.constant 0 : index
    %47 = vector.load %arg15[%c1_36, %c1_37, %c0_38] : memref<18x18x128xbf16, #tpu.memory_space<vmem>>, vector<16x16x128xbf16>
    tpu.vector_store %arg15[%c1_36, %c1_37, %c0_38], %46 {strides = array<i32>} : memref<18x18x128xbf16, #tpu.memory_space<vmem>>, vector<16x16x128xbf16>,
    %cst_39 = arith.constant 0.000000e+00 : f32
    %48 = vector.broadcast %cst_39 : f32 to vector<256x128xf32>
    %c0_40 = arith.constant 0 : index
    %c0_41 = arith.constant 0 : index
    %c0_42 = arith.constant 0 : index
    %49 = vector.load %arg15[%c0_40, %c0_41, %c0_42] : memref<18x18x128xbf16, #tpu.memory_space<vmem>>, vector<16x16x128xbf16>
    %50 = vector.shape_cast %49 : vector<16x16x128xbf16> to vector<256x128xbf16>
    %c0_43 = arith.constant 0 : index
    %c0_44 = arith.constant 0 : index
    %c0_45 = arith.constant 0 : index
    %51 = vector.load %arg8[%c0_43, %c0_44, %c0_45] : memref<9x128x128xbf16, #tpu.memory_space<vmem>>, vector<1x128x128xbf16>
    %52 = vector.shape_cast %51 : vector<1x128x128xbf16> to vector<128x128xbf16>
    %cst_46 = arith.constant dense<0.000000e+00> : vector<256x128xf32>
    %53 = tpu.matmul %50, %52, %cst_46 {dimension_numbers = #tpu.dot_dimension_numbers<[1], [0], [0], [1], [0, 0, 1, 1], [], []>} : vector<256x128xbf16>, vector<128x128xbf16>, vector<256x128xf32> -> vector<256x128xf32>
    %54 = arith.addf %48, %53 : vector<256x128xf32>
    %c0_47 = arith.constant 0 : index
    %c1_48 = arith.constant 1 : index
    %c0_49 = arith.constant 0 : index
    %55 = vector.load %arg15[%c0_47, %c1_48, %c0_49] : memref<18x18x128xbf16, #tpu.memory_space<vmem>>, vector<16x16x128xbf16>
    %56 = vector.shape_cast %55 : vector<16x16x128xbf16> to vector<256x128xbf16>
    %c1_50 = arith.constant 1 : index
    %c0_51 = arith.constant 0 : index
    %c0_52 = arith.constant 0 : index
    %57 = vector.load %arg8[%c1_50, %c0_51, %c0_52] : memref<9x128x128xbf16, #tpu.memory_space<vmem>>, vector<1x128x128xbf16>
    %58 = vector.shape_cast %57 : vector<1x128x128xbf16> to vector<128x128xbf16>
    %cst_53 = arith.constant dense<0.000000e+00> : vector<256x128xf32>
    %59 = tpu.matmul %56, %58, %cst_53 {dimension_numbers = #tpu.dot_dimension_numbers<[1], [0], [0], [1], [0, 0, 1, 1], [], []>} : vector<256x128xbf16>, vector<128x128xbf16>, vector<256x128xf32> -> vector<256x128xf32>
    %60 = arith.addf %54, %59 : vector<256x128xf32>
    %c0_54 = arith.constant 0 : index
    %c2 = arith.constant 2 : index
    %c0_55 = arith.constant 0 : index
    %61 = vector.load %arg15[%c0_54, %c2, %c0_55] : memref<18x18x128xbf16, #tpu.memory_space<vmem>>, vector<16x16x128xbf16>
    %62 = vector.shape_cast %61 : vector<16x16x128xbf16> to vector<256x128xbf16>
    %c2_56 = arith.constant 2 : index
    %c0_57 = arith.constant 0 : index
    %c0_58 = arith.constant 0 : index
    %63 = vector.load %arg8[%c2_56, %c0_57, %c0_58] : memref<9x128x128xbf16, #tpu.memory_space<vmem>>, vector<1x128x128xbf16>
    %64 = vector.shape_cast %63 : vector<1x128x128xbf16> to vector<128x128xbf16>
    %cst_59 = arith.constant dense<0.000000e+00> : vector<256x128xf32>
    %65 = tpu.matmul %62, %64, %cst_59 {dimension_numbers = #tpu.dot_dimension_numbers<[1], [0], [0], [1], [0, 0, 1, 1], [], []>} : vector<256x128xbf16>, vector<128x128xbf16>, vector<256x128xf32> -> vector<256x128xf32>
    %66 = arith.addf %60, %65 : vector<256x128xf32>
    %c1_60 = arith.constant 1 : index
    %c0_61 = arith.constant 0 : index
    %c0_62 = arith.constant 0 : index
    %67 = vector.load %arg15[%c1_60, %c0_61, %c0_62] : memref<18x18x128xbf16, #tpu.memory_space<vmem>>, vector<16x16x128xbf16>
    %68 = vector.shape_cast %67 : vector<16x16x128xbf16> to vector<256x128xbf16>
    %c3 = arith.constant 3 : index
    %c0_63 = arith.constant 0 : index
    %c0_64 = arith.constant 0 : index
    %69 = vector.load %arg8[%c3, %c0_63, %c0_64] : memref<9x128x128xbf16, #tpu.memory_space<vmem>>, vector<1x128x128xbf16>
    %70 = vector.shape_cast %69 : vector<1x128x128xbf16> to vector<128x128xbf16>
    %cst_65 = arith.constant dense<0.000000e+00> : vector<256x128xf32>
    %71 = tpu.matmul %68, %70, %cst_65 {dimension_numbers = #tpu.dot_dimension_numbers<[1], [0], [0], [1], [0, 0, 1, 1], [], []>} : vector<256x128xbf16>, vector<128x128xbf16>, vector<256x128xf32> -> vector<256x128xf32>
    %72 = arith.addf %66, %71 : vector<256x128xf32>
    %c1_66 = arith.constant 1 : index
    %c1_67 = arith.constant 1 : index
    %c0_68 = arith.constant 0 : index
    %73 = vector.load %arg15[%c1_66, %c1_67, %c0_68] : memref<18x18x128xbf16, #tpu.memory_space<vmem>>, vector<16x16x128xbf16>
    %74 = vector.shape_cast %73 : vector<16x16x128xbf16> to vector<256x128xbf16>
    %c4 = arith.constant 4 : index
    %c0_69 = arith.constant 0 : index
    %c0_70 = arith.constant 0 : index
    %75 = vector.load %arg8[%c4, %c0_69, %c0_70] : memref<9x128x128xbf16, #tpu.memory_space<vmem>>, vector<1x128x128xbf16>
    %76 = vector.shape_cast %75 : vector<1x128x128xbf16> to vector<128x128xbf16>
    %cst_71 = arith.constant dense<0.000000e+00> : vector<256x128xf32>
    %77 = tpu.matmul %74, %76, %cst_71 {dimension_numbers = #tpu.dot_dimension_numbers<[1], [0], [0], [1], [0, 0, 1, 1], [], []>} : vector<256x128xbf16>, vector<128x128xbf16>, vector<256x128xf32> -> vector<256x128xf32>
    %78 = arith.addf %72, %77 : vector<256x128xf32>
    %c1_72 = arith.constant 1 : index
    %c2_73 = arith.constant 2 : index
    %c0_74 = arith.constant 0 : index
    %79 = vector.load %arg15[%c1_72, %c2_73, %c0_74] : memref<18x18x128xbf16, #tpu.memory_space<vmem>>, vector<16x16x128xbf16>
    %80 = vector.shape_cast %79 : vector<16x16x128xbf16> to vector<256x128xbf16>
    %c5 = arith.constant 5 : index
    %c0_75 = arith.constant 0 : index
    %c0_76 = arith.constant 0 : index
    %81 = vector.load %arg8[%c5, %c0_75, %c0_76] : memref<9x128x128xbf16, #tpu.memory_space<vmem>>, vector<1x128x128xbf16>
    %82 = vector.shape_cast %81 : vector<1x128x128xbf16> to vector<128x128xbf16>
    %cst_77 = arith.constant dense<0.000000e+00> : vector<256x128xf32>
    %83 = tpu.matmul %80, %82, %cst_77 {dimension_numbers = #tpu.dot_dimension_numbers<[1], [0], [0], [1], [0, 0, 1, 1], [], []>} : vector<256x128xbf16>, vector<128x128xbf16>, vector<256x128xf32> -> vector<256x128xf32>
    %84 = arith.addf %78, %83 : vector<256x128xf32>
    %c2_78 = arith.constant 2 : index
    %c0_79 = arith.constant 0 : index
    %c0_80 = arith.constant 0 : index
    %85 = vector.load %arg15[%c2_78, %c0_79, %c0_80] : memref<18x18x128xbf16, #tpu.memory_space<vmem>>, vector<16x16x128xbf16>
    %86 = vector.shape_cast %85 : vector<16x16x128xbf16> to vector<256x128xbf16>
    %c6 = arith.constant 6 : index
    %c0_81 = arith.constant 0 : index
    %c0_82 = arith.constant 0 : index
    %87 = vector.load %arg8[%c6, %c0_81, %c0_82] : memref<9x128x128xbf16, #tpu.memory_space<vmem>>, vector<1x128x128xbf16>
    %88 = vector.shape_cast %87 : vector<1x128x128xbf16> to vector<128x128xbf16>
    %cst_83 = arith.constant dense<0.000000e+00> : vector<256x128xf32>
    %89 = tpu.matmul %86, %88, %cst_83 {dimension_numbers = #tpu.dot_dimension_numbers<[1], [0], [0], [1], [0, 0, 1, 1], [], []>} : vector<256x128xbf16>, vector<128x128xbf16>, vector<256x128xf32> -> vector<256x128xf32>
    %90 = arith.addf %84, %89 : vector<256x128xf32>
    %c2_84 = arith.constant 2 : index
    %c1_85 = arith.constant 1 : index
    %c0_86 = arith.constant 0 : index
    %91 = vector.load %arg15[%c2_84, %c1_85, %c0_86] : memref<18x18x128xbf16, #tpu.memory_space<vmem>>, vector<16x16x128xbf16>
    %92 = vector.shape_cast %91 : vector<16x16x128xbf16> to vector<256x128xbf16>
    %c7 = arith.constant 7 : index
    %c0_87 = arith.constant 0 : index
    %c0_88 = arith.constant 0 : index
    %93 = vector.load %arg8[%c7, %c0_87, %c0_88] : memref<9x128x128xbf16, #tpu.memory_space<vmem>>, vector<1x128x128xbf16>
    %94 = vector.shape_cast %93 : vector<1x128x128xbf16> to vector<128x128xbf16>
    %cst_89 = arith.constant dense<0.000000e+00> : vector<256x128xf32>
    %95 = tpu.matmul %92, %94, %cst_89 {dimension_numbers = #tpu.dot_dimension_numbers<[1], [0], [0], [1], [0, 0, 1, 1], [], []>} : vector<256x128xbf16>, vector<128x128xbf16>, vector<256x128xf32> -> vector<256x128xf32>
    %96 = arith.addf %90, %95 : vector<256x128xf32>
    %c2_90 = arith.constant 2 : index
    %c2_91 = arith.constant 2 : index
    %c0_92 = arith.constant 0 : index
    %97 = vector.load %arg15[%c2_90, %c2_91, %c0_92] : memref<18x18x128xbf16, #tpu.memory_space<vmem>>, vector<16x16x128xbf16>
    %98 = vector.shape_cast %97 : vector<16x16x128xbf16> to vector<256x128xbf16>
    %c8 = arith.constant 8 : index
    %c0_93 = arith.constant 0 : index
    %c0_94 = arith.constant 0 : index
    %99 = vector.load %arg8[%c8, %c0_93, %c0_94] : memref<9x128x128xbf16, #tpu.memory_space<vmem>>, vector<1x128x128xbf16>
    %100 = vector.shape_cast %99 : vector<1x128x128xbf16> to vector<128x128xbf16>
    %cst_95 = arith.constant dense<0.000000e+00> : vector<256x128xf32>
    %101 = tpu.matmul %98, %100, %cst_95 {dimension_numbers = #tpu.dot_dimension_numbers<[1], [0], [0], [1], [0, 0, 1, 1], [], []>} : vector<256x128xbf16>, vector<128x128xbf16>, vector<256x128xf32> -> vector<256x128xf32>
    %102 = arith.addf %96, %101 : vector<256x128xf32>
    %c0_96 = arith.constant 0 : index
    %c0_97 = arith.constant 0 : index
    %103 = vector.load %arg9[%c0_96, %c0_97] : memref<1x128xf32, #tpu.memory_space<vmem>>, vector<1x128xf32>
    %104 = vector.broadcast %103 : vector<1x128xf32> to vector<256x128xf32>
    %105 = arith.mulf %102, %104 : vector<256x128xf32>
    %c0_98 = arith.constant 0 : index
    %c0_99 = arith.constant 0 : index
    %106 = vector.load %arg10[%c0_98, %c0_99] : memref<1x128xf32, #tpu.memory_space<vmem>>, vector<1x128xf32>
    %107 = vector.broadcast %106 : vector<1x128xf32> to vector<256x128xf32>
    %108 = arith.addf %105, %107 : vector<256x128xf32>
    %cst_100 = arith.constant 0.000000e+00 : f32
    %109 = vector.broadcast %cst_100 : f32 to vector<256x128xf32>
    %110 = arith.maximumf %108, %109 : vector<256x128xf32>
    %111 = arith.truncf %110 : vector<256x128xf32> to vector<256x128xbf16>
    %c0_101 = arith.constant 0 : index
    %c0_102 = arith.constant 0 : index
    %112 = vector.load %arg11[%c0_101, %c0_102] : memref<128x128xbf16, #tpu.memory_space<vmem>>, vector<128x128xbf16>
    %cst_103 = arith.constant dense<0.000000e+00> : vector<256x128xf32>
    %113 = tpu.matmul %111, %112, %cst_103 {dimension_numbers = #tpu.dot_dimension_numbers<[1], [0], [0], [1], [0, 0, 1, 1], [], []>} : vector<256x128xbf16>, vector<128x128xbf16>, vector<256x128xf32> -> vector<256x128xf32>
    %c0_104 = arith.constant 0 : index
    %c0_105 = arith.constant 0 : index
    %114 = vector.load %arg12[%c0_104, %c0_105] : memref<1x128xf32, #tpu.memory_space<vmem>>, vector<1x128xf32>
    %115 = vector.broadcast %114 : vector<1x128xf32> to vector<256x128xf32>
    %116 = arith.mulf %113, %115 : vector<256x128xf32>
    %c0_106 = arith.constant 0 : index
    %c0_107 = arith.constant 0 : index
    %117 = vector.load %arg13[%c0_106, %c0_107] : memref<1x128xf32, #tpu.memory_space<vmem>>, vector<1x128xf32>
    %118 = vector.broadcast %117 : vector<1x128xf32> to vector<256x128xf32>
    %119 = arith.addf %116, %118 : vector<256x128xf32>
    %120 = arith.extf %4 : vector<256x128xbf16> to vector<256x128xf32>
    %121 = arith.addf %119, %120 : vector<256x128xf32>
    %cst_108 = arith.constant 0.000000e+00 : f32
    %122 = vector.broadcast %cst_108 : f32 to vector<256x128xf32>
    %123 = arith.maximumf %121, %122 : vector<256x128xf32>
    %124 = vector.shape_cast %123 : vector<256x128xf32> to vector<1x16x16x128xf32>
    %c0_109 = arith.constant 0 : index
    %c0_110 = arith.constant 0 : index
    %c0_111 = arith.constant 0 : index
    %c0_112 = arith.constant 0 : index
    %125 = vector.load %arg14[%c0_109, %c0_110, %c0_111, %c0_112] : memref<1x16x16x128xf32, #tpu.memory_space<vmem>>, vector<1x16x16x128xf32>
    tpu.vector_store %arg14[%c0_109, %c0_110, %c0_111, %c0_112], %124 {strides = array<i32>} : memref<1x16x16x128xf32, #tpu.memory_space<vmem>>, vector<1x16x16x128xf32>,
    return
  }
  func.func @transform_0(%arg0: i32, %arg1: i32) -> (i32, i32, i32, i32) {
    %c0_i32 = arith.constant 0 : i32
    %c0_i32_0 = arith.constant 0 : i32
    %c0_i32_1 = arith.constant 0 : i32
    return %arg0, %arg1, %c0_i32, %c0_i32_0 : i32, i32, i32, i32
  }
  func.func @transform_1(%arg0: i32, %arg1: i32) -> (i32, i32, i32, i32) {
    %c16_i32 = arith.constant 16 : i32
    %0 = arith.muli %arg1, %c16_i32 : i32
    %c1_i32 = arith.constant 1 : i32
    %1 = arith.subi %0, %c1_i32 : i32
    %c0_i32 = arith.constant 0 : i32
    %2 = arith.maxsi %1, %c0_i32 : i32
    %c0_i32_0 = arith.constant 0 : i32
    %c0_i32_1 = arith.constant 0 : i32
    %c0_i32_2 = arith.constant 0 : i32
    return %arg0, %2, %c0_i32_0, %c0_i32_1 : i32, i32, i32, i32
  }
  func.func @transform_2(%arg0: i32, %arg1: i32) -> (i32, i32, i32, i32) {
    %c16_i32 = arith.constant 16 : i32
    %0 = arith.muli %arg1, %c16_i32 : i32
    %c16_i32_0 = arith.constant 16 : i32
    %1 = arith.addi %0, %c16_i32_0 : i32
    %c15_i32 = arith.constant 15 : i32
    %2 = arith.minsi %1, %c15_i32 : i32
    %c0_i32 = arith.constant 0 : i32
    %c0_i32_1 = arith.constant 0 : i32
    %c0_i32_2 = arith.constant 0 : i32
    return %arg0, %2, %c0_i32, %c0_i32_1 : i32, i32, i32, i32
  }
  func.func @transform_3(%arg0: i32, %arg1: i32) -> (i32, i32) {
    %c0_i32 = arith.constant 0 : i32
    %c0_i32_0 = arith.constant 0 : i32
    %c0_i32_1 = arith.constant 0 : i32
    return %c0_i32, %c0_i32_0 : i32, i32
  }
  func.func @transform_4(%arg0: i32, %arg1: i32) -> (i32, i32) {
    %c0_i32 = arith.constant 0 : i32
    %c0_i32_0 = arith.constant 0 : i32
    %c0_i32_1 = arith.constant 0 : i32
    return %c0_i32, %c0_i32_0 : i32, i32
  }
  func.func @transform_5(%arg0: i32, %arg1: i32) -> (i32, i32) {
    %c0_i32 = arith.constant 0 : i32
    %c0_i32_0 = arith.constant 0 : i32
    %c0_i32_1 = arith.constant 0 : i32
    return %c0_i32, %c0_i32_0 : i32, i32
  }
  func.func @transform_6(%arg0: i32, %arg1: i32) -> (i32, i32, i32) {
    %c0_i32 = arith.constant 0 : i32
    %c0_i32_0 = arith.constant 0 : i32
    %c0_i32_1 = arith.constant 0 : i32
    %c0_i32_2 = arith.constant 0 : i32
    return %c0_i32, %c0_i32_0, %c0_i32_1 : i32, i32, i32
  }
  func.func @transform_7(%arg0: i32, %arg1: i32) -> (i32, i32) {
    %c0_i32 = arith.constant 0 : i32
    %c0_i32_0 = arith.constant 0 : i32
    %c0_i32_1 = arith.constant 0 : i32
    return %c0_i32, %c0_i32_0 : i32, i32
  }
  func.func @transform_8(%arg0: i32, %arg1: i32) -> (i32, i32) {
    %c0_i32 = arith.constant 0 : i32
    %c0_i32_0 = arith.constant 0 : i32
    %c0_i32_1 = arith.constant 0 : i32
    return %c0_i32, %c0_i32_0 : i32, i32
  }
  func.func @transform_9(%arg0: i32, %arg1: i32) -> (i32, i32) {
    %c0_i32 = arith.constant 0 : i32
    %c0_i32_0 = arith.constant 0 : i32
    %c0_i32_1 = arith.constant 0 : i32
    return %c0_i32, %c0_i32_0 : i32, i32
  }
  func.func @transform_10(%arg0: i32, %arg1: i32) -> (i32, i32) {
    %c0_i32 = arith.constant 0 : i32
    %c0_i32_0 = arith.constant 0 : i32
    %c0_i32_1 = arith.constant 0 : i32
    return %c0_i32, %c0_i32_0 : i32, i32
  }
  func.func @transform_11(%arg0: i32, %arg1: i32) -> (i32, i32) {
    %c0_i32 = arith.constant 0 : i32
    %c0_i32_0 = arith.constant 0 : i32
    %c0_i32_1 = arith.constant 0 : i32
    return %c0_i32, %c0_i32_0 : i32, i32
  }
  func.func @transform_12(%arg0: i32, %arg1: i32) -> (i32, i32, i32, i32) {
    %c0_i32 = arith.constant 0 : i32
    %c0_i32_0 = arith.constant 0 : i32
    %c0_i32_1 = arith.constant 0 : i32
    return %arg0, %arg1, %c0_i32, %c0_i32_0 : i32, i32, i32, i32
  }
}

</mosaic_0001>

<bundles_post_ra>
// kernel: tpu_custom_call.1
= control target key start
LH: loop header
LB: loop body
LE: loop exit
PB: predicated region body
PF: predicated region fallthrough
CT: control target
= control target key end

     0   :  { %s11900_s0 = inlined_call_operand.hbm [shape: bf16[2,16,16,128], index: 0, kind: input, shape index: {}]   ;;  %s11901_s1 = inlined_call_operand.hbm [shape: bf16[2,16,16,128], index: 1, kind: input, shape index: {}]   ;;  %s11902_s2 = inlined_call_operand.hbm [shape: bf16[2,16,16,128], index: 2, kind: input, shape index: {}]   ;;  %s11903_s3 = inlined_call_operand.hbm [shape: bf16[128,128], index: 3, kind: input, shape index: {}]   ;;  %s11904_s4 = inlined_call_operand.vmem [shape: f32[1,128], index: 4, kind: input, shape index: {}]   ;;  %s11905_s5 = inlined_call_operand.vmem [shape: f32[1,128], index: 5, kind: input, shape index: {}]   ;;  %s11906_s6 = inlined_call_operand.hbm [shape: bf16[9,128,128], index: 6, kind: input, shape index: {}]   ;;  %s11907_s7 = inlined_call_operand.vmem [shape: f32[1,128], index: 7, kind: input, shape index: {}]   ;;  %s11908_s8 = inlined_call_operand.vmem [shape: f32[1,128], index: 8, kind: input, shape index: {}]   ;;  %s11909_s9 = inlined_call_operand.hbm [shape: bf16[128,128], index: 9, kind: input, shape index: {}]   ;;  %s11910_s10 = inlined_call_operand.vmem [shape: f32[1,128], index: 10, kind: input, shape index: {}]   ;;  %s11911_s11 = inlined_call_operand.vmem [shape: f32[1,128], index: 11, kind: input, shape index: {}]   ;;  %s11912_s12 = inlined_call_operand.hbm [shape: f32[2,16,16,128], index: 12, kind: output, shape index: {}]  }
   0x1   :  { %11968 = sst [smem:[#allocation42_spill]] %s11901_s1 }
   0x2   :  { %11969 = sst [smem:[#allocation43_spill]] %s11903_s3 }
   0x3   :  { %11970 = sst [smem:[#allocation44_spill]] %s11905_s5 }
   0x4   :  { %11971 = sst [smem:[#allocation45_spill]] %s11907_s7 }
   0x5   :  { %11972 = sst [smem:[#allocation46_spill]] %s11908_s8 }
   0x6   :  { %11973 = sst [smem:[#allocation47_spill]] %s11910_s10 }
   0x7   :  { %11974 = sst [smem:[#allocation48_spill]] %s11911_s11 }
   0x8   :  { %11975 = sst [smem:[#allocation49_spill]] %s11912_s12 }
   0x9   :  { %17 = vsyncpa [#allocation4], 0 }
   0xa   :  { %19 = vsyncpa [#allocation4 + $0x1], 0 }
   0xb   :  { %20 = vsyncpa [#allocation7], 0 }
   0xc   :  { %22 = vsyncpa [#allocation7 + $0x1], 0 }
   0xd   :  { %23 = vsyncpa [#allocation10], 0 }
   0xe   :  { %24 = vsyncpa [#allocation13], 0 }
   0xf   :  { %25 = vsyncpa [#allocation5], 0 }
  0x10   :  { %27 = vsyncpa [#allocation5 + $0x1], 0  ;;  %s9664_s21 = smov 0   ;;  %s9666_s22 = smov 0  }
  0x11   :  { %s9668_s23 = smov 0   ;;  %s9670_s24 = smov 0  }
  0x12   :  { %s9672_s25 = smov 0   ;;  %s9674_s26 = smov 0  }
  0x13 LB: > { %11976 = sst [smem:[#allocation20_spill]] %s9563_s21  ;;  %s9695_s27 = sadd.s32 4294967295, %s9583_s26   ;;  %s9583_s26 = sphi %s9674_s26, %s33_s26   ;;  %s9579_s25 = sphi %s9672_s25, %s12117_s25   ;;  %s9575_s24 = sphi %s9670_s24, %s12116_s24   ;;  %s9571_s23 = sphi %s9668_s23, %s12120_s23   ;;  %s9567_s22 = sphi %s9666_s22, %s12119_s22   ;;  %s9563_s21 = sphi %s9664_s21, %s12118_s21  }
  0x14   : > { %11977 = sst [smem:[#allocation21_spill]] %s9571_s23  ;;  %s7461_s28 = sadd.s32 4294967294, %s9583_s26  }
  0x15   : > { %11978 = sst [smem:[#allocation22_spill]] %s9575_s24  ;;  %p61_p0 = scmp.ne.s32.totalorder %s9571_s23, %s9567_s22 }
  0x16   : > { %11979 = sst [smem:[#allocation23_spill]] %s9579_s25  ;;  %p62_p1 = scmp.eq.s32.totalorder %s9583_s26, 0 }
  0x17   : > { %11980 = sst [smem:[#allocation24_spill]] %s9583_s26  ;;  %p67_p2 = scmp.ne.s32.totalorder %s9567_s22, %s9563_s21 }
  0x18   : > { %p11918_p3 = scmp.eq.s32.totalorder %s9695_s27, 0  ;;  %p9704_p4 = por %p62_p1, %p61_p0 }
  0x19   : > { %p354_p5 = scmp.eq.s32.totalorder %s9695_s27, 1  ;;  %p360_p7 = scmp.eq.s32.totalorder %s7461_s28, 1 }
  0x1a   : > { %p9711_p6 = por %p11918_p3, %p67_p2  ;;  %p7462_p9 = scmp.ge.s32.totalorder %s9583_s26, 1 }
  0x1b   : > { %p9715_p8 = por %p354_p5, %p61_p0  ;;  %p9720_p10 = por %p360_p7, %p67_p2 }
  0x1c   : > { %s11982_s30 = scalar_select %p9711_p6, 1, 0 }
  0x1d   : > { %s11983_s13 = scalar_select %p9715_p8, 1, 0 }
  0x1e   : > { %s11985_s14 = scalar_select %p9720_p10, 1, 0 }
  0x1f   : > { %11984 = sst [smem:[#allocation25_spill]] %s11983_s13  ;;  %p367_p11 = scmp.lt.s32.totalorder %s9583_s26, 3 }
  0x20   : > { %11986 = sst [smem:[#allocation26_spill]] %s11985_s14  ;;  %s9585_s16 = smov [#allocation9]  }
  0x21   : > { %p9725_p12 = pnand %p7462_p9, %p367_p11  ;;  %s379_s17 = sshll.u32 %s9585_s16, 4  ;;  %s9729_s17 = int_to_ptr.vmem [resolvable:$true] %s379_s17 }
  0x22   : > { %s45_s19 = sadd.s32 1, %s9579_s25  ;;  %s11990_s3 = sld [smem:[#allocation43_spill]] }
  0x23   : > { %s11987_s15 = scalar_select %p9725_p12, 1, 0 }
  0x24   : > { %p8993_p13 = pneg %p9725_p12  ;;  %p9742_p2 = scmp.ge.s32.totalorder %s45_s19, 2 }
  0x26   : > { %p9736_p1 = pnand %p8993_p13, %p11918_p3 }
  0x28   : > { %s11988_s18 = scalar_select %p9736_p1, 1, 0 }
  0x29   : > { %s9315_s16 = scalar_lea.hbm %s11990_s3, 1024  ;;  %p9754_p7 = pneg %p9736_p1 }
  0x2a   : > { %p9316_p5 = scmp.ne.s32.totalorder %s11990_s3, %s9315_s16  ;;  %p9322_p13 = scmp.lt.u32.totalorder %s9315_s16, %s11990_s3 }
  0x2b   : > { %s11991_s24 = scalar_select %p9754_p7, 1, 0 }
  0x2c   : > { %p9318_p9 = pnand %p9754_p7, %p9316_p5 }
  0x2e   : > { %p9319_p11 = pneg %p9318_p9 }
  0x30   : > { %p9324_p0 = pnand %p9322_p13, %p9319_p11 }
  0x32   : > { %9327 = shalt.err (!%p9324_p0)
}
  0x33   : > { %s9328_s12 = scalar_lea.vmem %s9729_s17, 1024  ;;  %p9336_p6 = scmp.lt.s32.totalorder %s9729_s17, %s9729_s17 }
  0x34   : > { %p9329_p3 = scmp.ne.s32.totalorder %s9729_s17, %s9328_s12  ;;  %p9337_p12 = scmp.lt.s32.totalorder %s9328_s12, %s9328_s12 }
  0x36   : > { %p9331_p10 = pnand %p9329_p3, %p9754_p7  ;;  %p9338_p5 = por %p9337_p12, %p9336_p6 }
  0x38   : > { %p9332_p8 = pneg %p9331_p10 }
  0x3a   : > { %p9339_p9 = pnand %p9338_p5, %p9332_p8 }
  0x3c   : > { %9342 = shalt.err (!%p9339_p9)
}
  0x3d   : > { %s11922_s21 = smov 64   ;;  %s11924_s11 = smov 4  }
  0x3e   : > { %8996 = dma.hbm_to_vmem [thread:$0]  (!%p9736_p1), %s11990_s3, 1024, %s9729_s17, [#allocation10], %s11922_s21, %s11922_s21, %s11924_s11  }
  0x3f   : > { %s12122_s19 = smov (%p9742_p2, %s45_s19), 0  ;;  %p9020_p3 = scmp.lt.s32.totalorder %s9583_s26, 2 }
  0x40   : > { %11992 = sst [smem:[#allocation27_spill]] %s12122_s19  ;;  %s9784_s20 = sand.u32 1, %s9571_s23  }
  0x41   : > { %s49_s16 = ssub.s32 %s9579_s25, %s12122_s19  ;;  %s9789_s12 = sshll.u32 %s9579_s25, 11 }
  0x42   : > { %p52_p6 = scmp.eq.s32.totalorder %s49_s16, 0  ;;  %p9793_p8 = pnand %p9020_p3, %p9704_p4 }
  0x43   : > { %s461_s17 = sand.u32 1, %s9583_s26   ;;  %s7470_s28 = sshll.u32 %s9784_s20, 3 }
  0x44   : > { %s11993_s10 = scalar_select %p9793_p8, 1, 0 }
  0x45   : > { %s11994_s13 = sadd.s32 1, %s9571_s23  ;;  %s11996_s1 = sld [smem:[#allocation42_spill]] }
  0x46   : > { %s9802_s14 = scalar_select %p52_p6, %s9571_s23, %s11994_s13  }
  0x47   : > { %s465_s29 = scalar_lea.vmem [#allocation6], %s7470_s28  ;;  %s9812_s19 = scalar_lea.vmem [#allocation8], %s7470_s28 }
  0x48   : > { %11995 = sst [smem:[#allocation28_spill]] %s9802_s14  ;;  %s478_s16 = sshll.u32 %s465_s29, 4  ;;  %s9810_s16 = int_to_ptr.vmem [resolvable:$true] %s478_s16 }
  0x49   : > { %s505_s25 = sshll.u32 %s9812_s19, 4  ;;  %s9815_s26 = scalar_lea.sflag [#allocation7], %s461_s17  ;;  %s9850_s25 = int_to_ptr.vmem [resolvable:$true] %s505_s25 }
  0x4a   : > { %p9821_p10 = pneg %p9793_p8 }
  0x4b   : > { %s9808_s3 = scalar_lea.hbm %s11996_s1, %s9789_s12  ;;  %s9348_s28 = scalar_lea.hbm %s11996_s1, 4096 }
  0x4c   : > { %s9343_s13 = scalar_lea.hbm %s9808_s3, 128  ;;  %p9349_p2 = scmp.lt.u32.totalorder %s9808_s3, %s11996_s1 }
  0x4d   : > { %p9344_p4 = scmp.ne.s32.totalorder %s9808_s3, %s9343_s13  ;;  %p9350_p11 = scmp.lt.u32.totalorder %s9348_s28, %s9343_s13 }
  0x4e   : > { %s11997_s21 = scalar_select %p9821_p10, 1, 0 }
  0x4f   : > { %p9346_p12 = pnand %p9821_p10, %p9344_p4  ;;  %p9351_p13 = por %p9350_p11, %p9349_p2 }
  0x50   : > { %p9352_p5 = scmp.lt.u32.totalorder %s9343_s13, %s9808_s3 }
  0x51   : > { %p9347_p0 = pneg %p9346_p12 }
  0x52   : > { %p9353_p9 = por %p9352_p5, %p9351_p13 }
  0x54   : > { %p9354_p3 = pnand %p9353_p9, %p9347_p0 }
  0x56   : > { %9357 = shalt.err (!%p9354_p3)
}
  0x57   : > { %s9358_s17 = scalar_lea.vmem %s9810_s16, 128  ;;  %s9588_s11 = smov [#allocation6]  }
  0x58   : > { %p9359_p6 = scmp.ne.s32.totalorder %s9810_s16, %s9358_s17  ;;  %s9363_s29 = sshll.u32 %s9588_s11, 4  ;;  %s9364_s29 = int_to_ptr.vmem [resolvable:$false] %s9363_s29 }
  0x59   : > { %s9365_s23 = scalar_lea.vmem %s9364_s29, 256  ;;  %p9366_p1 = scmp.lt.s32.totalorder %s9810_s16, %s9364_s29 }
  0x5a   : > { %p9361_p4 = pnand %p9359_p6, %p9821_p10  ;;  %p9367_p7 = scmp.lt.s32.totalorder %s9365_s23, %s9358_s17 }
  0x5c   : > { %p9362_p12 = pneg %p9361_p4  ;;  %p9368_p2 = por %p9367_p7, %p9366_p1 }
  0x5e   : > { %p9369_p11 = pnand %p9368_p2, %p9362_p12 }
  0x60   : > { %9372 = shalt.err (!%p9369_p11)
}
  0x61   : > { %s11998_s14 = smov 4   ;;  %s11999_s13 = smov 64  }
  0x62   : > { %9009 = dma.hbm_to_vmem [thread:$0]  (!%p9793_p8), %s9808_s3, 128, %s9810_s16, %s9815_s26, %s11999_s13, %s11999_s13, %s11998_s14  }
  0x63   : > { %s9589_s28 = smov [#allocation11]   ;;  %s9590_s17 = smov [#allocation12]  }
  0x64   : > { %s398_s11 = sshll.u32 %s9589_s28, 4  ;;  %s417_s29 = sshll.u32 %s9590_s17, 4  ;;  %s399_s11 = int_to_ptr.vmem [resolvable:$true] %s398_s11  ;;  %s418_s29 = int_to_ptr.vmem [resolvable:$true] %s417_s29 }
  0x65   : > { %s9373_s8 = scalar_lea.hbm %s11906_s6, 9216  ;;  %p12000_p7 = scmp.ne.s32.totalorder %s11991_s24, 0 }
  0x66   : > { %p9374_p1 = scmp.ne.s32.totalorder %s11906_s6, %s9373_s8  ;;  %p9380_p5 = scmp.lt.u32.totalorder %s9373_s8, %s11906_s6 }
  0x68   : > { %p9376_p0 = pnand %p9374_p1, %p12000_p7 }
  0x6a   : > { %p9377_p13 = pneg %p9376_p0 }
  0x6c   : > { %p9382_p9 = pnand %p9380_p5, %p9377_p13 }
  0x6e   : > { %9385 = shalt.err (!%p9382_p9)
}
  0x6f   : > { %s9386_s16 = scalar_lea.vmem %s399_s11, 9216  ;;  %p9394_p12 = scmp.lt.s32.totalorder %s399_s11, %s399_s11 }
  0x70   : > { %p9387_p3 = scmp.ne.s32.totalorder %s399_s11, %s9386_s16  ;;  %p9395_p2 = scmp.lt.s32.totalorder %s9386_s16, %s9386_s16 }
  0x72   : > { %p9389_p6 = pnand %p9387_p3, %p12000_p7  ;;  %p9396_p11 = por %p9395_p2, %p9394_p12 }
  0x74   : > { %p9390_p4 = pneg %p9389_p6 }
  0x76   : > { %p9397_p8 = pnand %p9396_p11, %p9390_p4 }
  0x78   : > { %9400 = shalt.err (!%p9397_p8)
}
  0x79   : > { %p12001_p1 = scmp.ne.s32.totalorder %s11988_s18, 0  ;;  %s9401_s28 = scalar_lea.hbm %s11909_s9, 1024 }
  0x7a   : > { %p9402_p0 = scmp.ne.s32.totalorder %s11909_s9, %s9401_s28  ;;  %p9408_p5 = scmp.lt.u32.totalorder %s9401_s28, %s11909_s9 }
  0x7b   : > { %8999 = dma.hbm_to_vmem [thread:$0]  (!%p12001_p1), %s11906_s6, 9216, %s399_s11, [#allocation10], %s11999_s13, %s11999_s13, %s11998_s14  }
  0x7c   : > { %p9404_p8 = pnand %p9402_p0, %p12000_p7 }
  0x7e   : > { %p9405_p13 = pneg %p9404_p8 }
  0x80   : > { %p9410_p9 = pnand %p9408_p5, %p9405_p13 }
  0x82   : > { %9413 = shalt.err (!%p9410_p9)
}
  0x83   : > { %s9414_s16 = scalar_lea.vmem %s418_s29, 1024  ;;  %p9422_p12 = scmp.lt.s32.totalorder %s418_s29, %s418_s29 }
  0x84   : > { %p9415_p3 = scmp.ne.s32.totalorder %s418_s29, %s9414_s16  ;;  %p9423_p2 = scmp.lt.s32.totalorder %s9414_s16, %s9414_s16 }
  0x86   : > { %p9417_p6 = pnand %p9415_p3, %p12000_p7  ;;  %p9424_p11 = por %p9423_p2, %p9422_p12 }
  0x88   : > { %p9418_p4 = pneg %p9417_p6 }
  0x8a   : > { %p9425_p10 = pnand %p9424_p11, %p9418_p4 }
  0x8c   : > { %9428 = shalt.err (!%p9425_p10)
}
  0x8d   : > { %9002 = dma.hbm_to_vmem [thread:$0]  (!%p12001_p1), %s11909_s9, 1024, %s418_s29, [#allocation13], %s11999_s13, %s11999_s13, %s11998_s14  }
  0x8e   : > { %s7467_s24 = sshll.u32 %s9784_s20, 7  ;;  %s9899_s8 = scalar_lea.hbm %s11900_s0, %s9789_s12 }
  0x8f   : > { %s7832_s18 = sadd.s32 1920, %s9789_s12  ;;  %s441_s28 = scalar_lea.vmem [#allocation3], %s7467_s24 }
  0x90   : > { %s451_s17 = sshll.u32 %s441_s28, 4  ;;  %s9905_s19 = scalar_lea.hbm %s11902_s2, %s7832_s18  ;;  %s9907_s17 = int_to_ptr.vmem [resolvable:$true] %s451_s17 }
  0x91   : > { %s438_s29 = scalar_lea.sflag [#allocation4], %s9784_s20  ;;  %s9429_s16 = scalar_lea.hbm %s9899_s8, 2048 }
  0x92   : > { %p9430_p10 = scmp.ne.s32.totalorder %s9899_s8, %s9429_s16  ;;  %p12002_p7 = scmp.ne.s32.totalorder %s11997_s21, 0 }
  0x93   : > { %s9434_s5 = scalar_lea.hbm %s11900_s0, 4096  ;;  %p9435_p8 = scmp.lt.u32.totalorder %s9899_s8, %s11900_s0 }
  0x94   : > { %p9432_p1 = pnand %p9430_p10, %p12002_p7  ;;  %p9436_p13 = scmp.lt.u32.totalorder %s9434_s5, %s9429_s16 }
  0x95   : > { %p9438_p9 = scmp.lt.u32.totalorder %s9429_s16, %s9899_s8 }
  0x96   : > { %p9433_p0 = pneg %p9432_p1  ;;  %p9437_p5 = por %p9436_p13, %p9435_p8 }
  0x98   : > { %p9439_p3 = por %p9438_p9, %p9437_p5 }
  0x9a   : > { %p9440_p6 = pnand %p9439_p3, %p9433_p0 }
  0x9c   : > { %9443 = shalt.err (!%p9440_p6)
}
  0x9d   : > { %s9444_s7 = scalar_lea.vmem %s9907_s17, 2048  ;;  %s9591_s18 = smov [#allocation3]  }
  0x9e   : > { %p9445_p4 = scmp.ne.s32.totalorder %s9907_s17, %s9444_s7  ;;  %s9449_s28 = sshll.u32 %s9591_s18, 4  ;;  %s9450_s28 = int_to_ptr.vmem [resolvable:$false] %s9449_s28 }
  0x9f   : > { %s9451_s23 = scalar_lea.vmem %s9450_s28, 4096  ;;  %p9452_p11 = scmp.lt.s32.totalorder %s9907_s17, %s9450_s28 }
  0xa0   : > { %p9447_p12 = pnand %p9445_p4, %p12002_p7  ;;  %p9453_p10 = scmp.lt.s32.totalorder %s9451_s23, %s9444_s7 }
  0xa2   : > { %p9448_p2 = pneg %p9447_p12  ;;  %p9454_p1 = por %p9453_p10, %p9452_p11 }
  0xa4   : > { %p9455_p8 = pnand %p9454_p1, %p9448_p2 }
  0xa6   : > { %9458 = shalt.err (!%p9455_p8)
}
  0xa7   : > { %p12003_p0 = scmp.ne.s32.totalorder %s11993_s10, 0  ;;  %s9459_s3 = scalar_lea.hbm %s9905_s19, 128 }
  0xa8   : > { %p9460_p13 = scmp.ne.s32.totalorder %s9905_s19, %s9459_s3  ;;  %s9464_s1 = scalar_lea.hbm %s11902_s2, 4096 }
  0xa9   : > { %9006 = dma.hbm_to_vmem [thread:$0]  (!%p12003_p0), %s9899_s8, 2048, %s9907_s17, %s438_s29, %s11999_s13, %s11999_s13, %s11998_s14  }
  0xaa   : > { %p9462_p5 = pnand %p9460_p13, %p12002_p7  ;;  %p9465_p3 = scmp.lt.u32.totalorder %s9905_s19, %s11902_s2 }
  0xab   : > { %p9466_p6 = scmp.lt.u32.totalorder %s9464_s1, %s9459_s3  ;;  %p9468_p12 = scmp.lt.u32.totalorder %s9459_s3, %s9905_s19 }
  0xac   : > { %p9463_p9 = pneg %p9462_p5 }
  0xad   : > { %p9467_p4 = por %p9466_p6, %p9465_p3 }
  0xaf   : > { %p9469_p2 = por %p9468_p12, %p9467_p4 }
  0xb1   : > { %p9470_p11 = pnand %p9469_p2, %p9463_p9 }
  0xb3   : > { %9473 = shalt.err (!%p9470_p11)
}
  0xb4   : > { %s9474_s20 = scalar_lea.vmem %s9850_s25, 128  ;;  %s9592_s8 = smov [#allocation8]  }
  0xb5   : > { %p9475_p10 = scmp.ne.s32.totalorder %s9850_s25, %s9474_s20  ;;  %s9479_s17 = sshll.u32 %s9592_s8, 4  ;;  %s9480_s17 = int_to_ptr.vmem [resolvable:$false] %s9479_s17 }
  0xb6   : > { %s9481_s29 = scalar_lea.vmem %s9480_s17, 256  ;;  %p9482_p13 = scmp.lt.s32.totalorder %s9850_s25, %s9480_s17 }
  0xb7   : > { %p9477_p1 = pnand %p9475_p10, %p12002_p7  ;;  %p9483_p5 = scmp.lt.s32.totalorder %s9481_s29, %s9474_s20 }
  0xb9   : > { %p9478_p8 = pneg %p9477_p1  ;;  %p9484_p3 = por %p9483_p5, %p9482_p13 }
  0xbb   : > { %p9485_p6 = pnand %p9484_p3, %p9478_p8 }
  0xbd   : > { %9488 = shalt.err (!%p9485_p6)
}
  0xbe   : > { %9012 = dma.hbm_to_vmem [thread:$0]  (!%p12003_p0), %s9905_s19, 128, %s9850_s25, %s9815_s26, %s11999_s13, %s11999_s13, %s11998_s14  }
  0xbf   : > { %p12004_p7 = scmp.ne.s32.totalorder %s11987_s15, 0 }
  0xc1   : > { %517 = sbr.rel (%p12004_p7) target bundleno = 1409 (0x581), region = 68 }
  0xc8   : > { %s9964_s21 = sand.u32 1, %s9567_s22   ;;  %p12005_p9 = scmp.ne.s32.totalorder %s11982_s30, 0 }
  0xc9   : > { %s7477_s24 = sshll.u32 %s9964_s21, 7  ;;  %s520_s7 = scalar_lea.sflag [#allocation4], %s9964_s21 }
  0xca   : > { %s9968_s18 = scalar_lea.vmem [#allocation3], %s7477_s24 }
  0xcb   : > { %9542 = dma.done.wait (%p12005_p9), %s520_s7, 2048  }
  0xcc   : > { %9544 = vsyncadd (%p12005_p9), %s520_s7, 4294965248  ;;  %s528_s10 = sand.u32 1, %s9695_s27   ;;  %s7478_s25 = sshll.u32 %s9964_s21, 3 }
  0xcd   : > { %s529_s26 = scalar_lea.sflag [#allocation7], %s528_s10  ;;  %s9976_s15 = scalar_lea.vmem [#allocation6], %s7478_s25 }
  0xce   : > { %9546 = dma.done.wait (%p12005_p9), %s529_s26, 256  }
  0xcf   : > { %9548 = vsyncadd (%p12005_p9), %s529_s26, 4294967040  ;;  %s9982_s14 = scalar_lea.vmem [#allocation8], %s7478_s25  ;;  %p12006_p0 = scmp.eq.s32.totalorder %s9695_s27, 0 }
  0xd1   : > { %9550 = dma.done.wait (%p12006_p0), [#allocation10], 10240   ;;  %p12007_p4 = pmov %p12006_p0 }
  0xd2   : > { %p12008_p12 = pmov %p12006_p0 }
  0xd3   : > { %9552 = vsyncadd (%p12007_p4), [#allocation10], 4294957056 }
  0xd4   : > { %9554 = dma.done.wait (%p12008_p12), [#allocation13], 1024   ;;  %p12009_p2 = pmov %p12006_p0 }
  0xd5   : > { %v9992_v0 = vld [vmem:[#allocation9] sm:$0xff]   ;;  %v9994_v1 = vld [vmem:[#allocation9 + $0x8] sm:$0xff]   ;;  %v9999_v2 = vld [vmem:[#allocation9 + $0x10] sm:$0xff]   ;;  %v9593_v12 = vmov 0.0   ;;  %vm9594_vm0 = vmmov 0   ;;  %vm1200_vm1 = vcmask 1040384  }
  0xd6   : > { %9556 = vsyncadd (%p12009_p2), [#allocation13], 4294966272  ;;  %8149 = vmatprep.subr.bf16.mxu1 %v9992_v0  ;;  %v10003_v3 = vld [vmem:[#allocation9 + $0x18] sm:$0xff]   ;;  %v633_v4 = vld [vmem:[%s9968_s18] sm:$0xff]   ;;  %vm1201_vm2 = vsmask.f32 256 }
  0xd7   : > { %8150 = vmatpush3.bf16.msra.mxu1 %v9992_v0  ;;  %8165 = vmatprep.mubr.bf16.mxu1 %v633_v4  ;;  %v10008_v5 = vld [vmem:[#allocation9 + $0x20] sm:$0xff]   ;;  %v10011_v6 = vld [vmem:[#allocation9 + $0x28] sm:$0xff]   ;;  %v10014_v8 = vld [vmem:[#allocation9 + $0x30] sm:$0xff]   ;;  %v12010_v29 = vmov 0  ;;  %vm1257_vm4 = vsmask.f32 7938 }
  0xd8   : > { %8151 = vmatprep.subr.bf16.mxu1 %v9994_v1  ;;  %v9108_v7 = vld [vmem:[#allocation11 + $0xc0] sm:$0xff]   ;;  %v10018_v9 = vld [vmem:[#allocation9 + $0x38] sm:$0xff]   ;;  %v635_v10 = vld [vmem:[%s9968_s18 + $0x8] sm:$0xff]   ;;  %v12013_v35 = vmov 0  ;;  %v9595_v51 = vmov 0.0|0.0   ;;  %vm1341_vm7 = vcmask 1043456  }
  0xd9   : > { %8381 = vmatprep.subr.bf16.mxu0 %v9108_v7  ;;  %v637_v11 = vld [vmem:[%s9968_s18 + $0x10] sm:$0xff]   ;;  %v639_v13 = vld [vmem:[%s9968_s18 + $0x18] sm:$0xff]   ;;  %v641_v14 = vld [vmem:[%s9968_s18 + $0x20] sm:$0xff]   ;;  %v7512_v52 = vcombine.low %v9595_v51, %v9595_v51  ;;  %v7513_v53 = vcombine.high %v9595_v51, %v9595_v51  ;;  %vm1319_vm6 = vsmask.f32 4368  ;;  %s12025_s28 = sld [smem:[#allocation44_spill]] }
  0xda   : > { %8382 = vmatpush3.bf16.msra.mxu0 %v9108_v7  ;;  %v643_v15 = vld [vmem:[%s9968_s18 + $0x28] sm:$0xff]   ;;  %v645_v16 = vld [vmem:[%s9968_s18 + $0x30] sm:$0xff]   ;;  %v647_v17 = vld [vmem:[%s9968_s18 + $0x38] sm:$0xff]   ;;  %vm1977_vm10 = vsmask.f32 3328  ;;  %vm3007_vm13 = vcmask 1042432  }
  0xdb   : > { %8152 = vmatpush3.bf16.msra.mxu1 %v9994_v1  ;;  %v649_v18 = vld [vmem:[%s9968_s18 + $0x40] sm:$0xff]   ;;  %v651_v19 = vld [vmem:[%s9968_s18 + $0x48] sm:$0xff]   ;;  %v653_v20 = vld [vmem:[%s9968_s18 + $0x50] sm:$0xff]   ;;  %v1322_v62 = vshrl.u32 %v7512_v52, 16  ;;  %v1330_v63 = vshrl.u32 %v7513_v53, 16  ;;  %vm3008_vm14 = vcmask 1046532  }
  0xdc   : > { %8153 = vmatprep.subr.bf16.mxu1 %v9999_v2  ;;  %v655_v21 = vld [vmem:[%s9968_s18 + $0x58] sm:$0xff]   ;;  %v657_v22 = vld [vmem:[%s9968_s18 + $0x60] sm:$0xff]   ;;  %v659_v23 = vld [vmem:[%s9968_s18 + $0x68] sm:$0xff]   ;;  %vm1978_vm11 = vsmask.f32 7440  ;;  %s12101_s12 = sld [smem:[#allocation45_spill]] }
  0xdd   : > { %v661_v24 = vld [vmem:[%s9968_s18 + $0x70] sm:$0xff]   ;;  %v663_v25 = vld [vmem:[%s9968_s18 + $0x78] sm:$0xff]   ;;  %v9107_v26 = vld [vmem:[%s9976_s15] sm:$0xff]   ;;  %v10106_v4 = vrot.slane %v1330_v63, 7  ;;  %s12102_s17 = sld [smem:[#allocation46_spill]]  ;;  %s12103_s7 = sld [smem:[#allocation47_spill]] }
  0xde   : > { %v9109_v27 = vld [vmem:[#allocation11 + $0xc8] sm:$0xff]   ;;  %v9110_v28 = vld [vmem:[#allocation11 + $0xd0] sm:$0xff]   ;;  %vm10073_vm3 = vmand %vm1200_vm1, %vm1201_vm2  ;;  %s12104_s26 = sld [smem:[#allocation48_spill]]  ;;  %s7483_s15 = sshll.u32 %s9964_s21, 8 }
  0xdf   : > { %8154 = vmatpush3.bf16.msra.mxu1 %v9999_v2  ;;  %8383 = vmatprep.subr.bf16.mxu0 %v9109_v27  ;;  %v12011_v29 = vsel %vm10073_vm3, 4294967295, %v12010_v29  ;;  %v1209_v30 = vld [vmem:[#allocation2 + $0x18] sm:$0x1]  ;;  %v1206_v32 = vld [vmem:[#allocation2 + $0xc] sm:$0x1]  ;;  %vm10083_vm5 = vmand %vm1200_vm1, %vm1257_vm4  ;;  %12016 = vst [vmem:[#allocation31_spill] sm:$0xff] %v10106_v4 }
  0xe0   : > { %8155 = vmatprep.subr.bf16.mxu1 %v10003_v3  ;;  %8384 = vmatpush3.bf16.msra.mxu0 %v9109_v27  ;;  %12012 = vst [vmem:[#allocation29_spill] sm:$0xff] %v12011_v29  ;;  %v1210_v31 = vsel %vm10073_vm3, 0, %v1209_v30  ;;  %v9111_v33 = vld [vmem:[#allocation11 + $0x40] sm:$0xff]   ;;  %v1207_v34 = vsel %vm10073_vm3, 0, %v1206_v32  ;;  %v12014_v35 = vsel %vm10083_vm5, 4294967295, %v12013_v35  ;;  %v9113_v37 = vld [vmem:[#allocation11 + $0xd8] sm:$0xff]   ;;  %vm10110_vm8 = vmor %vm1201_vm2, %vm1319_vm6 }
  0xe1   : > { %8385 = vmatprep.subr.bf16.mxu0 %v9110_v28  ;;  %1211 = vst [vmem:[#allocation2 + $0x18] sm:$0x1] %v1210_v31  ;;  %12015 = vst [vmem:[#allocation30_spill] sm:$0xff] %v12014_v35  ;;  %v1265_v36 = vld [vmem:[#allocation2 + $0x20] sm:$0x1]  ;;  %v9112_v41 = vld [vmem:[%s9982_s14] sm:$0xff]  }
  0xe2   : > { %1208 = vst [vmem:[#allocation2 + $0xc] sm:$0x1] %v1207_v34  ;;  %v1266_v38 = vsel %vm10083_vm5, 0, %v1265_v36  ;;  %v1262_v39 = vld [vmem:[#allocation2 + $0x14] sm:$0x1]  ;;  %v9114_v46 = vld [vmem:[#allocation11 + $0x48] sm:$0xff]   ;;  %vm10118_vm9 = vmand %vm1341_vm7, %vm1257_vm4 }
  0xe3   : > { %8156 = vmatpush3.bf16.msra.mxu1 %v10003_v3  ;;  %1267 = vst [vmem:[#allocation2 + $0x20] sm:$0x1] %v1266_v38  ;;  %v1263_v40 = vsel %vm10083_vm5, 0, %v1262_v39  ;;  %v1215_v42 = vld [vmem:[#allocation2 + $0x30] sm:$0x1]  ;;  %v9115_v47 = vld [vmem:[#allocation11 + $0xe0] sm:$0xff]   ;;  %vm10150_vm12 = vmor %vm1977_vm10, %vm1978_vm11 }
  0xe4   : > { %8157 = vmatprep.subr.bf16.mxu1 %v10008_v5  ;;  %8386 = vmatpush3.bf16.msra.mxu0 %v9110_v28  ;;  %1264 = vst [vmem:[#allocation2 + $0x14] sm:$0x1] %v1263_v40  ;;  %v1216_v43 = vsel %vm10073_vm3, 0, %v1215_v42  ;;  %v1212_v44 = vld [vmem:[#allocation2 + $0x24] sm:$0x1]  ;;  %v9116_v48 = vld [vmem:[#allocation11 + $0x50] sm:$0xff]   ;;  %vm10812_vm15 = vmor %vm3007_vm13, %vm3008_vm14 }
  0xe5   : > { %8387 = vmatprep.subr.bf16.mxu0 %v9113_v37  ;;  %1217 = vst [vmem:[#allocation2 + $0x30] sm:$0x1] %v1216_v43  ;;  %v1213_v45 = vsel %vm10073_vm3, 0, %v1212_v44  ;;  %v1203_v49 = vld [vmem:[#allocation2] sm:$0x1]  ;;  %v9118_v58 = vld [vmem:[#allocation11 + $0x58] sm:$0xff]  }
  0xe6   : > { %1214 = vst [vmem:[#allocation2 + $0x24] sm:$0x1] %v1213_v45  ;;  %v1204_v50 = vsel %vm10073_vm3, 0, %v1203_v49  ;;  %v1271_v54 = vld [vmem:[#allocation2 + $0x38] sm:$0x1]  ;;  %v9117_v55 = vld [vmem:[#allocation11 + $0xe8] sm:$0xff]  }
  0xe7   : > { %8158 = vmatpush3.bf16.msra.mxu1 %v10008_v5  ;;  %1205 = vst [vmem:[#allocation2] sm:$0x1] %v1204_v50  ;;  %v1272_v56 = vsel %vm10083_vm5, 0, %v1271_v54  ;;  %v1268_v57 = vld [vmem:[#allocation2 + $0x2c] sm:$0x1]  ;;  %s11741_s14 = scalar_lea.vmem [#allocation14], %s7483_s15 }
  0xe8   : > { %8159 = vmatprep.subr.bf16.mxu1 %v10011_v6  ;;  %8388 = vmatpush3.bf16.msra.mxu0 %v9113_v37  ;;  %v1259_v59 = vld [vmem:[#allocation2 + $0x8] sm:$0x1]  ;;  %1273 = vst [vmem:[#allocation2 + $0x38] sm:$0x1] %v1272_v56  ;;  %v1269_v60 = vsel %vm10083_vm5, 0, %v1268_v57  ;;  %s12105_s27 = sld [smem:[#allocation22_spill]] }
  0xe9   : > { %8389 = vmatprep.subr.bf16.mxu0 %v9115_v47  ;;  %v1260_v61 = vsel %vm10083_vm5, 0, %v1259_v59  ;;  %1270 = vst [vmem:[#allocation2 + $0x2c] sm:$0x1] %v1269_v60  ;;  %v1221_v7 = vld [vmem:[#allocation2 + $0x48] sm:$0x1]  ;;  %s7295_s30 = sshll.u32 %s11741_s14, 4  ;;  %s11848_s30 = int_to_ptr.vmem [resolvable:$true] %s7295_s30 }
  0xea   : > { %1261 = vst [vmem:[#allocation2 + $0x8] sm:$0x1] %v1260_v61  ;;  %v1227_v27 = vld [vmem:[#allocation2 + $0x60] sm:$0x1]  ;;  %v1224_v30 = vld [vmem:[#allocation2 + $0x54] sm:$0x1] }
  0xeb   : > { %8160 = vmatpush3.bf16.msra.mxu1 %v10011_v6  ;;  %v1228_v28 = vsel %vm10073_vm3, 0, %v1227_v27  ;;  %v9125_v31 = vld [vmem:[#allocation11 + $0x70] sm:$0xff]   ;;  %v1225_v32 = vsel %vm10073_vm3, 0, %v1224_v30  ;;  %v1280_v42 = vld [vmem:[#allocation2 + $0x5c] sm:$0x1]  ;;  %s12106_s13 = sld [smem:[#allocation25_spill]] }
  0xec   : > { %8161 = vmatprep.subr.bf16.mxu1 %v10014_v8  ;;  %8390 = vmatpush3.bf16.msra.mxu0 %v9115_v47  ;;  %1229 = vst [vmem:[#allocation2 + $0x60] sm:$0x1] %v1228_v28  ;;  %1226 = vst [vmem:[#allocation2 + $0x54] sm:$0x1] %v1225_v32  ;;  %v1283_v38 = vld [vmem:[#allocation2 + $0x68] sm:$0x1] }
  0xed   : > { %8391 = vmatprep.subr.bf16.mxu0 %v9117_v55  ;;  %v1281_v45 = vsel %vm10083_vm5, 0, %v1280_v42  ;;  %v9127_v47 = vld [vmem:[#allocation11 + $0x78] sm:$0xff]   ;;  %v1233_v54 = vld [vmem:[#allocation2 + $0x78] sm:$0x1]  ;;  %v1230_v57 = vld [vmem:[#allocation2 + $0x6c] sm:$0x1] }
  0xee   : > { %1282 = vst [vmem:[#allocation2 + $0x5c] sm:$0x1] %v1281_v45  ;;  %v1234_v56 = vsel %vm10073_vm3, 0, %v1233_v54  ;;  %v1231_v60 = vsel %vm10073_vm3, 0, %v1230_v57  ;;  %v1248_v28 = vld [vmem:[#allocation2 + $0xb4] sm:$0x1] }
  0xef   : > { %8162 = vmatpush3.bf16.msra.mxu1 %v10014_v8  ;;  %1235 = vst [vmem:[#allocation2 + $0x78] sm:$0x1] %v1234_v56  ;;  %1232 = vst [vmem:[#allocation2 + $0x6c] sm:$0x1] %v1231_v60  ;;  %v1307_v30 = vld [vmem:[#allocation2 + $0xc8] sm:$0x1] }
  0xf0   : > { %8163 = vmatprep.subr.bf16.mxu1 %v10018_v9  ;;  %8392 = vmatpush3.bf16.msra.mxu0 %v9117_v55  ;;  %v1308_v32 = vsel %vm10083_vm5, 0, %v1307_v30  ;;  %s12107_s3 = sld [smem:[#allocation49_spill]]  ;;  %s7279_s11 = scalar_lea.sflag [#allocation5], %s9964_s21 }
  0xf1   : > { %1309 = vst [vmem:[#allocation2 + $0xc8] sm:$0x1] %v1308_v32  ;;  %s9489_s1 = scalar_lea.vmem %s11848_s30, 4096  ;;  %p12108_p10 = scmp.ne.s32.totalorder %s12106_s13, 0 }
  0xf2   : > { %p9490_p11 = scmp.ne.s32.totalorder %s11848_s30, %s9489_s1  ;;  %s9596_s5 = smov [#allocation14]  }
  0xf3   : > { %8164 = vmatpush3.bf16.msra.mxu1 %v10018_v9 }
  0xf4   : > { %8197 = vmatprep.subr.bf16.mxu1 %v9593_v12  ;;  %p9491_p1 = pnand %p9490_p11, %p12108_p10 }
  0xf6   : > { %8166 = vmatmul.mubr.bf16.vlgmr.msra.gmra.mrb[0].mxu1 %v635_v10  ;;  %p9492_p8 = pneg %p9491_p1 }
  0xf7   : > { %8169 = vmatprep.mubr.bf16.mxu1 %v637_v11  ;;  %8198 = vmatpush3.bf16.msra.mxu1 %v9992_v0  ;;  %v1343_v11 = vld [vmem:[#allocation2] sm:$0xf] }
  0xf8   : > { %8199 = vmatprep.subr.bf16.mxu1 %v9593_v12 }
  0xfb   : > { %8200 = vmatpush3.bf16.msra.mxu1 %v9994_v1 }
  0xfc   : > { %8201 = vmatprep.subr.bf16.mxu1 %v9593_v12 }
  0xfe   : > { %8170 = vmatmul.mubr.bf16.gmra.mrb[4].mxu1 %v639_v13  ;;  %v1222_v13 = vsel %vm10073_vm3, 0, %v1221_v7  ;;  %v1239_v7 = vld [vmem:[#allocation2 + $0x90] sm:$0x1] }
  0xff   : > { %8173 = vmatprep.mubr.bf16.mxu1 %v641_v14  ;;  %8202 = vmatpush3.bf16.msra.mxu1 %v9999_v2  ;;  %v1218_v14 = vld [vmem:[#allocation2 + $0x3c] sm:$0x1]  ;;  %1223 = vst [vmem:[#allocation2 + $0x48] sm:$0x1] %v1222_v13 }
 0x100   : > { %8203 = vmatprep.subr.bf16.mxu1 %v9593_v12 }
 0x103   : > { %8204 = vmatpush3.bf16.msra.mxu1 %v10003_v3 }
 0x104   : > { %8205 = vmatprep.subr.bf16.mxu1 %v9593_v12 }
 0x106   : > { %8174 = vmatmul.mubr.bf16.gmra.mrb[8].mxu1 %v643_v15  ;;  %v1219_v15 = vsel %vm10073_vm3, 0, %v1218_v14 }
 0x107   : > { %8177 = vmatprep.mubr.bf16.mxu1 %v645_v16  ;;  %8206 = vmatpush3.bf16.msra.mxu1 %v10008_v5  ;;  %v1277_v16 = vld [vmem:[#allocation2 + $0x50] sm:$0x1]  ;;  %1220 = vst [vmem:[#allocation2 + $0x3c] sm:$0x1] %v1219_v15  ;;  %v1292_v15 = vld [vmem:[#allocation2 + $0x8c] sm:$0x1] }
 0x108   : > { %8207 = vmatprep.subr.bf16.mxu1 %v9593_v12 }
 0x10b   : > { %8208 = vmatpush3.bf16.msra.mxu1 %v10011_v6 }
 0x10c   : > { %8209 = vmatprep.subr.bf16.mxu1 %v9593_v12 }
 0x10e   : > { %8178 = vmatmul.mubr.bf16.gmra.mrb[12].mxu1 %v647_v17  ;;  %v9121_v17 = vld [vmem:[#allocation11 + $0xf8] sm:$0xff]  }
 0x10f   : > { %8181 = vmatprep.mubr.bf16.mxu1 %v649_v18  ;;  %8210 = vmatpush3.bf16.msra.mxu1 %v10014_v8 }
 0x110   : > { %8211 = vmatprep.subr.bf16.mxu1 %v9593_v12 }
 0x113   : > { %8212 = vmatpush3.bf16.msra.mxu1 %v10018_v9 }
 0x114   : > { %8217 = vmatprep.subr.bf16.mxu1 %v9593_v12 }
 0x116   : > { %8182 = vmatmul.mubr.bf16.gmra.mrb[16].mxu1 %v651_v19 }
 0x117   : > { %8185 = vmatprep.mubr.bf16.mxu1 %v653_v20  ;;  %v1278_v20 = vsel %vm10083_vm5, 0, %v1277_v16  ;;  %v1293_v16 = vsel %vm10083_vm5, 0, %v1292_v15  ;;  %v1808_v15 = vld [vmem:[#allocation2 + $0x18] sm:$0xf] }
 0x118   : > { %1279 = vst [vmem:[#allocation2 + $0x50] sm:$0x1] %v1278_v20  ;;  %1294 = vst [vmem:[#allocation2 + $0x8c] sm:$0x1] %v1293_v16 }
 0x11e   : > { %8186 = vmatmul.mubr.bf16.gmra.mrb[20].mxu1 %v655_v21  ;;  %v1274_v21 = vld [vmem:[#allocation2 + $0x44] sm:$0x1] }
 0x11f   : > { %8189 = vmatprep.mubr.bf16.mxu1 %v657_v22  ;;  %v11940_v22 = vrot.slane %v10106_v4, 4 }
 0x126   : > { %8190 = vmatmul.mubr.bf16.gmra.mrb[24].mxu1 %v659_v23  ;;  %v1275_v23 = vsel %vm10083_vm5, 0, %v1274_v21  ;;  %v1301_v21 = vld [vmem:[#allocation2 + $0xb0] sm:$0x1] }
 0x127   : > { %8193 = vmatprep.mubr.bf16.mxu1 %v661_v24  ;;  %v1347_v24 = vld [vmem:[#allocation2 + $0x8] sm:$0x1]  ;;  %1276 = vst [vmem:[#allocation2 + $0x44] sm:$0x1] %v1275_v23  ;;  %v1298_v23 = vld [vmem:[#allocation2 + $0xa4] sm:$0x1] }
 0x12e   : > { %8194 = vmatmul.mubr.bf16.gmra.mrb[28].mxu1 %v663_v25  ;;  %v9122_v25 = vld [vmem:[#allocation11 + $0x68] sm:$0xff]  }
 0x12f   : > { %8213 = vmatprep.mubr.msk.bf16.mxu1 %vm9594_vm0, %v9593_v12 }
 0x136   : > { %8214 = vmatmul.mubr.bf16.vlgmr.msra.gmra.mrb[32].mxu1 %v9107_v26  ;;  %v1348_v26 = vsel %vm10073_vm3, %v11940_v22, %v1347_v24  ;;  %v1302_v24 = vsel %vm10083_vm5, 0, %v1301_v21 }
 0x137   : > { %8218 = vmatpush3.bf16.msra.mxu1 %v9992_v0  ;;  %8233 = vmatprep.mubr.msk.bf16.mxu1 %vm9594_vm0, %v9593_v12  ;;  %v1325_v0 = vshll.u32 %v7512_v52, 16  ;;  %1349 = vst [vmem:[#allocation2 + $0x8] sm:$0x1] %v1348_v26  ;;  %1303 = vst [vmem:[#allocation2 + $0xb0] sm:$0x1] %v1302_v24 }
 0x138   : > { %8219 = vmatprep.subr.bf16.mxu1 %v9593_v12  ;;  %v1251_v26 = vld [vmem:[#allocation2 + $0xc0] sm:$0x1] }
 0x139   : > { %v1252_v27 = vsel %vm10073_vm3, 0, %v1251_v26 }
 0x13a   : > { %1253 = vst [vmem:[#allocation2 + $0xc0] sm:$0x1] %v1252_v27 }
 0x13b   : > { %8220 = vmatpush3.bf16.msra.mxu1 %v9994_v1  ;;  %v1333_v1 = vshll.u32 %v7513_v53, 16 }
 0x13c   : > { %8221 = vmatprep.subr.bf16.mxu1 %v9593_v12 }
 0x13d   : > { %v1335_v10 = vor.u32 %v1333_v1, %v10106_v4 }
 0x13e   : > { %v1961_v43 = vld [vmem:[#allocation2 + $0x8] sm:$0x1] }
 0x13f   : > { %8222 = vmatpush3.bf16.msra.mxu1 %v9999_v2  ;;  %v9119_v2 = vld [vmem:[#allocation11 + $0xf0] sm:$0xff]   ;;  %v2000_v50 = vshll.u32 %v1961_v43, 16 }
 0x140   : > { %8223 = vmatprep.subr.bf16.mxu1 %v9593_v12  ;;  %8393 = vmatprep.subr.bf16.mxu0 %v9119_v2 }
 0x141   : > { %8394 = vmatpush3.bf16.msra.mxu0 %v9119_v2  ;;  %v2002_v53 = vrot.slane %v2000_v50, 5  ;;  %v10162_v2 = vld [vmem:[#allocation11 + $0x100] sm:$0xff]  }
 0x142   : > { %8395 = vmatprep.subr.bf16.mxu0 %v9121_v17 }
 0x143   : > { %8224 = vmatpush3.bf16.msra.mxu1 %v10003_v3  ;;  %v1324_v3 = vrot.slane %v1322_v62, 7  ;;  %v1289_v62 = vld [vmem:[#allocation2 + $0x80] sm:$0x1] }
 0x144   : > { %8225 = vmatprep.subr.bf16.mxu1 %v9593_v12 }
 0x145   : > { %8396 = vmatpush3.bf16.msra.mxu0 %v9121_v17  ;;  %v1245_v17 = vld [vmem:[#allocation2 + $0xa8] sm:$0x1] }
 0x146   : > { %8429 = vmatprep.subr.bf16.mxu0 %v10162_v2 }
 0x147   : > { %8226 = vmatpush3.bf16.msra.mxu1 %v10008_v5 }
 0x148   : > { %8227 = vmatprep.subr.bf16.mxu1 %v9593_v12 }
 0x14b   : > { %8228 = vmatpush3.bf16.msra.mxu1 %v10011_v6  ;;  %v9120_v6 = vld [vmem:[#allocation11 + $0x60] sm:$0xff]  }
 0x14c   : > { %8229 = vmatprep.subr.bf16.mxu1 %v9593_v12 }
 0x14f   : > { %8230 = vmatpush3.bf16.msra.mxu1 %v10014_v8  ;;  %v10114_v8 = vor.u32 %v1325_v0, %v1324_v3  ;;  %v1290_v0 = vsel %vm10083_vm5, 0, %v1289_v62 }
 0x150   : > { %8231 = vmatprep.subr.bf16.mxu1 %v9593_v12  ;;  %v12020_v12 = vmov 0  ;;  %1291 = vst [vmem:[#allocation2 + $0x80] sm:$0x1] %v1290_v0 }
 0x151   : > { %12019 = vst [vmem:[#allocation32_spill] sm:$0xff] %v10114_v8  ;;  %v12021_v12 = vsel %vm10118_vm9, 4294967295, %v12020_v12  ;;  %v1344_v19 = vsel %vm10118_vm9, %v10114_v8, %v1343_v11  ;;  %v1295_v11 = vld [vmem:[#allocation2 + $0x98] sm:$0x1] }
 0x152   : > { %12022 = vst [vmem:[#allocation33_spill] sm:$0xff] %v12021_v12  ;;  %1345 = vst [vmem:[#allocation2] sm:$0xf] %v1344_v19  ;;  %v1296_v14 = vsel %vm10083_vm5, 0, %v1295_v11  ;;  %v1242_v19 = vld [vmem:[#allocation2 + $0x9c] sm:$0x1] }
 0x153   : > { %8232 = vmatpush3.bf16.msra.mxu1 %v10018_v9  ;;  %v1328_v9 = vrot.slane %v1324_v3, 4  ;;  %v1286_v3 = vld [vmem:[#allocation2 + $0x74] sm:$0x1]  ;;  %1297 = vst [vmem:[#allocation2 + $0x98] sm:$0x1] %v1296_v14  ;;  %v1243_v20 = vsel %vm10073_vm3, 0, %v1242_v19 }
 0x154   : > { %8237 = vmatprep.subr.bf16.mxu1 %v9111_v33  ;;  %1244 = vst [vmem:[#allocation2 + $0x9c] sm:$0x1] %v1243_v20 }
 0x155   : > { %v1336_v18 = vsel %vm10110_vm8, %v1328_v9, %v1335_v10  ;;  %v1240_v9 = vsel %vm10073_vm3, 0, %v1239_v7  ;;  %v1236_v10 = vld [vmem:[#allocation2 + $0x84] sm:$0x1] }
 0x156   : > { %8234 = vmatmul.mubr.bf16.vlgmr.msra.gmra.mrb[36].mxu1 %v9112_v41  ;;  %1346 = vst [vmem:[#allocation2 + $0x4] sm:$0xf] %v1336_v18  ;;  %1380 = vst [vmem:[#allocation2 + $0xd0] sm:$0xf] %v1336_v18  ;;  %v1284_v41 = vsel %vm10083_vm5, 0, %v1283_v38  ;;  %v1237_v13 = vsel %vm10073_vm3, 0, %v1236_v10 }
 0x157   : > { %8238 = vmatpush3.bf16.msra.mxu1 %v9111_v33  ;;  %1285 = vst [vmem:[#allocation2 + $0x68] sm:$0x1] %v1284_v41  ;;  %1241 = vst [vmem:[#allocation2 + $0x90] sm:$0x1] %v1240_v9  ;;  %v1246_v18 = vsel %vm10073_vm3, 0, %v1245_v17 }
 0x158   : > { %8239 = vmatprep.subr.bf16.mxu1 %v9114_v46  ;;  %1238 = vst [vmem:[#allocation2 + $0x84] sm:$0x1] %v1237_v13  ;;  %1247 = vst [vmem:[#allocation2 + $0xa8] sm:$0x1] %v1246_v18 }
 0x159   : > { %v1913_v33 = vld [vmem:[#allocation2] sm:$0xf] }
 0x15a   : > { %v1981_v36 = vshrl.u32 %v1913_v33, 16  ;;  %v1984_v37 = vshll.u32 %v1913_v33, 16  ;;  %v1304_v33 = vld [vmem:[#allocation2 + $0xbc] sm:$0x1] }
 0x15b   : > { %8240 = vmatpush3.bf16.msra.mxu1 %v9114_v46 }
 0x15c   : > { %8241 = vmatprep.subr.bf16.mxu1 %v9116_v48  ;;  %v1983_v44 = vrot.slane %v1981_v36, 4  ;;  %v1986_v46 = vrot.slane %v1984_v37, 5  ;;  %v10194_v36 = vld [vmem:[%s11904_s4] ss:$0 sm:$0xff] }
 0x15d   : > { %v1914_v34 = vld [vmem:[#allocation2 + $0x4] sm:$0xf]  ;;  %v10199_v37 = vld [vmem:[%s12025_s28] ss:$0 sm:$0xff] }
 0x15e   : > { %v1990_v39 = vshll.u32 %v1914_v34, 16  ;;  %v1994_v40 = vshrl.u32 %v1914_v34, 16  ;;  %v1987_v51 = vor.u32 %v1986_v46, %v1983_v44  ;;  %v1305_v34 = vsel %vm10083_vm5, 0, %v1304_v33 }
 0x15f   : > { %8242 = vmatpush3.bf16.msra.mxu1 %v9116_v48  ;;  %1306 = vst [vmem:[#allocation2 + $0xbc] sm:$0x1] %v1305_v34 }
 0x160   : > { %8243 = vmatprep.subr.bf16.mxu1 %v9118_v58  ;;  %v1992_v48 = vrot.slane %v1990_v39, 5  ;;  %v1996_v49 = vrot.slane %v1994_v40, 4  ;;  %v1988_v55 = vrot.slane %v1987_v51, 4 }
 0x162   : > { %v1997_v52 = vor.u32 %v1996_v49, %v1992_v48  ;;  %v1993_v61 = vsel %vm10150_vm12, %v1988_v55, %v1992_v48 }
 0x163   : > { %8244 = vmatpush3.bf16.msra.mxu1 %v9118_v58 }
 0x164   : > { %8245 = vmatprep.subr.bf16.mxu1 %v9120_v6  ;;  %v1998_v59 = vrot.slane %v1997_v52, 4  ;;  %v10209_v52 = vld [vmem:[#allocation11] sm:$0xff]  }
 0x166   : > { %v2003_v63 = vsel %vm10150_vm12, %v1998_v59, %v2002_v53 }
 0x167   : > { %8246 = vmatpush3.bf16.msra.mxu1 %v9120_v6  ;;  %v7548_v1 = vcombine.low %v1993_v61, %v2003_v63  ;;  %v1287_v6 = vsel %vm10083_vm5, 0, %v1286_v3 }
 0x168   : > { %8247 = vmatprep.subr.bf16.mxu1 %v9122_v25  ;;  %1288 = vst [vmem:[#allocation2 + $0x74] sm:$0x1] %v1287_v6 }
 0x169   : > { %8253 = vmatprep.mubr.bf16.mxu1 %v7548_v1 }
 0x16b   : > { %8248 = vmatpush3.bf16.msra.mxu1 %v9122_v25  ;;  %v1299_v25 = vsel %vm10083_vm5, 0, %v1298_v23  ;;  %v1801_v23 = vld [vmem:[#allocation2 + $0xc] sm:$0xf] }
 0x16c   : > { %8249 = vmatprep.subr.bf16.mxu1 %v9125_v31  ;;  %1300 = vst [vmem:[#allocation2 + $0xa4] sm:$0x1] %v1299_v25 }
 0x16f   : > { %8250 = vmatpush3.bf16.msra.mxu1 %v9125_v31  ;;  %v1249_v31 = vsel %vm10073_vm3, 0, %v1248_v28  ;;  %v1812_v28 = vld [vmem:[#allocation2 + $0x20] sm:$0x1] }
 0x170   : > { %8251 = vmatprep.subr.bf16.mxu1 %v9127_v47  ;;  %1250 = vst [vmem:[#allocation2 + $0xb4] sm:$0x1] %v1249_v31 }
 0x173   : > { %8252 = vmatpush3.bf16.msra.mxu1 %v9127_v47 }
 0x174   : > { %8285 = vmatprep.subr.bf16.mxu1 %v10209_v52 }
 0x1c9   : > { %v8167_v38 = vpop.f32.mrb[0].mxu1 }
 0x1ca   : > { %v978_v39 = vmul.f32 %v8167_v38, %v10194_v36  ;;  %v843_v40 = vpop.f32.mrb[1].mxu1  ;;  %v1805_v38 = vld [vmem:[#allocation2 + $0x14] sm:$0x1] }
 0x1cb   : > { %v976_v41 = vmul.f32 %v10194_v36, %v843_v40  ;;  %v8168_v42 = vpop.f32.mrb[2].mxu1 }
 0x1cc   : > { %v1016_v43 = vadd.f32 %v10199_v37, %v978_v39  ;;  %v979_v44 = vmul.f32 %v8168_v42, %v10194_v36  ;;  %v846_v45 = vpop.f32.mrb[3].mxu1 }
 0x1cd   : > { %v1014_v46 = vadd.f32 %v10199_v37, %v976_v41  ;;  %v977_v47 = vmul.f32 %v10194_v36, %v846_v45 }
 0x1ce   : > { %v1048_v48 = vmax.f32 %v1016_v43, 0.0  ;;  %v1017_v49 = vadd.f32 %v10199_v37, %v979_v44 }
 0x1cf   : > { %v1046_v50 = vmax.f32 %v1014_v46, 0.0  ;;  %v1015_v51 = vadd.f32 %v10199_v37, %v977_v47 }
 0x1d0   : > { %v7835_v53 = vpack.c.bf16 %v1048_v48, %v1048_v48  ;;  %v1049_v54 = vmax.f32 %v1017_v49, 0.0 }
 0x1d1   : > { %v7833_v55 = vpack.c.bf16 %v1046_v50, %v1046_v50  ;;  %v1047_v56 = vmax.f32 %v1015_v51, 0.0  ;;  %v8171_v57 = vpop.f32.mrb[4].mxu1 }
 0x1d2   : > { %v1498_v59 = vshrl.u32 %v7835_v53, 16  ;;  %v1501_v60 = vshll.u32 %v7835_v53, 16  ;;  %v7836_v61 = vpack.c.bf16 %v1049_v54, %v1049_v54  ;;  %v982_v62 = vmul.f32 %v8171_v57, %v10194_v36  ;;  %v859_v63 = vpop.f32.mrb[5].mxu1 }
 0x1d3   : > { %v1481_v0 = vshrl.u32 %v7833_v55, 16  ;;  %v1484_v1 = vshll.u32 %v7833_v55, 16  ;;  %v7834_v3 = vpack.c.bf16 %v1047_v56, %v1047_v56  ;;  %v980_v6 = vmul.f32 %v10194_v36, %v859_v63  ;;  %v8172_v7 = vpop.f32.mrb[6].mxu1 }
 0x1d4   : > { %v1500_v9 = vrot.slane %v1498_v59, 7  ;;  %v1506_v10 = vshrl.u32 %v7836_v61, 16  ;;  %v1509_v11 = vshll.u32 %v7836_v61, 16  ;;  %v1020_v13 = vadd.f32 %v10199_v37, %v982_v62  ;;  %v862_v14 = vpop.f32.mrb[7].mxu1  ;;  %v1822_v62 = vld [vmem:[#allocation2 + $0x30] sm:$0xf] }
 0x1d5   : > { %v1483_v16 = vrot.slane %v1481_v0, 7  ;;  %v1489_v17 = vshrl.u32 %v7834_v3, 16  ;;  %v1492_v18 = vshll.u32 %v7834_v3, 16  ;;  %v1018_v19 = vadd.f32 %v10199_v37, %v980_v6 }
 0x1d6   : > { %v1503_v20 = vor.u32 %v1501_v60, %v1500_v9  ;;  %v1504_v21 = vrot.slane %v1500_v9, 4  ;;  %v1508_v24 = vrot.slane %v1506_v10, 7  ;;  %v1052_v25 = vmax.f32 %v1020_v13, 0.0  ;;  %v1815_v10 = vld [vmem:[#allocation2 + $0x24] sm:$0xf] }
 0x1d7   : > { %v1486_v26 = vor.u32 %v1484_v1, %v1483_v16  ;;  %v1487_v27 = vrot.slane %v1483_v16, 4  ;;  %v1491_v30 = vrot.slane %v1489_v17, 7  ;;  %v1050_v31 = vmax.f32 %v1018_v19, 0.0 }
 0x1d8   : > { %v1809_v32 = vsel %vm10118_vm9, %v1503_v20, %v1808_v15  ;;  %v1511_v33 = vor.u32 %v1509_v11, %v1508_v24  ;;  %v1513_v34 = vrot.slane %v1508_v24, 4  ;;  %v7839_v39 = vpack.c.bf16 %v1052_v25, %v1052_v25 }
 0x1d9   : > { %1810 = vst [vmem:[#allocation2 + $0x18] sm:$0xf] %v1809_v32  ;;  %v1802_v40 = vsel %vm10118_vm9, %v1486_v26, %v1801_v23  ;;  %v1494_v41 = vor.u32 %v1492_v18, %v1491_v30  ;;  %v1496_v42 = vrot.slane %v1491_v30, 4  ;;  %v7837_v43 = vpack.c.bf16 %v1050_v31, %v1050_v31  ;;  %v8175_v44 = vpop.f32.mrb[8].mxu1 }
 0x1da   : > { %1803 = vst [vmem:[#allocation2 + $0xc] sm:$0xf] %v1802_v40  ;;  %v1512_v45 = vsel %vm10110_vm8, %v1504_v21, %v1511_v33  ;;  %v1813_v46 = vsel %vm10073_vm3, %v1513_v34, %v1812_v28  ;;  %v1532_v47 = vshrl.u32 %v7839_v39, 16  ;;  %v1535_v48 = vshll.u32 %v7839_v39, 16  ;;  %v875_v49 = vpop.f32.mrb[9].mxu1 }
 0x1db   : > { %1811 = vst [vmem:[#allocation2 + $0x1c] sm:$0xf] %v1512_v45  ;;  %1814 = vst [vmem:[#allocation2 + $0x20] sm:$0x1] %v1813_v46  ;;  %v1495_v50 = vsel %vm10110_vm8, %v1487_v27, %v1494_v41  ;;  %v1806_v51 = vsel %vm10073_vm3, %v1496_v42, %v1805_v38  ;;  %v1515_v53 = vshrl.u32 %v7837_v43, 16  ;;  %v1518_v54 = vshll.u32 %v7837_v43, 16 }
 0x1dc   : > { %v8176_v55 = vpop.f32.mrb[10].mxu1  ;;  %1804 = vst [vmem:[#allocation2 + $0x10] sm:$0xf] %v1495_v50  ;;  %1807 = vst [vmem:[#allocation2 + $0x14] sm:$0x1] %v1806_v51  ;;  %v10228_v56 = vrot.slane %v1532_v47, 7  ;;  %v983_v57 = vmul.f32 %v8172_v7, %v10194_v36  ;;  %v981_v59 = vmul.f32 %v10194_v36, %v862_v14  ;;  %v986_v60 = vmul.f32 %v8175_v44, %v10194_v36 }
 0x1dd   : > { %v878_v61 = vpop.f32.mrb[11].mxu1  ;;  %v10233_v63 = vrot.slane %v1515_v53, 7  ;;  %v984_v0 = vmul.f32 %v10194_v36, %v875_v49  ;;  %v987_v1 = vmul.f32 %v8176_v55, %v10194_v36  ;;  %v9129_v42 = vld [vmem:[#allocation11 + $0x108] sm:$0xff]   ;;  %v1826_v55 = vld [vmem:[#allocation2 + $0x38] sm:$0x1] }
 0x1de   : > { %v985_v3 = vmul.f32 %v10194_v36, %v878_v61  ;;  %v1537_v6 = vor.u32 %v1535_v48, %v10228_v56  ;;  %v1538_v9 = vrot.slane %v10228_v56, 4  ;;  %v1021_v7 = vadd.f32 %v10199_v37, %v983_v57 }
 0x1df   : > { %v1019_v11 = vadd.f32 %v10199_v37, %v981_v59  ;;  %v1520_v13 = vor.u32 %v1518_v54, %v10233_v63  ;;  %v1521_v14 = vrot.slane %v10233_v63, 4  ;;  %v1024_v15 = vadd.f32 %v10199_v37, %v986_v60  ;;  %v1819_v59 = vld [vmem:[#allocation2 + $0x2c] sm:$0x1] }
 0x1e0   : > { %v1022_v16 = vadd.f32 %v10199_v37, %v984_v0  ;;  %v1823_v17 = vsel %vm10118_vm9, %v1537_v6, %v1822_v62  ;;  %v1053_v18 = vmax.f32 %v1021_v7, 0.0  ;;  %v1025_v20 = vadd.f32 %v10199_v37, %v987_v1  ;;  %v1836_v0 = vld [vmem:[#allocation2 + $0x48] sm:$0xf] }
 0x1e1   : > { %v1051_v19 = vmax.f32 %v1019_v11, 0.0  ;;  %1824 = vst [vmem:[#allocation2 + $0x30] sm:$0xf] %v1823_v17  ;;  %v1816_v21 = vsel %vm10118_vm9, %v1520_v13, %v1815_v10  ;;  %v1056_v23 = vmax.f32 %v1024_v15, 0.0  ;;  %v1023_v25 = vadd.f32 %v10199_v37, %v985_v3  ;;  %v8179_v26 = vpop.f32.mrb[12].mxu1 }
 0x1e2   : > { %v1054_v24 = vmax.f32 %v1022_v16, 0.0  ;;  %1817 = vst [vmem:[#allocation2 + $0x24] sm:$0xf] %v1816_v21  ;;  %v7840_v27 = vpack.c.bf16 %v1053_v18, %v1053_v18  ;;  %v1057_v30 = vmax.f32 %v1025_v20, 0.0  ;;  %v990_v31 = vmul.f32 %v8179_v26, %v10194_v36  ;;  %v891_v32 = vpop.f32.mrb[13].mxu1  ;;  %v9126_v48 = vld [vmem:[#allocation2 + $0x18] sm:$0xff]  }
 0x1e3   : > { %v7838_v28 = vpack.c.bf16 %v1051_v19, %v1051_v19  ;;  %v7843_v33 = vpack.c.bf16 %v1056_v23, %v1056_v23  ;;  %v1055_v38 = vmax.f32 %v1023_v25, 0.0  ;;  %v988_v39 = vmul.f32 %v10194_v36, %v891_v32  ;;  %v10254_v40 = vpop.f32.mrb[14].mxu1  ;;  %v9123_v41 = vld [vmem:[#allocation2 + $0xc] sm:$0xff]   ;;  %v1829_v3 = vld [vmem:[#allocation2 + $0x3c] sm:$0xf] }
 0x1e4   : > { %v7841_v34 = vpack.c.bf16 %v1054_v24, %v1054_v24  ;;  %v1540_v43 = vshrl.u32 %v7840_v27, 16  ;;  %v1543_v44 = vshll.u32 %v7840_v27, 16  ;;  %v894_v47 = vpop.f32.mrb[15].mxu1  ;;  %8397 = vmatprep.mubr.bf16.mxu0 %v9123_v41  ;;  %v7844_v60 = vpack.c.bf16 %v1057_v30, %v1057_v30  ;;  %v9132_v16 = vld [vmem:[#allocation11 + $0x110] sm:$0xff]  }
 0x1e5   : > { %v1523_v45 = vshrl.u32 %v7838_v28, 16  ;;  %v1526_v46 = vshll.u32 %v7838_v28, 16  ;;  %v1566_v49 = vshrl.u32 %v7843_v33, 16  ;;  %v1569_v50 = vshll.u32 %v7843_v33, 16  ;;  %8398 = vmatmul.mubr.bf16.vlgmr.msra.gmra.mrb[0].mxu0 %v9126_v48 }
 0x1e6   : > { %v1549_v51 = vshrl.u32 %v7841_v34, 16  ;;  %v1552_v53 = vshll.u32 %v7841_v34, 16  ;;  %v1542_v54 = vrot.slane %v1540_v43, 7  ;;  %v7842_v61 = vpack.c.bf16 %v1055_v38, %v1055_v38  ;;  %8430 = vmatpush3.bf16.msra.mxu0 %v10162_v2  ;;  %v9135_v34 = vld [vmem:[#allocation11 + $0x118] sm:$0xff]  }
 0x1e7   : > { %v1525_v57 = vrot.slane %v1523_v45, 7  ;;  %v10256_v62 = vrot.slane %v1566_v49, 7  ;;  %v1028_v6 = vadd.f32 %v10199_v37, %v990_v31  ;;  %v1026_v10 = vadd.f32 %v10199_v37, %v988_v39  ;;  %8431 = vmatprep.subr.bf16.mxu0 %v9129_v42 }
 0x1e8   : > { %v10258_v1 = vrot.slane %v1549_v51, 7  ;;  %v1545_v7 = vor.u32 %v1543_v44, %v1542_v54  ;;  %v1547_v11 = vrot.slane %v1542_v54, 4  ;;  %v1574_v27 = vshrl.u32 %v7844_v60, 16  ;;  %v1840_v44 = vld [vmem:[#allocation2 + $0x50] sm:$0x1] }
 0x1e9   : > { %v1528_v13 = vor.u32 %v1526_v46, %v1525_v57  ;;  %v1530_v15 = vrot.slane %v1525_v57, 4  ;;  %v1571_v17 = vor.u32 %v1569_v50, %v10256_v62  ;;  %v1572_v18 = vrot.slane %v10256_v62, 4  ;;  %v8183_v21 = vpop.f32.mrb[16].mxu1  ;;  %v1833_v51 = vld [vmem:[#allocation2 + $0x44] sm:$0x1] }
 0x1ea   : > { %v1554_v19 = vor.u32 %v1552_v53, %v10258_v1  ;;  %v1555_v20 = vrot.slane %v10258_v1, 4  ;;  %v1546_v2 = vsel %vm10110_vm8, %v1538_v9, %v1545_v7  ;;  %v1827_v23 = vsel %vm10073_vm3, %v1547_v11, %v1826_v55  ;;  %v907_v26 = vpop.f32.mrb[17].mxu1  ;;  %8432 = vmatpush3.bf16.msra.mxu0 %v9129_v42  ;;  %v1850_v62 = vld [vmem:[#allocation2 + $0x60] sm:$0xf]  ;;  %v1843_v11 = vld [vmem:[#allocation2 + $0x54] sm:$0xf] }
 0x1eb   : > { %v1529_v24 = vsel %vm10110_vm8, %v1521_v14, %v1528_v13  ;;  %v1820_v25 = vsel %vm10073_vm3, %v1530_v15, %v1819_v59  ;;  %1825 = vst [vmem:[#allocation2 + $0x34] sm:$0xf] %v1546_v2  ;;  %1828 = vst [vmem:[#allocation2 + $0x38] sm:$0x1] %v1827_v23  ;;  %v1837_v56 = vsel %vm10118_vm9, %v1571_v17, %v1836_v0  ;;  %v1577_v28 = vshll.u32 %v7844_v60, 16  ;;  %v8184_v63 = vpop.f32.mrb[18].mxu1 }
 0x1ec   : > { %1818 = vst [vmem:[#allocation2 + $0x28] sm:$0xf] %v1529_v24  ;;  %1821 = vst [vmem:[#allocation2 + $0x2c] sm:$0x1] %v1820_v25  ;;  %v1830_v9 = vsel %vm10118_vm9, %v1554_v19, %v1829_v3  ;;  %v1557_v14 = vshrl.u32 %v7842_v61, 16  ;;  %v1560_v30 = vshll.u32 %v7842_v61, 16  ;;  %8433 = vmatprep.subr.bf16.mxu0 %v9132_v16  ;;  %v991_v39 = vmul.f32 %v10254_v40, %v10194_v36 }
 0x1ed   : > { %1838 = vst [vmem:[#allocation2 + $0x48] sm:$0xf] %v1837_v56  ;;  %1831 = vst [vmem:[#allocation2 + $0x3c] sm:$0xf] %v1830_v9  ;;  %v1060_v31 = vmax.f32 %v1028_v6, 0.0  ;;  %v1058_v32 = vmax.f32 %v1026_v10, 0.0  ;;  %v989_v41 = vmul.f32 %v10194_v36, %v894_v47  ;;  %v994_v43 = vmul.f32 %v8183_v21, %v10194_v36 }
 0x1ee   : > { %v10283_v33 = vpop.f32.mrb[19].mxu1  ;;  %v1576_v38 = vrot.slane %v1574_v27, 7  ;;  %v1559_v42 = vrot.slane %v1557_v14, 7  ;;  %v992_v48 = vmul.f32 %v10194_v36, %v907_v26  ;;  %v1029_v53 = vadd.f32 %v10199_v37, %v991_v39  ;;  %8434 = vmatpush3.bf16.msra.mxu0 %v9132_v16  ;;  %v9138_v59 = vld [vmem:[#allocation11 + $0x120] sm:$0xff]   ;;  %v9141_v56 = vld [vmem:[#allocation11 + $0x128] sm:$0xff]  }
 0x1ef   : > { %v7847_v45 = vpack.c.bf16 %v1060_v31, %v1060_v31  ;;  %v7845_v46 = vpack.c.bf16 %v1058_v32, %v1058_v32  ;;  %v1027_v54 = vadd.f32 %v10199_v37, %v989_v41  ;;  %8435 = vmatprep.subr.bf16.mxu0 %v9135_v34  ;;  %v995_v25 = vmul.f32 %v8184_v63, %v10194_v36 }
 0x1f0   : > { %v1579_v49 = vor.u32 %v1577_v28, %v1576_v38  ;;  %v1581_v50 = vrot.slane %v1576_v38, 4  ;;  %v1562_v55 = vor.u32 %v1560_v30, %v1559_v42  ;;  %v1564_v40 = vrot.slane %v1559_v42, 4  ;;  %v10317_v30 = vld [vmem:[#allocation2 + $0xc] sm:$0xf] }
 0x1f1   : > { %v1600_v57 = vshrl.u32 %v7847_v45, 16  ;;  %v1603_v47 = vshll.u32 %v7847_v45, 16  ;;  %v1583_v0 = vshrl.u32 %v7845_v46, 16  ;;  %v1586_v1 = vshll.u32 %v7845_v46, 16  ;;  %v10296_v3 = vpop.f32.mrb[20].mxu1 }
 0x1f2   : > { %v1580_v60 = vsel %vm10110_vm8, %v1572_v18, %v1579_v49  ;;  %v1841_v61 = vsel %vm10073_vm3, %v1581_v50, %v1840_v44  ;;  %v1563_v6 = vsel %vm10110_vm8, %v1555_v20, %v1562_v55  ;;  %v1834_v10 = vsel %vm10073_vm3, %v1564_v40, %v1833_v51  ;;  %v9130_v21 = vld [vmem:[#allocation2 + $0x30] sm:$0xff]   ;;  %v10308_v2 = vpop.f32.mrb[21].mxu1  ;;  %8436 = vmatpush3.bf16.msra.mxu0 %v9135_v34  ;;  %v1854_v45 = vld [vmem:[#allocation2 + $0x68] sm:$0x1]  ;;  %v1847_v46 = vld [vmem:[#allocation2 + $0x5c] sm:$0x1] }
 0x1f3   : > { %1839 = vst [vmem:[#allocation2 + $0x4c] sm:$0xf] %v1580_v60  ;;  %1842 = vst [vmem:[#allocation2 + $0x50] sm:$0x1] %v1841_v61  ;;  %v10302_v7 = vrot.slane %v1600_v57, 7  ;;  %v1061_v13 = vmax.f32 %v1029_v53, 0.0  ;;  %v1032_v18 = vadd.f32 %v10199_v37, %v994_v43  ;;  %v1030_v19 = vadd.f32 %v10199_v37, %v992_v48  ;;  %8437 = vmatprep.subr.bf16.mxu0 %v9138_v59 }
 0x1f4   : > { %v9128_v15 = vld [vmem:[#allocation2 + $0x24] sm:$0xff]   ;;  %1832 = vst [vmem:[#allocation2 + $0x40] sm:$0xf] %v1563_v6  ;;  %1835 = vst [vmem:[#allocation2 + $0x44] sm:$0x1] %v1834_v10  ;;  %v10304_v16 = vrot.slane %v1583_v0, 7  ;;  %v1033_v49 = vadd.f32 %v10199_v37, %v995_v25  ;;  %v993_v50 = vmul.f32 %v10194_v36, %v10283_v33 }
 0x1f5   : > { %v1059_v17 = vmax.f32 %v1027_v54, 0.0  ;;  %v1605_v20 = vor.u32 %v1603_v47, %v10302_v7  ;;  %v1606_v23 = vrot.slane %v10302_v7, 4  ;;  %v7848_v24 = vpack.c.bf16 %v1061_v13, %v1061_v13  ;;  %8401 = vmatprep.mubr.bf16.mxu0 %v9128_v15  ;;  %v10313_v26 = vpop.f32.mrb[22].mxu1  ;;  %v9146_v51 = vld [vmem:[#allocation11 + $0x130] sm:$0xff]   ;;  %v1962_v25 = vld [vmem:[#allocation2 + $0x14] sm:$0x1] }
 0x1f6   : > { %v1588_v9 = vor.u32 %v1586_v1, %v10304_v16  ;;  %v1589_v27 = vrot.slane %v10304_v16, 4  ;;  %v1064_v14 = vmax.f32 %v1032_v18, 0.0  ;;  %8402 = vmatmul.mubr.bf16.gmra.mrb[4].mxu0 %v9130_v21  ;;  %v10319_v31 = vpop.f32.mrb[23].mxu1  ;;  %v1062_v38 = vmax.f32 %v1030_v19, 0.0  ;;  %v9151_v19 = vld [vmem:[#allocation11 + $0x138] sm:$0xff]  }
 0x1f7   : > { %v7846_v28 = vpack.c.bf16 %v1059_v17, %v1059_v17  ;;  %v1851_v32 = vsel %vm10118_vm9, %v1605_v20, %v1850_v62  ;;  %v1608_v63 = vshrl.u32 %v7848_v24, 16  ;;  %v1611_v34 = vshll.u32 %v7848_v24, 16  ;;  %8438 = vmatpush3.bf16.msra.mxu0 %v9138_v59  ;;  %v1864_v59 = vld [vmem:[#allocation2 + $0x78] sm:$0xf]  ;;  %v1916_v17 = vld [vmem:[#allocation2 + $0x10] sm:$0xf] }
 0x1f8   : > { %1852 = vst [vmem:[#allocation2 + $0x60] sm:$0xf] %v1851_v32  ;;  %v1844_v39 = vsel %vm10118_vm9, %v1588_v9, %v1843_v11  ;;  %v7851_v44 = vpack.c.bf16 %v1064_v14, %v1064_v14  ;;  %v7849_v48 = vpack.c.bf16 %v1062_v38, %v1062_v38  ;;  %8439 = vmatprep.subr.bf16.mxu0 %v9141_v56  ;;  %v2005_v40 = vshrl.u32 %v10317_v30, 16  ;;  %v1857_v24 = vld [vmem:[#allocation2 + $0x6c] sm:$0xf] }
 0x1f9   : > { %v1591_v41 = vshrl.u32 %v7846_v28, 16  ;;  %v1594_v43 = vshll.u32 %v7846_v28, 16  ;;  %1845 = vst [vmem:[#allocation2 + $0x54] sm:$0xf] %v1844_v39  ;;  %v1610_v42 = vrot.slane %v1608_v63, 7  ;;  %v1065_v10 = vmax.f32 %v1033_v49, 0.0 }
 0x1fa   : > { %v1634_v54 = vshrl.u32 %v7851_v44, 16  ;;  %v1637_v55 = vshll.u32 %v7851_v44, 16  ;;  %v1617_v60 = vshrl.u32 %v7849_v48, 16  ;;  %v1620_v61 = vshll.u32 %v7849_v48, 16  ;;  %v9133_v7 = vld [vmem:[#allocation2 + $0x48] sm:$0xff]   ;;  %v10331_v33 = vpop.f32.mrb[24].mxu1 }
 0x1fb   : > { %v1593_v53 = vrot.slane %v1591_v41, 7  ;;  %v1613_v57 = vor.u32 %v1611_v34, %v1610_v42  ;;  %v1615_v47 = vrot.slane %v1610_v42, 4  ;;  %v9131_v62 = vld [vmem:[#allocation2 + $0x3c] sm:$0xff]   ;;  %8440 = vmatpush3.bf16.msra.mxu0 %v9141_v56  ;;  %v1031_v16 = vadd.f32 %v10199_v37, %v993_v50  ;;  %v10340_v18 = vpop.f32.mrb[25].mxu1  ;;  %v1917_v63 = vld [vmem:[#allocation2 + $0x18] sm:$0xf] }
 0x1fc   : > { %v10329_v6 = vrot.slane %v1634_v54, 7  ;;  %v10337_v15 = vrot.slane %v1617_v60, 7  ;;  %8405 = vmatprep.mubr.bf16.mxu0 %v9131_v62  ;;  %8441 = vmatprep.subr.bf16.mxu0 %v9146_v51  ;;  %v10347_v56 = vpop.f32.mrb[26].mxu1  ;;  %v7852_v14 = vpack.c.bf16 %v1065_v10, %v1065_v10  ;;  %v2007_v38 = vrot.slane %v2005_v40, 4  ;;  %v9155_v48 = vld [vmem:[#allocation11 + $0x140] sm:$0xff]  }
 0x1fd   : > { %v1596_v0 = vor.u32 %v1594_v43, %v1593_v53  ;;  %v1598_v1 = vrot.slane %v1593_v53, 4  ;;  %v1614_v11 = vsel %vm10110_vm8, %v1606_v23, %v1613_v57  ;;  %v1855_v13 = vsel %vm10073_vm3, %v1615_v47, %v1854_v45  ;;  %v1868_v49 = vld [vmem:[#allocation2 + $0x80] sm:$0x1]  ;;  %v1861_v60 = vld [vmem:[#allocation2 + $0x74] sm:$0x1] }
 0x1fe   : > { %1853 = vst [vmem:[#allocation2 + $0x64] sm:$0xf] %v1614_v11  ;;  %1856 = vst [vmem:[#allocation2 + $0x68] sm:$0x1] %v1855_v13  ;;  %v1639_v23 = vor.u32 %v1637_v55, %v10329_v6  ;;  %8406 = vmatmul.mubr.bf16.gmra.mrb[8].mxu0 %v9133_v7  ;;  %v1640_v9 = vrot.slane %v10329_v6, 4  ;;  %v1622_v28 = vor.u32 %v1620_v61, %v10337_v15  ;;  %v1063_v32 = vmax.f32 %v1031_v16, 0.0 }
 0x1ff   : > { %v1597_v21 = vsel %vm10110_vm8, %v1589_v27, %v1596_v0  ;;  %v1848_v20 = vsel %vm10073_vm3, %v1598_v1, %v1847_v46  ;;  %v10351_v27 = vpop.f32.mrb[27].mxu1  ;;  %v2008_v39 = vshll.u32 %v10317_v30, 16  ;;  %v2014_v41 = vshll.u32 %v1916_v17, 16  ;;  %8442 = vmatpush3.bf16.msra.mxu0 %v9146_v51  ;;  %v1918_v46 = vld [vmem:[#allocation2 + $0x1c] sm:$0xf] }
 0x200   : > { %1846 = vst [vmem:[#allocation2 + $0x58] sm:$0xf] %v1597_v21  ;;  %1849 = vst [vmem:[#allocation2 + $0x5c] sm:$0x1] %v1848_v20  ;;  %v1865_v34 = vsel %vm10118_vm9, %v1639_v23, %v1864_v59  ;;  %v1623_v43 = vrot.slane %v10337_v15, 4  ;;  %v1858_v44 = vsel %vm10118_vm9, %v1622_v28, %v1857_v24  ;;  %v1642_v42 = vshrl.u32 %v7852_v14, 16  ;;  %8443 = vmatprep.subr.bf16.mxu0 %v9151_v19 }
 0x201   : > { %1866 = vst [vmem:[#allocation2 + $0x78] sm:$0xf] %v1865_v34  ;;  %v7850_v45 = vpack.c.bf16 %v1063_v32, %v1063_v32  ;;  %1859 = vst [vmem:[#allocation2 + $0x6c] sm:$0xf] %v1858_v44  ;;  %v2010_v50 = vrot.slane %v2008_v39, 5  ;;  %v2016_v53 = vrot.slane %v2014_v41, 5 }
 0x202   : > { %v2018_v54 = vshrl.u32 %v1916_v17, 16  ;;  %v2024_v55 = vshll.u32 %v1962_v25, 16  ;;  %v10359_v30 = vpop.f32.mrb[28].mxu1  ;;  %v1644_v51 = vrot.slane %v1642_v42, 7  ;;  %v1645_v40 = vshll.u32 %v7852_v14, 16 }
 0x203   : > { %v1625_v57 = vshrl.u32 %v7850_v45, 16  ;;  %v1628_v47 = vshll.u32 %v7850_v45, 16  ;;  %v10361_v59 = vpop.f32.mrb[29].mxu1  ;;  %v2011_v61 = vor.u32 %v2010_v50, %v2007_v38  ;;  %v1963_v1 = vld [vmem:[#allocation2 + $0x20] sm:$0x1]  ;;  %v2029_v6 = vshrl.u32 %v1917_v63, 16  ;;  %8444 = vmatpush3.bf16.msra.mxu0 %v9151_v19 }
 0x204   : > { %v2020_v62 = vrot.slane %v2018_v54, 4  ;;  %v2026_v0 = vrot.slane %v2024_v55, 5  ;;  %v10363_v10 = vpop.f32.mrb[30].mxu1  ;;  %v1647_v7 = vor.u32 %v1645_v40, %v1644_v51  ;;  %v1649_v11 = vrot.slane %v1644_v51, 4  ;;  %8477 = vmatprep.subr.bf16.mxu0 %v9155_v48  ;;  %v9144_v51 = vld [vmem:[#allocation11 + $0x8] sm:$0xff]  }
 0x205   : > { %v1627_v13 = vrot.slane %v1625_v57, 7  ;;  %v2032_v15 = vshll.u32 %v1917_v63, 16  ;;  %v2012_v16 = vrot.slane %v2011_v61, 4  ;;  %v2031_v21 = vrot.slane %v2029_v6, 4  ;;  %v9136_v32 = vld [vmem:[#allocation2 + $0x60] sm:$0xff]   ;;  %v10369_v19 = vpop.f32.mrb[31].mxu1 }
 0x206   : > { %v2021_v17 = vor.u32 %v2020_v62, %v2016_v53  ;;  %v2038_v20 = vshll.u32 %v1918_v46, 16  ;;  %v1648_v24 = vsel %vm10110_vm8, %v1640_v9, %v1647_v7  ;;  %v1869_v25 = vsel %vm10073_vm3, %v1649_v11, %v1868_v49  ;;  %v1920_v62 = vld [vmem:[#allocation2 + $0x28] sm:$0xf] }
 0x207   : > { %v9134_v23 = vld [vmem:[#allocation2 + $0x54] sm:$0xff]   ;;  %v1630_v28 = vor.u32 %v1628_v47, %v1627_v13  ;;  %v1632_v14 = vrot.slane %v1627_v13, 4  ;;  %1867 = vst [vmem:[#allocation2 + $0x7c] sm:$0xf] %v1648_v24  ;;  %1870 = vst [vmem:[#allocation2 + $0x80] sm:$0x1] %v1869_v25  ;;  %v2017_v63 = vsel %vm10150_vm12, %v2012_v16, %v2016_v53  ;;  %v998_v49 = vmul.f32 %v10296_v3, %v10194_v36 }
 0x208   : > { %v2022_v34 = vrot.slane %v2021_v17, 4  ;;  %v2034_v38 = vrot.slane %v2032_v15, 5  ;;  %v2040_v39 = vrot.slane %v2038_v20, 5  ;;  %8409 = vmatprep.mubr.bf16.mxu0 %v9134_v23  ;;  %v2042_v44 = vshrl.u32 %v1918_v46, 16  ;;  %v1919_v53 = vld [vmem:[#allocation2 + $0x24] sm:$0xf] }
 0x209   : > { %v1631_v9 = vsel %vm10110_vm8, %v1623_v43, %v1630_v28  ;;  %v1862_v41 = vsel %vm10073_vm3, %v1632_v14, %v1861_v60  ;;  %v2048_v42 = vshll.u32 %v1963_v1, 16  ;;  %8410 = vmatmul.mubr.bf16.gmra.mrb[12].mxu0 %v9136_v32  ;;  %v996_v50 = vmul.f32 %v10194_v36, %v10308_v2  ;;  %v1122_v3 = vpop.f32.mrb[32].mxu1  ;;  %v9147_v13 = vld [vmem:[#allocation11 + $0x10] sm:$0xff]  }
 0x20a   : > { %1860 = vst [vmem:[#allocation2 + $0x70] sm:$0xf] %v1631_v9  ;;  %1863 = vst [vmem:[#allocation2 + $0x74] sm:$0x1] %v1862_v41  ;;  %v2027_v45 = vsel %vm10150_vm12, %v2022_v34, %v2026_v0  ;;  %v2035_v48 = vor.u32 %v2034_v38, %v2031_v21  ;;  %v2044_v54 = vrot.slane %v2042_v44, 4  ;;  %v999_v46 = vmul.f32 %v10313_v26, %v10194_v36  ;;  %v8215_v25 = vpop.f32.mrb[33].mxu1 }
 0x20b   : > { %v7549_v43 = vcombine.low %v2017_v63, %v2027_v45  ;;  %v2050_v55 = vrot.slane %v2048_v42, 5  ;;  %v1036_v57 = vadd.f32 %v10199_v37, %v998_v49  ;;  %v1034_v47 = vadd.f32 %v10199_v37, %v996_v50  ;;  %v1878_v41 = vld [vmem:[#allocation2 + $0x90] sm:$0xf]  ;;  %v1125_v50 = vpop.f32.mrb[34].mxu1  ;;  %v10655_v35 = vld [vmem:[#allocation2 + $0x28] sm:$0xf] }
 0x20c   : > { %v2036_v40 = vrot.slane %v2035_v48, 4  ;;  %v997_v60 = vmul.f32 %v10194_v36, %v10319_v31  ;;  %v2045_v61 = vor.u32 %v2044_v54, %v2040_v39  ;;  %v1037_v2 = vadd.f32 %v10199_v37, %v999_v46  ;;  %v9149_v49 = vld [vmem:[#allocation11 + $0x18] sm:$0xff]   ;;  %v1871_v54 = vld [vmem:[#allocation2 + $0x84] sm:$0xf] }
 0x20d   : > { %8254 = vmatmul.mubr.bf16.vlgmr.msra.gmra.mrb[40].mxu1 %v7549_v43  ;;  %v2053_v0 = vshrl.u32 %v1919_v53, 16  ;;  %v2056_v1 = vshll.u32 %v1919_v53, 16  ;;  %v1068_v6 = vmax.f32 %v1036_v57, 0.0  ;;  %v1066_v7 = vmax.f32 %v1034_v47, 0.0 }
 0x20e   : > { %v2041_v26 = vsel %vm10150_vm12, %v2036_v40, %v2040_v39  ;;  %v1035_v11 = vadd.f32 %v10199_v37, %v997_v60  ;;  %8286 = vmatpush3.bf16.msra.mxu1 %v10209_v52  ;;  %v2046_v15 = vrot.slane %v2045_v61, 4  ;;  %v1069_v31 = vmax.f32 %v1037_v2, 0.0  ;;  %v9139_v9 = vld [vmem:[#allocation2 + $0x78] sm:$0xff]  }
 0x20f   : > { %v2055_v16 = vrot.slane %v2053_v0, 4  ;;  %v2058_v17 = vrot.slane %v2056_v1, 5  ;;  %8287 = vmatprep.subr.bf16.mxu1 %v9144_v51  ;;  %v7855_v21 = vpack.c.bf16 %v1068_v6, %v1068_v6  ;;  %v7853_v20 = vpack.c.bf16 %v1066_v7, %v1066_v7  ;;  %v1882_v0 = vld [vmem:[#allocation2 + $0x98] sm:$0x1] }
 0x210   : > { %v1067_v23 = vmax.f32 %v1035_v11, 0.0  ;;  %v2062_v24 = vshll.u32 %v1920_v62, 16  ;;  %v2051_v28 = vsel %vm10150_vm12, %v2046_v15, %v2050_v55  ;;  %v7856_v14 = vpack.c.bf16 %v1069_v31, %v1069_v31  ;;  %v1921_v11 = vld [vmem:[#allocation2 + $0x30] sm:$0xf]  ;;  %v9152_v15 = vld [vmem:[#allocation11 + $0x20] sm:$0xff]  }
 0x211   : > { %v2059_v32 = vor.u32 %v2058_v17, %v2055_v16  ;;  %v2066_v63 = vshrl.u32 %v1920_v62, 16  ;;  %v9137_v37 = vld [vmem:[#allocation2 + $0x6c] sm:$0xff]   ;;  %v7550_v34 = vcombine.low %v2041_v26, %v2051_v28  ;;  %v1668_v52 = vshrl.u32 %v7855_v21, 16 }
 0x212   : > { %v1671_v38 = vshll.u32 %v7855_v21, 16  ;;  %v1651_v39 = vshrl.u32 %v7853_v20, 16  ;;  %8288 = vmatpush3.bf16.msra.mxu1 %v9144_v51  ;;  %v1654_v44 = vshll.u32 %v7853_v20, 16  ;;  %v1676_v42 = vshrl.u32 %v7856_v14, 16  ;;  %8413 = vmatprep.mubr.bf16.mxu0 %v9137_v37  ;;  %v1964_v51 = vld [vmem:[#allocation2 + $0x2c] sm:$0x1] }
 0x213   : > { %v1679_v45 = vshll.u32 %v7856_v14, 16  ;;  %v7854_v48 = vpack.c.bf16 %v1067_v23, %v1067_v23  ;;  %8289 = vmatprep.subr.bf16.mxu1 %v9147_v13  ;;  %8257 = vmatprep.mubr.bf16.mxu1 %v7550_v34  ;;  %v1670_v53 = vrot.slane %v1668_v52, 7  ;;  %v2060_v55 = vrot.slane %v2059_v32, 4  ;;  %v1875_v17 = vld [vmem:[#allocation2 + $0x8c] sm:$0x1] }
 0x214   : > { %v1653_v43 = vrot.slane %v1651_v39, 7  ;;  %v2064_v46 = vrot.slane %v2062_v24, 5  ;;  %8414 = vmatmul.mubr.bf16.gmra.mrb[16].mxu0 %v9139_v9  ;;  %v1678_v40 = vrot.slane %v1676_v42, 7  ;;  %v2068_v60 = vrot.slane %v2066_v63, 4  ;;  %v1922_v23 = vld [vmem:[#allocation2 + $0x34] sm:$0xf] }
 0x215   : > { %v1659_v57 = vshrl.u32 %v7854_v48, 16  ;;  %v1662_v47 = vshll.u32 %v7854_v48, 16  ;;  %v1673_v3 = vor.u32 %v1671_v38, %v1670_v53  ;;  %v1674_v61 = vrot.slane %v1670_v53, 4  ;;  %v1965_v32 = vld [vmem:[#allocation2 + $0x38] sm:$0x1] }
 0x216   : > { %v1656_v2 = vor.u32 %v1654_v44, %v1653_v43  ;;  %v1657_v62 = vrot.slane %v1653_v43, 4  ;;  %8290 = vmatpush3.bf16.msra.mxu1 %v9147_v13  ;;  %v1681_v1 = vor.u32 %v1679_v45, %v1678_v40  ;;  %v1683_v26 = vrot.slane %v1678_v40, 4  ;;  %v8216_v13 = vpop.f32.mrb[35].mxu1  ;;  %v9154_v44 = vld [vmem:[#allocation11 + $0x28] sm:$0xff]   ;;  %v1923_v53 = vld [vmem:[#allocation2 + $0x3c] sm:$0xf] }
 0x217   : > { %v1661_v6 = vrot.slane %v1659_v57, 7  ;;  %v2065_v7 = vsel %vm10150_vm12, %v2060_v55, %v2064_v46  ;;  %8291 = vmatprep.subr.bf16.mxu1 %v9149_v49  ;;  %v1879_v31 = vsel %vm10118_vm9, %v1673_v3, %v1878_v41  ;;  %v2069_v21 = vor.u32 %v2068_v60, %v2064_v46  ;;  %v10423_v60 = vld [vmem:[#allocation2 + $0x40] sm:$0xf] }
 0x218   : > { %v1872_v16 = vsel %vm10118_vm9, %v1656_v2, %v1871_v54  ;;  %v2072_v20 = vshll.u32 %v1964_v51, 16  ;;  %1880 = vst [vmem:[#allocation2 + $0x90] sm:$0xf] %v1879_v31  ;;  %v1682_v24 = vsel %vm10110_vm8, %v1674_v61, %v1681_v1  ;;  %v1883_v25 = vsel %vm10073_vm3, %v1683_v26, %v1882_v0  ;;  %v9156_v2 = vld [vmem:[#allocation11 + $0x30] sm:$0xff]  }
 0x219   : > { %1873 = vst [vmem:[#allocation2 + $0x84] sm:$0xf] %v1872_v16  ;;  %v1664_v28 = vor.u32 %v1662_v47, %v1661_v6  ;;  %v1666_v14 = vrot.slane %v1661_v6, 4  ;;  %1881 = vst [vmem:[#allocation2 + $0x94] sm:$0xf] %v1682_v24  ;;  %v2070_v63 = vrot.slane %v2069_v21, 4  ;;  %v1002_v55 = vmul.f32 %v10331_v33, %v10194_v36 }
 0x21a   : > { %1884 = vst [vmem:[#allocation2 + $0x98] sm:$0x1] %v1883_v25  ;;  %v2074_v37 = vrot.slane %v2072_v20, 5  ;;  %v2077_v34 = vshrl.u32 %v1921_v11, 16  ;;  %v2080_v52 = vshll.u32 %v1921_v11, 16  ;;  %8292 = vmatpush3.bf16.msra.mxu1 %v9149_v49  ;;  %v2086_v9 = vshll.u32 %v1922_v23, 16 }
 0x21b   : > { %v1665_v38 = vsel %vm10110_vm8, %v1657_v62, %v1664_v28  ;;  %v1876_v39 = vsel %vm10073_vm3, %v1666_v14, %v1875_v17  ;;  %v2090_v41 = vshrl.u32 %v1922_v23, 16  ;;  %8293 = vmatprep.subr.bf16.mxu1 %v9152_v15  ;;  %v2096_v50 = vshll.u32 %v1965_v32, 16  ;;  %v10419_v47 = vld [vmem:[%s11904_s4] ss:$0 sm:$0xff] }
 0x21c   : > { %1874 = vst [vmem:[#allocation2 + $0x88] sm:$0xf] %v1665_v38  ;;  %1877 = vst [vmem:[#allocation2 + $0x8c] sm:$0x1] %v1876_v39  ;;  %v2075_v42 = vsel %vm10150_vm12, %v2070_v63, %v2074_v37  ;;  %v2079_v45 = vrot.slane %v2077_v34, 4  ;;  %v2082_v48 = vrot.slane %v2080_v52, 5  ;;  %v1000_v57 = vmul.f32 %v10194_v36, %v10340_v18 }
 0x21d   : > { %v7551_v49 = vcombine.low %v2065_v7, %v2075_v42  ;;  %v2088_v43 = vrot.slane %v2086_v9, 5  ;;  %v2092_v54 = vrot.slane %v2090_v41, 4  ;;  %v2098_v40 = vrot.slane %v2096_v50, 5  ;;  %v10428_v33 = vld [vmem:[%s12025_s28] ss:$0 sm:$0xff]  ;;  %v9157_v63 = vld [vmem:[#allocation11 + $0x38] sm:$0xff]  }
 0x21e   : > { %v2083_v46 = vor.u32 %v2082_v48, %v2079_v45  ;;  %v1003_v51 = vmul.f32 %v10419_v47, %v10347_v56  ;;  %8294 = vmatpush3.bf16.msra.mxu1 %v9152_v15  ;;  %v1040_v36 = vadd.f32 %v10428_v33, %v1002_v55  ;;  %v1001_v18 = vmul.f32 %v10419_v47, %v10351_v27  ;;  %v1966_v38 = vld [vmem:[#allocation2 + $0x44] sm:$0x1]  ;;  %v1892_v48 = vld [vmem:[#allocation2 + $0xa8] sm:$0xf] }
 0x21f   : > { %8258 = vmatmul.mubr.bf16.gmra.mrb[44].mxu1 %v7551_v49  ;;  %v2093_v3 = vor.u32 %v2092_v54, %v2088_v43  ;;  %v2101_v61 = vshrl.u32 %v1923_v53, 16  ;;  %8295 = vmatprep.subr.bf16.mxu1 %v9154_v44  ;;  %v1038_v56 = vadd.f32 %v10428_v33, %v1000_v57  ;;  %v2104_v1 = vshll.u32 %v1923_v53, 16 }
 0x220   : > { %v2084_v62 = vrot.slane %v2083_v46, 4  ;;  %v1041_v0 = vadd.f32 %v10428_v33, %v1003_v51  ;;  %v1072_v6 = vmax.f32 %v1040_v36, 0.0  ;;  %v1039_v7 = vadd.f32 %v10428_v33, %v1001_v18  ;;  %v9143_v32 = vld [vmem:[#allocation2 + $0x90] sm:$0xff]  }
 0x221   : > { %v2094_v26 = vrot.slane %v2093_v3, 4  ;;  %v2103_v11 = vrot.slane %v2101_v61, 4  ;;  %v1070_v31 = vmax.f32 %v1038_v56, 0.0  ;;  %v2106_v27 = vrot.slane %v2104_v1, 5  ;;  %v1885_v3 = vld [vmem:[#allocation2 + $0x9c] sm:$0xf] }
 0x222   : > { %v2089_v15 = vsel %vm10150_vm12, %v2084_v62, %v2088_v43  ;;  %v1073_v16 = vmax.f32 %v1041_v0, 0.0  ;;  %8296 = vmatpush3.bf16.msra.mxu1 %v9154_v44  ;;  %v7859_v21 = vpack.c.bf16 %v1072_v6, %v1072_v6  ;;  %v1071_v20 = vmax.f32 %v1039_v7, 0.0  ;;  %v1896_v36 = vld [vmem:[#allocation2 + $0xb0] sm:$0x1]  ;;  %v1889_v1 = vld [vmem:[#allocation2 + $0xa4] sm:$0x1] }
 0x223   : > { %v2099_v17 = vsel %vm10150_vm12, %v2094_v26, %v2098_v40  ;;  %v2110_v23 = vshll.u32 %v10423_v60, 16  ;;  %v9140_v13 = vld [vmem:[#allocation2 + $0x84] sm:$0xff]   ;;  %8297 = vmatprep.subr.bf16.mxu1 %v9156_v2  ;;  %v7857_v25 = vpack.c.bf16 %v1070_v31, %v1070_v31  ;;  %v2107_v14 = vor.u32 %v2106_v27, %v2103_v11  ;;  %v10444_v40 = vld [vmem:[#allocation11 + $0x80] sm:$0xff]   ;;  %v1967_v31 = vld [vmem:[#allocation2 + $0x50] sm:$0x1] }
 0x224   : > { %v7552_v24 = vcombine.low %v2089_v15, %v2099_v17  ;;  %v7860_v28 = vpack.c.bf16 %v1073_v16, %v1073_v16  ;;  %v1702_v37 = vshrl.u32 %v7859_v21, 16  ;;  %v1705_v34 = vshll.u32 %v7859_v21, 16  ;;  %8417 = vmatprep.mubr.bf16.mxu0 %v9140_v13  ;;  %v1925_v26 = vld [vmem:[#allocation2 + $0x48] sm:$0xf]  ;;  %v1926_v15 = vld [vmem:[#allocation2 + $0x4c] sm:$0xf] }
 0x225   : > { %v7858_v52 = vpack.c.bf16 %v1071_v20, %v1071_v20  ;;  %v10441_v39 = vrot.slane %v2110_v23, 5  ;;  %v1685_v9 = vshrl.u32 %v7857_v25, 16  ;;  %v1688_v41 = vshll.u32 %v7857_v25, 16  ;;  %8418 = vmatmul.mubr.bf16.gmra.mrb[20].mxu0 %v9143_v32 }
 0x226   : > { %8261 = vmatprep.mubr.bf16.mxu1 %v7552_v24  ;;  %v1710_v44 = vshrl.u32 %v7860_v28, 16  ;;  %v1713_v42 = vshll.u32 %v7860_v28, 16  ;;  %v1704_v45 = vrot.slane %v1702_v37, 7  ;;  %v2108_v49 = vrot.slane %v2107_v14, 4  ;;  %8298 = vmatpush3.bf16.msra.mxu1 %v9156_v2 }
 0x227   : > { %v1693_v50 = vshrl.u32 %v7858_v52, 16  ;;  %v1696_v53 = vshll.u32 %v7858_v52, 16  ;;  %v1687_v43 = vrot.slane %v1685_v9, 7  ;;  %v2114_v55 = vshrl.u32 %v10423_v60, 16  ;;  %8299 = vmatprep.subr.bf16.mxu1 %v9157_v63 }
 0x228   : > { %v1712_v54 = vrot.slane %v1710_v44, 7  ;;  %v2120_v46 = vshll.u32 %v1966_v38, 16  ;;  %v1707_v57 = vor.u32 %v1705_v34, %v1704_v45  ;;  %v1708_v51 = vrot.slane %v1704_v45, 4 }
 0x229   : > { %v1695_v18 = vrot.slane %v1693_v50, 7  ;;  %v2113_v61 = vsel %vm10150_vm12, %v2108_v49, %v10441_v39  ;;  %v1690_v62 = vor.u32 %v1688_v41, %v1687_v43  ;;  %v1691_v56 = vrot.slane %v1687_v43, 4  ;;  %v1175_v20 = vpop.f32.mrb[36].mxu1  ;;  %v1927_v41 = vld [vmem:[#allocation2 + $0x54] sm:$0xf] }
 0x22a   : > { %v1715_v2 = vor.u32 %v1713_v42, %v1712_v54  ;;  %v1717_v0 = vrot.slane %v1712_v54, 4  ;;  %v1893_v60 = vsel %vm10118_vm9, %v1707_v57, %v1892_v48  ;;  %v2116_v11 = vrot.slane %v2114_v55, 4  ;;  %8300 = vmatpush3.bf16.msra.mxu1 %v9157_v63  ;;  %v8235_v28 = vpop.f32.mrb[37].mxu1 }
 0x22b   : > { %v1698_v6 = vor.u32 %v1696_v53, %v1695_v18  ;;  %v1700_v7 = vrot.slane %v1695_v18, 4  ;;  %1894 = vst [vmem:[#allocation2 + $0xa8] sm:$0xf] %v1893_v60  ;;  %v1886_v16 = vsel %vm10118_vm9, %v1690_v62, %v1885_v3  ;;  %v2122_v21 = vrot.slane %v2120_v46, 5  ;;  %8333 = vmatprep.subr.bf16.mxu1 %v10444_v40  ;;  %v1178_v55 = vpop.f32.mrb[38].mxu1 }
 0x22c   : > { %v1716_v27 = vsel %vm10110_vm8, %v1708_v51, %v1715_v2  ;;  %v1897_v17 = vsel %vm10073_vm3, %v1717_v0, %v1896_v36  ;;  %1887 = vst [vmem:[#allocation2 + $0x9c] sm:$0xf] %v1886_v16  ;;  %v2117_v24 = vor.u32 %v2116_v11, %v10441_v39  ;;  %v2125_v25 = vshrl.u32 %v1925_v26, 16  ;;  %v8236_v36 = vpop.f32.mrb[39].mxu1  ;;  %v10477_v2 = vld [vmem:[#allocation2 + $0x58] sm:$0xf] }
 0x22d   : > { %1895 = vst [vmem:[#allocation2 + $0xac] sm:$0xf] %v1716_v27  ;;  %1898 = vst [vmem:[#allocation2 + $0xb0] sm:$0x1] %v1897_v17  ;;  %v1699_v23 = vsel %vm10110_vm8, %v1691_v56, %v1698_v6  ;;  %v1890_v13 = vsel %vm10073_vm3, %v1700_v7, %v1889_v1  ;;  %v2128_v14 = vshll.u32 %v1925_v26, 16  ;;  %v2134_v32 = vshll.u32 %v1926_v15, 16 }
 0x22e   : > { %1888 = vst [vmem:[#allocation2 + $0xa0] sm:$0xf] %v1699_v23  ;;  %1891 = vst [vmem:[#allocation2 + $0xa4] sm:$0x1] %v1890_v13  ;;  %v2138_v63 = vshrl.u32 %v1926_v15, 16  ;;  %v2144_v37 = vshll.u32 %v1967_v31, 16  ;;  %v1006_v38 = vmul.f32 %v10419_v47, %v10359_v30  ;;  %v1004_v9 = vmul.f32 %v10419_v47, %v10361_v59 }
 0x22f   : > { %v2118_v34 = vrot.slane %v2117_v24, 4  ;;  %v2127_v52 = vrot.slane %v2125_v25, 4  ;;  %v2130_v44 = vrot.slane %v2128_v14, 5  ;;  %v2136_v42 = vrot.slane %v2134_v32, 5  ;;  %v1906_v27 = vld [vmem:[#allocation2 + $0xc0] sm:$0xf] }
 0x230   : > { %v2140_v39 = vrot.slane %v2138_v63, 4  ;;  %v2146_v45 = vrot.slane %v2144_v37, 5  ;;  %v1044_v50 = vadd.f32 %v10428_v33, %v1006_v38  ;;  %v1042_v53 = vadd.f32 %v10428_v33, %v1004_v9  ;;  %v1899_v25 = vld [vmem:[#allocation2 + $0xb4] sm:$0xf] }
 0x231   : > { %v2123_v48 = vsel %vm10150_vm12, %v2118_v34, %v2122_v21  ;;  %v1007_v49 = vmul.f32 %v10419_v47, %v10363_v10  ;;  %v2131_v30 = vor.u32 %v2130_v44, %v2127_v52  ;;  %v1005_v59 = vmul.f32 %v10419_v47, %v10369_v19  ;;  %v1968_v52 = vld [vmem:[#allocation2 + $0x5c] sm:$0x1] }
 0x232   : > { %v7553_v43 = vcombine.low %v2113_v61, %v2123_v48  ;;  %v2141_v54 = vor.u32 %v2140_v39, %v2136_v42  ;;  %v1076_v46 = vmax.f32 %v1044_v50, 0.0  ;;  %v1074_v57 = vmax.f32 %v1042_v53, 0.0  ;;  %v10485_v50 = vld [vmem:[#allocation2 + $0x60] sm:$0xf] }
 0x233   : > { %v1045_v51 = vadd.f32 %v10428_v33, %v1007_v49  ;;  %v2149_v3 = vshrl.u32 %v1927_v41, 16  ;;  %v2132_v18 = vrot.slane %v2131_v30, 4  ;;  %v1043_v56 = vadd.f32 %v10428_v33, %v1005_v59  ;;  %v1903_v30 = vld [vmem:[#allocation2 + $0xbc] sm:$0x1] }
 0x234   : > { %8262 = vmatmul.mubr.bf16.gmra.mrb[48].mxu1 %v7553_v43  ;;  %v2142_v62 = vrot.slane %v2141_v54, 4  ;;  %v2152_v10 = vshll.u32 %v1927_v41, 16  ;;  %v7863_v61 = vpack.c.bf16 %v1076_v46, %v1076_v46  ;;  %v7861_v0 = vpack.c.bf16 %v1074_v57, %v1074_v57  ;;  %v9148_v11 = vld [vmem:[#allocation2 + $0xa8] sm:$0xff]  }
 0x235   : > { %v1077_v1 = vmax.f32 %v1045_v51, 0.0  ;;  %v2151_v26 = vrot.slane %v2149_v3, 4  ;;  %v9145_v19 = vld [vmem:[#allocation2 + $0x9c] sm:$0xff]   ;;  %v2137_v47 = vsel %vm10150_vm12, %v2132_v18, %v2136_v42  ;;  %v1075_v6 = vmax.f32 %v1043_v56, 0.0  ;;  %v1910_v43 = vld [vmem:[#allocation2 + $0xc8] sm:$0x1] }
 0x236   : > { %v2147_v60 = vsel %vm10150_vm12, %v2142_v62, %v2146_v45  ;;  %v2154_v7 = vrot.slane %v2152_v10, 5  ;;  %v1736_v31 = vshrl.u32 %v7863_v61, 16  ;;  %v1739_v33 = vshll.u32 %v7863_v61, 16  ;;  %8421 = vmatprep.mubr.bf16.mxu0 %v9145_v19  ;;  %v10491_v3 = vld [vmem:[#allocation2 + $0x64] sm:$0xf] }
 0x237   : > { %v7554_v15 = vcombine.low %v2137_v47, %v2147_v60  ;;  %v1719_v16 = vshrl.u32 %v7861_v0, 16  ;;  %v1722_v17 = vshll.u32 %v7861_v0, 16  ;;  %v7864_v21 = vpack.c.bf16 %v1077_v1, %v1077_v1  ;;  %8422 = vmatmul.mubr.bf16.gmra.mrb[24].mxu0 %v9148_v11  ;;  %v1969_v56 = vld [vmem:[#allocation2 + $0x68] sm:$0x1]  ;;  %v10496_v61 = vld [vmem:[#allocation2 + $0x6c] sm:$0xf] }
 0x238   : > { %v7862_v20 = vpack.c.bf16 %v1075_v6, %v1075_v6  ;;  %v2155_v23 = vor.u32 %v2154_v7, %v2151_v26  ;;  %v1738_v13 = vrot.slane %v1736_v31, 7  ;;  %v2158_v28 = vshll.u32 %v10477_v2, 16  ;;  %v10506_v47 = vld [vmem:[#allocation2 + $0x70] sm:$0xf] }
 0x239   : > { %8265 = vmatprep.mubr.bf16.mxu1 %v7554_v15  ;;  %v1721_v24 = vrot.slane %v1719_v16, 7  ;;  %v2162_v14 = vshrl.u32 %v10477_v2, 16  ;;  %v1744_v32 = vshrl.u32 %v7864_v21, 16  ;;  %v1747_v63 = vshll.u32 %v7864_v21, 16  ;;  %v10513_v16 = vld [vmem:[#allocation2 + $0x78] sm:$0xf] }
 0x23a   : > { %v1727_v37 = vshrl.u32 %v7862_v20, 16  ;;  %v1730_v34 = vshll.u32 %v7862_v20, 16  ;;  %v1741_v38 = vor.u32 %v1739_v33, %v1738_v13  ;;  %v1742_v9 = vrot.slane %v1738_v13, 4  ;;  %v1970_v20 = vld [vmem:[#allocation2 + $0x74] sm:$0x1] }
 0x23b   : > { %v1724_v41 = vor.u32 %v1722_v17, %v1721_v24  ;;  %v1725_v44 = vrot.slane %v1721_v24, 4  ;;  %v1746_v42 = vrot.slane %v1744_v32, 7  ;;  %v2156_v45 = vrot.slane %v2155_v23, 4 }
 0x23c   : > { %v1729_v39 = vrot.slane %v1727_v37, 7  ;;  %v2160_v48 = vrot.slane %v2158_v28, 5  ;;  %v1907_v53 = vsel %vm10118_vm9, %v1741_v38, %v1906_v27  ;;  %v2164_v54 = vrot.slane %v2162_v14, 4  ;;  %v10518_v14 = vld [vmem:[#allocation2 + $0x7c] sm:$0xf] }
 0x23d   : > { %v1900_v49 = vsel %vm10118_vm9, %v1724_v41, %v1899_v25  ;;  %v2168_v59 = vshll.u32 %v1968_v52, 16  ;;  %1908 = vst [vmem:[#allocation2 + $0xc0] sm:$0xf] %v1907_v53  ;;  %v1749_v55 = vor.u32 %v1747_v63, %v1746_v42  ;;  %v1751_v46 = vrot.slane %v1746_v42, 4  ;;  %v1971_v52 = vld [vmem:[#allocation2 + $0x80] sm:$0x1] }
 0x23e   : > { %1901 = vst [vmem:[#allocation2 + $0xb4] sm:$0xf] %v1900_v49  ;;  %v1732_v57 = vor.u32 %v1730_v34, %v1729_v39  ;;  %v1734_v51 = vrot.slane %v1729_v39, 4  ;;  %v2161_v36 = vsel %vm10150_vm12, %v2156_v45, %v2160_v48  ;;  %v2165_v18 = vor.u32 %v2164_v54, %v2160_v48  ;;  %v10524_v53 = vld [vmem:[#allocation2 + $0x84] sm:$0xf] }
 0x23f   : > { %v2170_v62 = vrot.slane %v2168_v59, 5  ;;  %v2173_v10 = vshrl.u32 %v10485_v50, 16  ;;  %v1750_v0 = vsel %vm10110_vm8, %v1742_v9, %v1749_v55  ;;  %v1911_v1 = vsel %vm10073_vm3, %v1751_v46, %v1910_v43 }
 0x240   : > { %v1733_v26 = vsel %vm10110_vm8, %v1725_v44, %v1732_v57  ;;  %v1904_v19 = vsel %vm10073_vm3, %v1734_v51, %v1903_v30  ;;  %1909 = vst [vmem:[#allocation2 + $0xc4] sm:$0xf] %v1750_v0  ;;  %1912 = vst [vmem:[#allocation2 + $0xc8] sm:$0x1] %v1911_v1  ;;  %v2166_v60 = vrot.slane %v2165_v18, 4  ;;  %v2176_v7 = vshll.u32 %v10485_v50, 16 }
 0x241   : > { %1902 = vst [vmem:[#allocation2 + $0xb8] sm:$0xf] %v1733_v26  ;;  %1905 = vst [vmem:[#allocation2 + $0xbc] sm:$0x1] %v1904_v19  ;;  %v2175_v6 = vrot.slane %v2173_v10, 4  ;;  %v2182_v11 = vshll.u32 %v10491_v3, 16 }
 0x242   : > { %v2186_v15 = vshrl.u32 %v10491_v3, 16  ;;  %v2192_v31 = vshll.u32 %v1969_v56, 16  ;;  %v2197_v5 = vshrl.u32 %v10496_v61, 16  ;;  %v2200_v33 = vshll.u32 %v10496_v61, 16  ;;  %v10531_v10 = vld [vmem:[#allocation2 + $0x88] sm:$0xf] }
 0x243   : > { %v2171_v27 = vsel %vm10150_vm12, %v2166_v60, %v2170_v62  ;;  %v2178_v17 = vrot.slane %v2176_v7, 5  ;;  %v2184_v21 = vrot.slane %v2182_v11, 5  ;;  %v2206_v23 = vshll.u32 %v10506_v47, 16  ;;  %v1972_v60 = vld [vmem:[#allocation2 + $0x8c] sm:$0x1] }
 0x244   : > { %v7555_v13 = vcombine.low %v2161_v36, %v2171_v27  ;;  %v2188_v24 = vrot.slane %v2186_v15, 4  ;;  %v2194_v25 = vrot.slane %v2192_v31, 5  ;;  %v2199_v28 = vrot.slane %v2197_v5, 4  ;;  %v10537_v5 = vld [vmem:[#allocation2 + $0x90] sm:$0xf] }
 0x245   : > { %v2179_v32 = vor.u32 %v2178_v17, %v2175_v6  ;;  %v2202_v63 = vrot.slane %v2200_v33, 5  ;;  %v2208_v37 = vrot.slane %v2206_v23, 5  ;;  %v2210_v34 = vshrl.u32 %v10506_v47, 16 }
 0x246   : > { %8266 = vmatmul.mubr.bf16.gmra.mrb[52].mxu1 %v7555_v13  ;;  %v2189_v38 = vor.u32 %v2188_v24, %v2184_v21  ;;  %v2216_v9 = vshll.u32 %v1970_v20, 16  ;;  %v2221_v41 = vshrl.u32 %v10513_v16, 16  ;;  %v2224_v44 = vshll.u32 %v10513_v16, 16  ;;  %v10543_v20 = vld [vmem:[#allocation2 + $0x94] sm:$0xf] }
 0x247   : > { %v2180_v42 = vrot.slane %v2179_v32, 4  ;;  %v2203_v39 = vor.u32 %v2202_v63, %v2199_v28  ;;  %v2212_v45 = vrot.slane %v2210_v34, 4  ;;  %v2230_v48 = vshll.u32 %v10518_v14, 16  ;;  %v9153_v0 = vld [vmem:[#allocation2 + $0xc0] sm:$0xff]  }
 0x248   : > { %v2190_v49 = vrot.slane %v2189_v38, 4  ;;  %v2218_v43 = vrot.slane %v2216_v9, 5  ;;  %v2223_v30 = vrot.slane %v2221_v41, 4  ;;  %v2226_v54 = vrot.slane %v2224_v44, 5  ;;  %v9150_v51 = vld [vmem:[#allocation2 + $0xb4] sm:$0xff]  }
 0x249   : > { %v2185_v59 = vsel %vm10150_vm12, %v2180_v42, %v2184_v21  ;;  %v2204_v55 = vrot.slane %v2203_v39, 4  ;;  %v2213_v46 = vor.u32 %v2212_v45, %v2208_v37  ;;  %v2232_v57 = vrot.slane %v2230_v48, 5  ;;  %8425 = vmatprep.mubr.bf16.mxu0 %v9150_v51  ;;  %v1973_v38 = vld [vmem:[#allocation2 + $0x98] sm:$0x1]  ;;  %v10551_v48 = vld [vmem:[#allocation2 + $0x9c] sm:$0xf] }
 0x24a   : > { %v2195_v36 = vsel %vm10150_vm12, %v2190_v49, %v2194_v25  ;;  %v2227_v18 = vor.u32 %v2226_v54, %v2223_v30  ;;  %v2234_v62 = vshrl.u32 %v10518_v14, 16  ;;  %v2240_v56 = vshll.u32 %v1971_v52, 16  ;;  %8426 = vmatmul.mubr.bf16.gmra.mrb[28].mxu0 %v9153_v0 }
 0x24b   : > { %v7556_v1 = vcombine.low %v2185_v59, %v2195_v36  ;;  %v2209_v26 = vsel %vm10150_vm12, %v2204_v55, %v2208_v37  ;;  %v2214_v19 = vrot.slane %v2213_v46, 4  ;;  %v2245_v6 = vshrl.u32 %v10524_v53, 16  ;;  %v10555_v59 = vld [vmem:[#allocation2 + $0xa0] sm:$0xf] }
 0x24c   : > { %v2228_v7 = vrot.slane %v2227_v18, 4  ;;  %v2236_v11 = vrot.slane %v2234_v62, 4  ;;  %v2242_v15 = vrot.slane %v2240_v56, 5  ;;  %v2248_v31 = vshll.u32 %v10524_v53, 16  ;;  %v1974_v62 = vld [vmem:[#allocation2 + $0xa4] sm:$0x1] }
 0x24d   : > { %8269 = vmatprep.mubr.bf16.mxu1 %v7556_v1  ;;  %v2219_v33 = vsel %vm10150_vm12, %v2214_v19, %v2218_v43  ;;  %v2247_v27 = vrot.slane %v2245_v6, 4  ;;  %v2254_v17 = vshll.u32 %v10531_v10, 16  ;;  %v2258_v21 = vshrl.u32 %v10531_v10, 16  ;;  %v10564_v6 = vld [vmem:[#allocation2 + $0xa8] sm:$0xf] }
 0x24e   : > { %v7557_v23 = vcombine.low %v2209_v26, %v2219_v33  ;;  %v2233_v13 = vsel %vm10150_vm12, %v2228_v7, %v2232_v57  ;;  %v2237_v24 = vor.u32 %v2236_v11, %v2232_v57  ;;  %v2250_v25 = vrot.slane %v2248_v31, 5  ;;  %v10566_v7 = vld [vmem:[#allocation2 + $0xac] sm:$0xf] }
 0x24f   : > { %v2256_v28 = vrot.slane %v2254_v17, 5  ;;  %v2260_v32 = vrot.slane %v2258_v21, 4  ;;  %v2264_v63 = vshll.u32 %v1972_v60, 16  ;;  %v2269_v37 = vshrl.u32 %v10537_v5, 16 }
 0x250   : > { %8270 = vmatmul.mubr.bf16.gmra.mrb[56].mxu1 %v7557_v23  ;;  %v2238_v34 = vrot.slane %v2237_v24, 4  ;;  %v2251_v52 = vor.u32 %v2250_v25, %v2247_v27  ;;  %v2272_v9 = vshll.u32 %v10537_v5, 16  ;;  %v2278_v41 = vshll.u32 %v10543_v20, 16  ;;  %v1975_v27 = vld [vmem:[#allocation2 + $0xb0] sm:$0x1] }
 0x251   : > { %v2261_v44 = vor.u32 %v2260_v32, %v2256_v28  ;;  %v2266_v42 = vrot.slane %v2264_v63, 5  ;;  %v2271_v39 = vrot.slane %v2269_v37, 4  ;;  %v2282_v45 = vshrl.u32 %v10543_v20, 16 }
 0x252   : > { %v2243_v49 = vsel %vm10150_vm12, %v2238_v34, %v2242_v15  ;;  %v2252_v43 = vrot.slane %v2251_v52, 4  ;;  %v2274_v30 = vrot.slane %v2272_v9, 5  ;;  %v2280_v54 = vrot.slane %v2278_v41, 5 }
 0x253   : > { %v7558_v55 = vcombine.low %v2233_v13, %v2243_v49  ;;  %v2262_v46 = vrot.slane %v2261_v44, 4  ;;  %v2284_v57 = vrot.slane %v2282_v45, 4  ;;  %v2288_v51 = vshll.u32 %v1973_v38, 16  ;;  %v3830_v38 = vld [vmem:[#allocation2 + $0xc] sm:$0xf] }
 0x254   : > { %v2257_v36 = vsel %vm10150_vm12, %v2252_v43, %v2256_v28  ;;  %v2275_v18 = vor.u32 %v2274_v30, %v2271_v39  ;;  %v2293_v56 = vshrl.u32 %v10551_v48, 16  ;;  %v2296_v0 = vshll.u32 %v10551_v48, 16  ;;  %v10576_v39 = vld [vmem:[#allocation2 + $0x10] sm:$0xf] }
 0x255   : > { %8273 = vmatprep.mubr.bf16.mxu1 %v7558_v55  ;;  %v2267_v1 = vsel %vm10150_vm12, %v2262_v46, %v2266_v42  ;;  %v2285_v26 = vor.u32 %v2284_v57, %v2280_v54  ;;  %v2290_v19 = vrot.slane %v2288_v51, 5  ;;  %v2302_v60 = vshll.u32 %v10555_v59, 16 }
 0x256   : > { %v7559_v11 = vcombine.low %v2257_v36, %v2267_v1  ;;  %v2276_v15 = vrot.slane %v2275_v18, 4  ;;  %v2295_v31 = vrot.slane %v2293_v56, 4  ;;  %v2298_v33 = vrot.slane %v2296_v0, 5  ;;  %v10583_v36 = vld [vmem:[#allocation2 + $0xb4] sm:$0xf] }
 0x257   : > { %v2286_v17 = vrot.slane %v2285_v26, 4  ;;  %v2304_v21 = vrot.slane %v2302_v60, 5  ;;  %v2306_v23 = vshrl.u32 %v10555_v59, 16  ;;  %v2312_v13 = vshll.u32 %v1974_v62, 16  ;;  %v10586_v1 = vld [vmem:[#allocation2 + $0xb8] sm:$0xf] }
 0x258   : > { %8274 = vmatmul.mubr.bf16.gmra.mrb[60].mxu1 %v7559_v11  ;;  %v2281_v24 = vsel %vm10150_vm12, %v2276_v15, %v2280_v54  ;;  %v2299_v25 = vor.u32 %v2298_v33, %v2295_v31  ;;  %v2317_v28 = vshrl.u32 %v10564_v6, 16  ;;  %v2320_v32 = vshll.u32 %v10564_v6, 16  ;;  %v10579_v54 = vld [vmem:[#allocation2 + $0x14] sm:$0x1]  ;;  %v1976_v15 = vld [vmem:[#allocation2 + $0xbc] sm:$0x1] }
 0x259   : > { %v2291_v63 = vsel %vm10150_vm12, %v2286_v17, %v2290_v19  ;;  %v2308_v37 = vrot.slane %v2306_v23, 4  ;;  %v2314_v34 = vrot.slane %v2312_v13, 5  ;;  %v2326_v52 = vshll.u32 %v10566_v7, 16 }
 0x25a   : > { %v7560_v9 = vcombine.low %v2281_v24, %v2291_v63  ;;  %v2300_v41 = vrot.slane %v2299_v25, 4  ;;  %v2319_v44 = vrot.slane %v2317_v28, 4  ;;  %v2322_v42 = vrot.slane %v2320_v32, 5 }
 0x25b   : > { %v2309_v45 = vor.u32 %v2308_v37, %v2304_v21  ;;  %v2328_v49 = vrot.slane %v2326_v52, 5  ;;  %v2330_v43 = vshrl.u32 %v10566_v7, 16  ;;  %v2336_v30 = vshll.u32 %v1975_v27, 16  ;;  %v3833_v37 = vld [vmem:[#allocation2 + $0x18] sm:$0xf] }
 0x25c   : > { %8277 = vmatprep.mubr.bf16.mxu1 %v7560_v9  ;;  %v2305_v55 = vsel %vm10150_vm12, %v2300_v41, %v2304_v21  ;;  %v2323_v46 = vor.u32 %v2322_v42, %v2319_v44  ;;  %v3879_v57 = vshrl.u32 %v3830_v38, 16  ;;  %v3882_v51 = vshll.u32 %v3830_v38, 16  ;;  %v10598_v41 = vld [vmem:[#allocation2 + $0x1c] sm:$0xf] }
 0x25d   : > { %v2310_v18 = vrot.slane %v2309_v45, 4  ;;  %v2332_v62 = vrot.slane %v2330_v43, 4  ;;  %v2338_v56 = vrot.slane %v2336_v30, 5  ;;  %v3888_v0 = vshll.u32 %v10576_v39, 16  ;;  %v10602_v43 = vld [vmem:[#allocation2 + $0x20] sm:$0x1] }
 0x25e   : > { %v2324_v26 = vrot.slane %v2323_v46, 4  ;;  %v3881_v19 = vrot.slane %v3879_v57, 4  ;;  %v3884_v60 = vrot.slane %v3882_v51, 5  ;;  %v3892_v11 = vshrl.u32 %v10576_v39, 16  ;;  %v3836_v51 = vld [vmem:[#allocation2 + $0x24] sm:$0xf] }
 0x25f   : > { %v2315_v31 = vsel %vm10150_vm12, %v2310_v18, %v2314_v34  ;;  %v2333_v33 = vor.u32 %v2332_v62, %v2328_v49  ;;  %v3890_v27 = vrot.slane %v3888_v0, 5  ;;  %v3898_v17 = vshll.u32 %v10579_v54, 16 }
 0x260   : > { %v7561_v21 = vcombine.low %v2305_v55, %v2315_v31  ;;  %v2329_v23 = vsel %vm10150_vm12, %v2324_v26, %v2328_v49  ;;  %v3885_v13 = vor.u32 %v3884_v60, %v3881_v19  ;;  %v3894_v24 = vrot.slane %v3892_v11, 4  ;;  %v10606_v19 = vld [vmem:[#allocation2 + $0x28] sm:$0xf] }
 0x261   : > { %v2334_v25 = vrot.slane %v2333_v33, 4  ;;  %v3900_v28 = vrot.slane %v3898_v17, 5  ;;  %v2341_v32 = vshrl.u32 %v10583_v36, 16  ;;  %v2344_v63 = vshll.u32 %v10583_v36, 16 }
 0x262   : > { %8278 = vmatmul.mubr.bf16.gmra.mrb[64].mxu1 %v7561_v21  ;;  %v3886_v52 = vrot.slane %v3885_v13, 4  ;;  %v3895_v34 = vor.u32 %v3894_v24, %v3890_v27  ;;  %v2350_v38 = vshll.u32 %v10586_v1, 16  ;;  %v2354_v9 = vshrl.u32 %v10586_v1, 16 }
 0x263   : > { %v2339_v44 = vsel %vm10150_vm12, %v2334_v25, %v2338_v56  ;;  %v2343_v42 = vrot.slane %v2341_v32, 4  ;;  %v2346_v45 = vrot.slane %v2344_v63, 5  ;;  %v2360_v49 = vshll.u32 %v1976_v15, 16 }
 0x264   : > { %v7562_v30 = vcombine.low %v2329_v23, %v2339_v44  ;;  %v3891_v55 = vsel %vm10150_vm12, %v3886_v52, %v3890_v27  ;;  %v3896_v46 = vrot.slane %v3895_v34, 4  ;;  %v2352_v57 = vrot.slane %v2350_v38, 5  ;;  %v10615_v38 = vld [vmem:[#allocation2 + $0x2c] sm:$0x1] }
 0x265   : > { %v2347_v18 = vor.u32 %v2346_v45, %v2343_v42  ;;  %v2356_v62 = vrot.slane %v2354_v9, 4  ;;  %v2362_v0 = vrot.slane %v2360_v49, 5  ;;  %v3903_v26 = vshrl.u32 %v3833_v37, 16 }
 0x266   : > { %8281 = vmatprep.mubr.bf16.mxu1 %v7562_v30  ;;  %v3901_v56 = vsel %vm10150_vm12, %v3896_v46, %v3900_v28  ;;  %v3906_v60 = vshll.u32 %v3833_v37, 16  ;;  %v3912_v11 = vshll.u32 %v10598_v41, 16  ;;  %v3916_v15 = vshrl.u32 %v10598_v41, 16  ;;  %v3839_v30 = vld [vmem:[#allocation2 + $0x30] sm:$0xf] }
 0x267   : > { %v7660_v31 = vcombine.low %v3891_v55, %v3901_v56  ;;  %v2348_v33 = vrot.slane %v2347_v18, 4  ;;  %v2357_v27 = vor.u32 %v2356_v62, %v2352_v57  ;;  %v3905_v17 = vrot.slane %v3903_v26, 4  ;;  %v9255_v56 = vld [vmem:[#allocation2] sm:$0xf] }
 0x268   : > { %v3908_v21 = vrot.slane %v3906_v60, 5  ;;  %v3914_v23 = vrot.slane %v3912_v11, 5  ;;  %v3918_v13 = vrot.slane %v3916_v15, 4  ;;  %v3922_v24 = vshll.u32 %v10602_v43, 16  ;;  %v10622_v60 = vld [vmem:[#allocation2 + $0x4] sm:$0xf] }
 0x269   : > { %8445 = vmatprep.mubr.bf16.mxu0 %v7660_v31  ;;  %v2353_v25 = vsel %vm10150_vm12, %v2348_v33, %v2352_v57  ;;  %v2358_v32 = vrot.slane %v2357_v27, 4  ;;  %v3927_v28 = vshrl.u32 %v3836_v51, 16  ;;  %v3930_v63 = vshll.u32 %v3836_v51, 16  ;;  %v10625_v15 = vld [vmem:[#allocation2 + $0x34] sm:$0xf] }
 0x26a   : > { %v3909_v37 = vor.u32 %v3908_v21, %v3905_v17  ;;  %v3919_v52 = vor.u32 %v3918_v13, %v3914_v23  ;;  %v3924_v34 = vrot.slane %v3922_v24, 5  ;;  %v3936_v9 = vshll.u32 %v10606_v19, 16  ;;  %v9257_v33 = vld [vmem:[#allocation2 + $0xc] sm:$0xf]  ;;  %v10631_v27 = vld [vmem:[#allocation2 + $0x10] sm:$0xf] }
 0x26b   : > { %v2363_v44 = vsel %vm10150_vm12, %v2358_v32, %v2362_v0  ;;  %v3929_v42 = vrot.slane %v3927_v28, 4  ;;  %v3932_v45 = vrot.slane %v3930_v63, 5  ;;  %v3940_v49 = vshrl.u32 %v10606_v19, 16  ;;  %v10634_v21 = vld [vmem:[#allocation2 + $0x38] sm:$0x1]  ;;  %v9159_v63 = vld [vmem:[#allocation11 + $0x148] sm:$0xff]  }
 0x26c   : > { %v7563_v55 = vcombine.low %v2353_v25, %v2363_v44  ;;  %v3910_v46 = vrot.slane %v3909_v37, 4  ;;  %v3920_v57 = vrot.slane %v3919_v52, 4  ;;  %v3938_v18 = vrot.slane %v3936_v9, 5  ;;  %v3842_v37 = vld [vmem:[#allocation2 + $0x3c] sm:$0xf] }
 0x26d   : > { %v3933_v51 = vor.u32 %v3932_v45, %v3929_v42  ;;  %v3942_v62 = vrot.slane %v3940_v49, 4  ;;  %v3946_v26 = vshll.u32 %v10615_v38, 16  ;;  %v7572_v11 = vcombine.low %v9255_v56, %v10622_v60  ;;  %v10638_v44 = vld [vmem:[#allocation2 + $0x40] sm:$0xf]  ;;  %v10646_v56 = vld [vmem:[#allocation2 + $0x44] sm:$0x1] }
 0x26e   : > { %8282 = vmatmul.mubr.bf16.gmra.mrb[68].mxu1 %v7563_v55  ;;  %v3915_v0 = vsel %vm10150_vm12, %v3910_v46, %v3914_v23  ;;  %v3925_v31 = vsel %vm10150_vm12, %v3920_v57, %v3924_v34  ;;  %v7573_v17 = vcombine.low %v9257_v33, %v10631_v27  ;;  %v3951_v13 = vshrl.u32 %v3839_v30, 16  ;;  %v9259_v55 = vld [vmem:[#allocation2 + $0x18] sm:$0xf]  ;;  %v10643_v46 = vld [vmem:[#allocation2 + $0x1c] sm:$0xf] }
 0x26f   : > { %v7661_v24 = vcombine.low %v3915_v0, %v3925_v31  ;;  %v3934_v25 = vrot.slane %v3933_v51, 4  ;;  %v3943_v32 = vor.u32 %v3942_v62, %v3938_v18  ;;  %v3948_v28 = vrot.slane %v3946_v26, 5  ;;  %8301 = vmatprep.mubr.bf16.mxu1 %v7572_v11  ;;  %v9261_v51 = vld [vmem:[#allocation11 + $0x140] sm:$0xff]  }
 0x270   : > { %v3953_v52 = vrot.slane %v3951_v13, 4  ;;  %v3954_v23 = vshll.u32 %v3839_v30, 16  ;;  %v3960_v9 = vshll.u32 %v10625_v15, 16  ;;  %v3964_v34 = vshrl.u32 %v10625_v15, 16  ;;  %v3845_v13 = vld [vmem:[#allocation2 + $0x48] sm:$0xf] }
 0x271   : > { %8446 = vmatmul.mubr.bf16.vlgmr.msra.gmra.mrb[0].mxu0 %v7661_v24  ;;  %v3939_v42 = vsel %vm10150_vm12, %v3934_v25, %v3938_v18  ;;  %v3944_v45 = vrot.slane %v3943_v32, 4  ;;  %v3970_v49 = vshll.u32 %v10634_v21, 16  ;;  %v7574_v57 = vcombine.low %v9259_v55, %v10643_v46 }
 0x272   : > { %8478 = vmatpush3.bf16.msra.mxu0 %v9261_v51  ;;  %v3956_v30 = vrot.slane %v3954_v23, 5  ;;  %v3962_v62 = vrot.slane %v3960_v9, 5  ;;  %v3966_v26 = vrot.slane %v3964_v34, 4  ;;  %v3975_v11 = vshrl.u32 %v3842_v37, 16  ;;  %v9162_v51 = vld [vmem:[#allocation11 + $0x150] sm:$0xff]  }
 0x273   : > { %v3949_v0 = vsel %vm10150_vm12, %v3944_v45, %v3948_v28  ;;  %8479 = vmatprep.subr.bf16.mxu0 %v9159_v63  ;;  %v3972_v18 = vrot.slane %v3970_v49, 5  ;;  %v3978_v31 = vshll.u32 %v3842_v37, 16  ;;  %v3984_v33 = vshll.u32 %v10638_v44, 16  ;;  %v10651_v23 = vld [vmem:[#allocation2 + $0x4c] sm:$0xf]  ;;  %v9175_v28 = vld [vmem:[#allocation11 + $0x88] sm:$0xff]  }
 0x274   : > { %v7662_v24 = vcombine.low %v3939_v42, %v3949_v0  ;;  %v3957_v25 = vor.u32 %v3956_v30, %v3953_v52  ;;  %v3967_v32 = vor.u32 %v3966_v26, %v3962_v62  ;;  %v3977_v55 = vrot.slane %v3975_v11, 4  ;;  %v9262_v49 = vld [vmem:[#allocation2 + $0x24] sm:$0xf]  ;;  %v10658_v0 = vld [vmem:[#allocation2 + $0x50] sm:$0x1] }
 0x275   : > { %v3980_v9 = vrot.slane %v3978_v31, 5  ;;  %v3986_v34 = vrot.slane %v3984_v33, 5  ;;  %v3988_v22 = vshrl.u32 %v10638_v44, 16  ;;  %v3994_v4 = vshll.u32 %v10646_v56, 16  ;;  %12026 = vst [vmem:[#allocation34_spill] sm:$0xff] %v10658_v0 }
 0x276   : > { %8449 = vmatprep.mubr.bf16.mxu0 %v7662_v24  ;;  %8302 = vmatmul.mubr.bf16.vlgmr.msra.gmra.mrb[40].mxu1 %v7573_v17  ;;  %v3958_v37 = vrot.slane %v3957_v25, 4  ;;  %v3968_v45 = vrot.slane %v3967_v32, 4  ;;  %v7575_v52 = vcombine.low %v9262_v49, %v10655_v35  ;;  %v3999_v42 = vshrl.u32 %v3845_v13, 16  ;;  %v3848_v32 = vld [vmem:[#allocation2 + $0x54] sm:$0xf] }
 0x277   : > { %8480 = vmatpush3.bf16.msra.mxu0 %v9159_v63  ;;  %8305 = vmatprep.mubr.bf16.mxu1 %v7574_v57  ;;  %v3981_v30 = vor.u32 %v3980_v9, %v3977_v55  ;;  %v3990_v26 = vrot.slane %v3988_v22, 4  ;;  %v3996_v11 = vrot.slane %v3994_v4, 5  ;;  %v4002_v31 = vshll.u32 %v3845_v13, 16  ;;  %v10666_v55 = vld [vmem:[#allocation2 + $0x58] sm:$0xf]  ;;  %v9165_v13 = vld [vmem:[#allocation11 + $0x158] sm:$0xff]  }
 0x278   : > { %v3963_v33 = vsel %vm10150_vm12, %v3958_v37, %v3962_v62  ;;  %v3973_v17 = vsel %vm10150_vm12, %v3968_v45, %v3972_v18  ;;  %8481 = vmatprep.subr.bf16.mxu0 %v9162_v51  ;;  %v4001_v24 = vrot.slane %v3999_v42, 4  ;;  %v4008_v25 = vshll.u32 %v10651_v23, 16  ;;  %8334 = vmatpush3.bf16.msra.mxu1 %v10444_v40  ;;  %12027 = vst [vmem:[#allocation35_spill] sm:$0xff] %v10666_v55  ;;  %v9178_v9 = vld [vmem:[#allocation11 + $0x90] sm:$0xff]   ;;  %v9264_v45 = vld [vmem:[#allocation2 + $0x30] sm:$0xf] }
 0x279   : > { %v7663_v63 = vcombine.low %v3963_v33, %v3973_v17  ;;  %v3982_v57 = vrot.slane %v3981_v30, 4  ;;  %v3991_v22 = vor.u32 %v3990_v26, %v3986_v34  ;;  %v4004_v4 = vrot.slane %v4002_v31, 5  ;;  %8335 = vmatprep.subr.bf16.mxu1 %v9175_v28  ;;  %v10670_v49 = vld [vmem:[#allocation2 + $0x34] sm:$0xf] }
 0x27a   : > { %v4010_v62 = vrot.slane %v4008_v25, 5  ;;  %v4012_v37 = vshrl.u32 %v10651_v23, 16  ;;  %v4018_v18 = vshll.u32 %v10658_v0, 16  ;;  %12028 = vst [vmem:[#allocation36_spill] sm:$0xff] %v10670_v49  ;;  %v7576_v42 = vcombine.low %v9264_v45, %v10670_v49  ;;  %v10675_v25 = vld [vmem:[#allocation2 + $0x5c] sm:$0x1] }
 0x27b   : > { %8450 = vmatmul.mubr.bf16.gmra.mrb[4].mxu0 %v7663_v63  ;;  %v3987_v40 = vsel %vm10150_vm12, %v3982_v57, %v3986_v34  ;;  %v3992_v30 = vrot.slane %v3991_v22, 4  ;;  %v4005_v26 = vor.u32 %v4004_v4, %v4001_v24  ;;  %v4023_v31 = vshrl.u32 %v3848_v32, 16  ;;  %12029 = vst [vmem:[#allocation37_spill] sm:$0xff] %v10675_v25  ;;  %v3851_v34 = vld [vmem:[#allocation2 + $0x60] sm:$0xf]  ;;  %v9168_v24 = vld [vmem:[#allocation11 + $0x160] sm:$0xff]  }
 0x27c   : > { %v4014_v33 = vrot.slane %v4012_v37, 4  ;;  %v4020_v17 = vrot.slane %v4018_v18, 5  ;;  %8482 = vmatpush3.bf16.msra.mxu0 %v9162_v51  ;;  %v4026_v12 = vshll.u32 %v3848_v32, 16  ;;  %v4032_v8 = vshll.u32 %v10666_v55, 16  ;;  %8336 = vmatpush3.bf16.msra.mxu1 %v9175_v28  ;;  %v10681_v32 = vld [vmem:[#allocation2 + $0x64] sm:$0xf] }
 0x27d   : > { %v3997_v29 = vsel %vm10150_vm12, %v3992_v30, %v3996_v11  ;;  %v4006_v45 = vrot.slane %v4005_v26, 4  ;;  %v4025_v63 = vrot.slane %v4023_v31, 4  ;;  %v4036_v0 = vshrl.u32 %v10666_v55, 16  ;;  %8483 = vmatprep.subr.bf16.mxu0 %v9165_v13  ;;  %8337 = vmatprep.subr.bf16.mxu1 %v9178_v9  ;;  %12030 = vst [vmem:[#allocation38_spill] sm:$0xff] %v10681_v32  ;;  %v9180_v37 = vld [vmem:[#allocation11 + $0x98] sm:$0xff]  }
 0x27e   : > { %v7664_v57 = vcombine.low %v3987_v40, %v3997_v29  ;;  %8306 = vmatmul.mubr.bf16.gmra.mrb[44].mxu1 %v7575_v52  ;;  %v4015_v51 = vor.u32 %v4014_v33, %v4010_v62  ;;  %v4028_v22 = vrot.slane %v4026_v12, 5  ;;  %v4034_v4 = vrot.slane %v4032_v8, 5  ;;  %v9266_v30 = vld [vmem:[#allocation2 + $0x3c] sm:$0xf]  ;;  %v10686_v26 = vld [vmem:[#allocation2 + $0x40] sm:$0xf] }
 0x27f   : > { %v4011_v28 = vsel %vm10150_vm12, %v4006_v45, %v4010_v62  ;;  %8309 = vmatprep.mubr.bf16.mxu1 %v7576_v42  ;;  %v4038_v11 = vrot.slane %v4036_v0, 4  ;;  %v4042_v18 = vshll.u32 %v10675_v25, 16  ;;  %12031 = vst [vmem:[#allocation39_spill] sm:$0xff] %v10686_v26  ;;  %v7577_v31 = vcombine.low %v9266_v30, %v10686_v26  ;;  %v10689_v55 = vld [vmem:[#allocation2 + $0x68] sm:$0x1]  ;;  %v9171_v42 = vld [vmem:[#allocation11 + $0x168] sm:$0xff]  }
 0x280   : > { %8453 = vmatprep.mubr.bf16.mxu0 %v7664_v57  ;;  %v4016_v29 = vrot.slane %v4015_v51, 4  ;;  %v4029_v52 = vor.u32 %v4028_v22, %v4025_v63  ;;  %v4047_v12 = vshrl.u32 %v3851_v34, 16  ;;  %v4050_v8 = vshll.u32 %v3851_v34, 16  ;;  %8484 = vmatpush3.bf16.msra.mxu0 %v9165_v13  ;;  %v3854_v22 = vld [vmem:[#allocation2 + $0x6c] sm:$0xf] }
 0x281   : > { %v4039_v40 = vor.u32 %v4038_v11, %v4034_v4  ;;  %v4044_v33 = vrot.slane %v4042_v18, 5  ;;  %v4056_v62 = vshll.u32 %v10681_v32, 16  ;;  %v4060_v0 = vshrl.u32 %v10681_v32, 16  ;;  %8485 = vmatprep.subr.bf16.mxu0 %v9168_v24  ;;  %8338 = vmatpush3.bf16.msra.mxu1 %v9178_v9  ;;  %v10695_v30 = vld [vmem:[#allocation2 + $0x70] sm:$0xf] }
 0x282   : > { %v4021_v45 = vsel %vm10150_vm12, %v4016_v29, %v4020_v17  ;;  %v4030_v57 = vrot.slane %v4029_v52, 4  ;;  %v4049_v51 = vrot.slane %v4047_v12, 4  ;;  %v4052_v63 = vrot.slane %v4050_v8, 5  ;;  %8339 = vmatprep.subr.bf16.mxu1 %v9180_v37  ;;  %v9268_v26 = vld [vmem:[#allocation2 + $0x48] sm:$0xf] }
 0x283   : > { %v7665_v13 = vcombine.low %v4011_v28, %v4021_v45  ;;  %v4040_v34 = vrot.slane %v4039_v40, 4  ;;  %v4058_v11 = vrot.slane %v4056_v62, 5  ;;  %v4062_v18 = vrot.slane %v4060_v0, 4  ;;  %v10700_v49 = vld [vmem:[#allocation2 + $0x4c] sm:$0xf]  ;;  %v9183_v40 = vld [vmem:[#allocation11 + $0xa0] sm:$0xff]  }
 0x284   : > { %v4035_v32 = vsel %vm10150_vm12, %v4030_v57, %v4034_v4  ;;  %v4053_v25 = vor.u32 %v4052_v63, %v4049_v51  ;;  %v4066_v9 = vshll.u32 %v10689_v55, 16  ;;  %v7578_v17 = vcombine.low %v9268_v26, %v10700_v49  ;;  %8486 = vmatpush3.bf16.msra.mxu0 %v9168_v24  ;;  %v10705_v52 = vld [vmem:[#allocation2 + $0x74] sm:$0x1]  ;;  %v9176_v4 = vld [vmem:[#allocation11 + $0x170] sm:$0xff]   ;;  %v3857_v26 = vld [vmem:[#allocation2 + $0x78] sm:$0xf] }
 0x285   : > { %8454 = vmatmul.mubr.bf16.gmra.mrb[8].mxu0 %v7665_v13  ;;  %v4045_v28 = vsel %vm10150_vm12, %v4040_v34, %v4044_v33  ;;  %v4063_v29 = vor.u32 %v4062_v18, %v4058_v11  ;;  %12032 = vst [vmem:[#allocation40_spill] sm:$0xff] %v10705_v52  ;;  %v4071_v12 = vshrl.u32 %v3854_v22, 16  ;;  %v4074_v8 = vshll.u32 %v3854_v22, 16  ;;  %8487 = vmatprep.subr.bf16.mxu0 %v9171_v42  ;;  %v10709_v13 = vld [vmem:[#allocation2 + $0x7c] sm:$0xf]  ;;  %v9185_v18 = vld [vmem:[#allocation11 + $0xa8] sm:$0xff]  }
 0x286   : > { %v7666_v62 = vcombine.low %v4035_v32, %v4045_v28  ;;  %8310 = vmatmul.mubr.bf16.gmra.mrb[48].mxu1 %v7577_v31  ;;  %v4054_v0 = vrot.slane %v4053_v25, 4  ;;  %v4068_v45 = vrot.slane %v4066_v9, 5  ;;  %v4080_v57 = vshll.u32 %v10695_v30, 16  ;;  %v9270_v31 = vld [vmem:[#allocation2 + $0x54] sm:$0xf] }
 0x287   : > { %v4064_v24 = vrot.slane %v4063_v29, 4  ;;  %8313 = vmatprep.mubr.bf16.mxu1 %v7578_v17  ;;  %v4073_v51 = vrot.slane %v4071_v12, 4  ;;  %v4076_v63 = vrot.slane %v4074_v8, 5  ;;  %v4084_v33 = vshrl.u32 %v10695_v30, 16  ;;  %8340 = vmatpush3.bf16.msra.mxu1 %v9180_v37  ;;  %v10717_v29 = vld [vmem:[#allocation2 + $0x80] sm:$0x1] }
 0x288   : > { %8457 = vmatprep.mubr.bf16.mxu0 %v7666_v62  ;;  %v4059_v22 = vsel %vm10150_vm12, %v4054_v0, %v4058_v11  ;;  %v4082_v32 = vrot.slane %v4080_v57, 5  ;;  %v4090_v25 = vshll.u32 %v10705_v52, 16  ;;  %v7579_v34 = vcombine.low %v9270_v31, %v10477_v2  ;;  %8488 = vmatpush3.bf16.msra.mxu0 %v9171_v42  ;;  %12033 = vst [vmem:[#allocation41_spill] sm:$0xff] %v10717_v29  ;;  %v9181_v12 = vld [vmem:[#allocation11 + $0x178] sm:$0xff]   ;;  %v3860_v57 = vld [vmem:[#allocation2 + $0x84] sm:$0xf] }
 0x289   : > { %v4069_v9 = vsel %vm10150_vm12, %v4064_v24, %v4068_v45  ;;  %v4077_v17 = vor.u32 %v4076_v63, %v4073_v51  ;;  %v4086_v28 = vrot.slane %v4084_v33, 4  ;;  %v4095_v37 = vshrl.u32 %v3857_v26, 16  ;;  %8489 = vmatprep.subr.bf16.mxu0 %v9176_v4  ;;  %8341 = vmatprep.subr.bf16.mxu1 %v9183_v40  ;;  %v10721_v45 = vld [vmem:[#allocation2 + $0x88] sm:$0xf] }
 0x28a   : > { %v7667_v11 = vcombine.low %v4059_v22, %v4069_v9  ;;  %v4092_v8 = vrot.slane %v4090_v25, 5  ;;  %v4098_v62 = vshll.u32 %v3857_v26, 16  ;;  %v4104_v0 = vshll.u32 %v10709_v13, 16  ;;  %v9188_v26 = vld [vmem:[#allocation11 + $0xb0] sm:$0xff]  }
 0x28b   : > { %v4078_v2 = vrot.slane %v4077_v17, 4  ;;  %v4087_v42 = vor.u32 %v4086_v28, %v4082_v32  ;;  %v4097_v31 = vrot.slane %v4095_v37, 4  ;;  %v4108_v52 = vshrl.u32 %v10709_v13, 16  ;;  %8342 = vmatpush3.bf16.msra.mxu1 %v9183_v40  ;;  %v10728_v28 = vld [vmem:[#allocation11 + $0x180] sm:$0xff]  }
 0x28c   : > { %v4100_v24 = vrot.slane %v4098_v62, 5  ;;  %v4106_v51 = vrot.slane %v4104_v0, 5  ;;  %v4114_v63 = vshll.u32 %v10717_v29, 16  ;;  %v7580_v33 = vcombine.low %v10485_v50, %v10491_v3  ;;  %8490 = vmatpush3.bf16.msra.mxu0 %v9176_v4  ;;  %8343 = vmatprep.subr.bf16.mxu1 %v9185_v18  ;;  %v10730_v62 = vld [vmem:[#allocation2 + $0x8c] sm:$0x1] }
 0x28d   : > { %8458 = vmatmul.mubr.bf16.gmra.mrb[12].mxu0 %v7667_v11  ;;  %v4083_v22 = vsel %vm10150_vm12, %v4078_v2, %v4082_v32  ;;  %v4088_v25 = vrot.slane %v4087_v42, 4  ;;  %v4110_v9 = vrot.slane %v4108_v52, 4  ;;  %v4119_v17 = vshrl.u32 %v3860_v57, 16  ;;  %8491 = vmatprep.subr.bf16.mxu0 %v9181_v12  ;;  %v3863_v11 = vld [vmem:[#allocation2 + $0x90] sm:$0xf] }
 0x28e   : > { %8314 = vmatmul.mubr.bf16.gmra.mrb[52].mxu1 %v7579_v34  ;;  %v4101_v40 = vor.u32 %v4100_v24, %v4097_v31  ;;  %v4116_v37 = vrot.slane %v4114_v63, 5  ;;  %v4122_v0 = vshll.u32 %v3860_v57, 16  ;;  %v4128_v50 = vshll.u32 %v10721_v45, 16  ;;  %v10736_v24 = vld [vmem:[#allocation2 + $0x94] sm:$0xf] }
 0x28f   : > { %v4093_v3 = vsel %vm10150_vm12, %v4088_v25, %v4092_v8  ;;  %v4111_v4 = vor.u32 %v4110_v9, %v4106_v51  ;;  %8317 = vmatprep.mubr.bf16.mxu1 %v7580_v33  ;;  %v4121_v32 = vrot.slane %v4119_v17, 4  ;;  %v4132_v52 = vshrl.u32 %v10721_v45, 16  ;;  %8344 = vmatpush3.bf16.msra.mxu1 %v9185_v18  ;;  %v9189_v57 = vld [vmem:[#allocation11 + $0xb8] sm:$0xff]   ;;  %v10744_v25 = vld [vmem:[#allocation2 + $0x98] sm:$0x1] }
 0x290   : > { %v7668_v2 = vcombine.low %v4083_v22, %v4093_v3  ;;  %v4102_v42 = vrot.slane %v4101_v40, 4  ;;  %v4124_v34 = vrot.slane %v4122_v0, 5  ;;  %v4130_v31 = vrot.slane %v4128_v50, 5  ;;  %8492 = vmatpush3.bf16.msra.mxu0 %v9181_v12  ;;  %8345 = vmatprep.subr.bf16.mxu1 %v9188_v26  ;;  %v3866_v3 = vld [vmem:[#allocation2 + $0x9c] sm:$0xf] }
 0x291   : > { %v4112_v63 = vrot.slane %v4111_v4, 4  ;;  %v4134_v29 = vrot.slane %v4132_v52, 4  ;;  %v4138_v8 = vshll.u32 %v10730_v62, 16  ;;  %v7581_v33 = vcombine.low %v10496_v61, %v10506_v47  ;;  %8525 = vmatprep.subr.bf16.mxu0 %v10728_v28 }
 0x292   : > { %8461 = vmatprep.mubr.bf16.mxu0 %v7668_v2  ;;  %v4107_v18 = vsel %vm10150_vm12, %v4102_v42, %v4106_v51  ;;  %v4125_v22 = vor.u32 %v4124_v34, %v4121_v32  ;;  %v4143_v9 = vshrl.u32 %v3863_v11, 16  ;;  %v4146_v12 = vshll.u32 %v3863_v11, 16  ;;  %v10751_v42 = vld [vmem:[#allocation2 + $0xa0] sm:$0xf]  ;;  %v10757_v34 = vld [vmem:[#allocation2 + $0xa4] sm:$0x1] }
 0x293   : > { %v4117_v17 = vsel %vm10150_vm12, %v4112_v63, %v4116_v37  ;;  %v4135_v40 = vor.u32 %v4134_v29, %v4130_v31  ;;  %v4140_v0 = vrot.slane %v4138_v8, 5  ;;  %v4152_v50 = vshll.u32 %v10736_v24, 16  ;;  %8346 = vmatpush3.bf16.msra.mxu1 %v9188_v26 }
 0x294   : > { %v7669_v61 = vcombine.low %v4107_v18, %v4117_v17  ;;  %v4126_v47 = vrot.slane %v4125_v22, 4  ;;  %v4145_v4 = vrot.slane %v4143_v9, 4  ;;  %v4148_v52 = vrot.slane %v4146_v12, 5  ;;  %8347 = vmatprep.subr.bf16.mxu1 %v9189_v57  ;;  %v3869_v12 = vld [vmem:[#allocation2 + $0xa8] sm:$0xf] }
 0x295   : > { %v4136_v51 = vrot.slane %v4135_v40, 4  ;;  %v4154_v32 = vrot.slane %v4152_v50, 5  ;;  %v4156_v2 = vshrl.u32 %v10736_v24, 16  ;;  %v4162_v11 = vshll.u32 %v10744_v25, 16 }
 0x296   : > { %8462 = vmatmul.mubr.bf16.gmra.mrb[16].mxu0 %v7669_v61  ;;  %v4131_v29 = vsel %vm10150_vm12, %v4126_v47, %v4130_v31  ;;  %8318 = vmatmul.mubr.bf16.gmra.mrb[56].mxu1 %v7581_v33  ;;  %v4149_v37 = vor.u32 %v4148_v52, %v4145_v4  ;;  %v7582_v26 = vcombine.low %v10513_v16, %v10518_v14  ;;  %v4167_v63 = vshrl.u32 %v3866_v3, 16  ;;  %v10764_v47 = vld [vmem:[#allocation2 + $0xac] sm:$0xf]  ;;  %v10770_v4 = vld [vmem:[#allocation2 + $0xb0] sm:$0x1] }
 0x297   : > { %v4141_v8 = vsel %vm10150_vm12, %v4136_v51, %v4140_v0  ;;  %v4158_v18 = vrot.slane %v4156_v2, 4  ;;  %v4164_v22 = vrot.slane %v4162_v11, 5  ;;  %v4170_v9 = vshll.u32 %v3866_v3, 16  ;;  %8348 = vmatpush3.bf16.msra.mxu1 %v9189_v57 }
 0x298   : > { %v7670_v17 = vcombine.low %v4131_v29, %v4141_v8  ;;  %v4150_v40 = vrot.slane %v4149_v37, 4  ;;  %8321 = vmatprep.mubr.bf16.mxu1 %v7582_v26  ;;  %v4169_v31 = vrot.slane %v4167_v63, 4  ;;  %v4176_v33 = vshll.u32 %v10751_v42, 16 }
 0x299   : > { %v4159_v50 = vor.u32 %v4158_v18, %v4154_v32  ;;  %v4172_v61 = vrot.slane %v4170_v9, 5  ;;  %v4180_v16 = vshrl.u32 %v10751_v42, 16  ;;  %v4186_v14 = vshll.u32 %v10757_v34, 16 }
 0x29a   : > { %8465 = vmatprep.mubr.bf16.mxu0 %v7670_v17  ;;  %v4155_v0 = vsel %vm10150_vm12, %v4150_v40, %v4154_v32  ;;  %v4178_v3 = vrot.slane %v4176_v33, 5  ;;  %v7583_v57 = vcombine.low %v10524_v53, %v10531_v10  ;;  %v4191_v52 = vshrl.u32 %v3869_v12, 16  ;;  %v3872_v10 = vld [vmem:[#allocation2 + $0xb4] sm:$0xf]  ;;  %v10777_v17 = vld [vmem:[#allocation2 + $0xb8] sm:$0xf] }
 0x29b   : > { %v4160_v51 = vrot.slane %v4159_v50, 4  ;;  %v4173_v2 = vor.u32 %v4172_v61, %v4169_v31  ;;  %v4182_v11 = vrot.slane %v4180_v16, 4  ;;  %v4188_v29 = vrot.slane %v4186_v14, 5 }
 0x29c   : > { %v4193_v37 = vrot.slane %v4191_v52, 4  ;;  %v4194_v26 = vshll.u32 %v3869_v12, 16  ;;  %v4200_v63 = vshll.u32 %v10764_v47, 16  ;;  %v4204_v8 = vshrl.u32 %v10764_v47, 16  ;;  %v10779_v12 = vld [vmem:[#allocation2 + $0xbc] sm:$0x1] }
 0x29d   : > { %v4165_v32 = vsel %vm10150_vm12, %v4160_v51, %v4164_v22  ;;  %v4174_v18 = vrot.slane %v4173_v2, 4  ;;  %v4183_v9 = vor.u32 %v4182_v11, %v4178_v3  ;;  %v4210_v53 = vshll.u32 %v10770_v4, 16 }
 0x29e   : > { %v7671_v40 = vcombine.low %v4155_v0, %v4165_v32  ;;  %8322 = vmatmul.mubr.bf16.gmra.mrb[60].mxu1 %v7583_v57  ;;  %v4196_v31 = vrot.slane %v4194_v26, 5  ;;  %v4202_v33 = vrot.slane %v4200_v63, 5  ;;  %v4206_v50 = vrot.slane %v4204_v8, 4  ;;  %v3875_v63 = vld [vmem:[#allocation2 + $0xc0] sm:$0xf] }
 0x29f   : > { %v4179_v61 = vsel %vm10150_vm12, %v4174_v18, %v4178_v3  ;;  %v4184_v16 = vrot.slane %v4183_v9, 4  ;;  %v4212_v14 = vrot.slane %v4210_v53, 5  ;;  %v7584_v22 = vcombine.low %v10537_v5, %v10543_v20  ;;  %v10790_v20 = vld [vmem:[#allocation2 + $0xc4] sm:$0xf] }
 0x2a0   : > { %8466 = vmatmul.mubr.bf16.gmra.mrb[20].mxu0 %v7671_v40  ;;  %v4197_v52 = vor.u32 %v4196_v31, %v4193_v37  ;;  %v4207_v51 = vor.u32 %v4206_v50, %v4202_v33  ;;  %v4215_v2 = vshrl.u32 %v3872_v10, 16  ;;  %v4218_v11 = vshll.u32 %v3872_v10, 16  ;;  %v10792_v40 = vld [vmem:[#allocation2 + $0xc8] sm:$0x1] }
 0x2a1   : > { %v4189_v0 = vsel %vm10150_vm12, %v4184_v16, %v4188_v29  ;;  %8325 = vmatprep.mubr.bf16.mxu1 %v7584_v22  ;;  %v4224_v57 = vshll.u32 %v10777_v17, 16  ;;  %v4228_v26 = vshrl.u32 %v10777_v17, 16  ;;  %v4234_v3 = vshll.u32 %v10779_v12, 16 }
 0x2a2   : > { %v7672_v8 = vcombine.low %v4179_v61, %v4189_v0  ;;  %v4198_v32 = vrot.slane %v4197_v52, 4  ;;  %v4208_v18 = vrot.slane %v4207_v51, 4  ;;  %v4217_v5 = vrot.slane %v4215_v2, 4 }
 0x2a3   : > { %v4220_v37 = vrot.slane %v4218_v11, 5  ;;  %v4226_v9 = vrot.slane %v4224_v57, 5  ;;  %v4230_v53 = vrot.slane %v4228_v26, 4  ;;  %v4236_v10 = vrot.slane %v4234_v3, 5 }
 0x2a4   : > { %8469 = vmatprep.mubr.bf16.mxu0 %v7672_v8  ;;  %v4203_v29 = vsel %vm10150_vm12, %v4198_v32, %v4202_v33  ;;  %v4213_v31 = vsel %vm10150_vm12, %v4208_v18, %v4212_v14  ;;  %v7585_v50 = vcombine.low %v10551_v48, %v10555_v59  ;;  %v4239_v61 = vshrl.u32 %v3875_v63, 16 }
 0x2a5   : > { %v7673_v16 = vcombine.low %v4203_v29, %v4213_v31  ;;  %v4221_v22 = vor.u32 %v4220_v37, %v4217_v5  ;;  %v4231_v52 = vor.u32 %v4230_v53, %v4226_v9  ;;  %v4242_v51 = vshll.u32 %v3875_v63, 16  ;;  %v4584_v37 = vld [vmem:[#allocation2 + $0xc] sm:$0xe]  ;;  %v4585_v29 = vld [vmem:[#allocation2 + $0x18] sm:$0xe] }
 0x2a6   : > { %8326 = vmatmul.mubr.bf16.gmra.mrb[64].mxu1 %v7585_v50  ;;  %v4241_v2 = vrot.slane %v4239_v61, 4  ;;  %v4248_v11 = vshll.u32 %v10790_v20, 16  ;;  %v4252_v0 = vshrl.u32 %v10790_v20, 16  ;;  %v4258_v57 = vshll.u32 %v10792_v40, 16 }
 0x2a7   : > { %v4222_v33 = vrot.slane %v4221_v22, 4  ;;  %v4232_v26 = vrot.slane %v4231_v52, 4  ;;  %v4244_v3 = vrot.slane %v4242_v51, 5  ;;  %v7586_v14 = vcombine.low %v10564_v6, %v10566_v7  ;;  %v9271_v6 = vld [vmem:[#allocation2 + $0x14] sm:$0x1] }
 0x2a8   : > { %8470 = vmatmul.mubr.bf16.gmra.mrb[24].mxu0 %v7673_v16  ;;  %v4250_v48 = vrot.slane %v4248_v11, 5  ;;  %v4254_v59 = vrot.slane %v4252_v0, 4  ;;  %v4650_v53 = vrot.slane %v10576_v39, 5  ;;  %v3022_v7 = vrot.slane %v9271_v6, 5  ;;  %v4586_v52 = vld [vmem:[#allocation2 + $0x24] sm:$0xe] }
 0x2a9   : > { %v4227_v63 = vsel %vm10150_vm12, %v4222_v33, %v4226_v9  ;;  %v4237_v8 = vsel %vm10150_vm12, %v4232_v26, %v4236_v10  ;;  %v4245_v32 = vor.u32 %v4244_v3, %v4241_v2  ;;  %8329 = vmatprep.mubr.bf16.mxu1 %v7586_v14  ;;  %v4260_v50 = vrot.slane %v4258_v57, 5  ;;  %v2959_v0 = vld [vmem:[#allocation2] sm:$0xe] }
 0x2aa   : > { %v7674_v18 = vcombine.low %v4227_v63, %v4237_v8  ;;  %v4255_v5 = vor.u32 %v4254_v59, %v4250_v48  ;;  %v4653_v61 = vrot.slane %v10579_v54, 5  ;;  %v4652_v16 = vrot.slane %v4650_v53, 4 }
 0x2ab   : > { %v4246_v31 = vrot.slane %v4245_v32, 4  ;;  %v7587_v22 = vcombine.low %v10583_v36, %v10586_v1  ;;  %v4657_v39 = vrot.slane %v10598_v41, 5  ;;  %v7684_v2 = vrot.slane %v4584_v37, 9 }
 0x2ac   : > { %8473 = vmatprep.mubr.bf16.mxu0 %v7674_v18  ;;  %v4256_v9 = vrot.slane %v4255_v5, 4  ;;  %v7685_v11 = vrot.slane %v4585_v29, 9  ;;  %v4664_v54 = vrot.slane %v10606_v19, 5  ;;  %v4654_v33 = vsel %vm10812_vm15, %v4652_v16, %v4653_v61  ;;  %v9272_v18 = vld [vmem:[#allocation2 + $0x8] sm:$0x1] }
 0x2ad   : > { %v4251_v51 = vsel %vm10150_vm12, %v4246_v31, %v4250_v48  ;;  %v4659_v26 = vrot.slane %v4657_v39, 4  ;;  %v4660_v36 = vrot.slane %v10602_v43, 5  ;;  %v4651_v41 = vsel %vm10812_vm15, %v7684_v2, %v4650_v53  ;;  %v2960_v48 = vld [vmem:[#allocation2 + $0xc] sm:$0xe]  ;;  %v4587_v53 = vld [vmem:[#allocation2 + $0x30] sm:$0xe] }
 0x2ae   : > { %v4261_v57 = vsel %vm10150_vm12, %v4256_v9, %v4260_v50  ;;  %8330 = vmatmul.mubr.bf16.gmra.mrb[68].mxu1 %v7587_v22  ;;  %v7686_v3 = vrot.slane %v4586_v52, 9  ;;  %v4666_v14 = vrot.slane %v4664_v54, 4  ;;  %v7700_v59 = vcombine.low %v4651_v41, %v4654_v33  ;;  %v2961_v16 = vld [vmem:[#allocation2 + $0x18] sm:$0xe] }
 0x2af   : > { %v7675_v1 = vcombine.low %v4251_v51, %v4261_v57  ;;  %v4661_v19 = vsel %vm10812_vm15, %v4659_v26, %v4660_v36  ;;  %v7596_v63 = vrot.slane %v2959_v0, 9  ;;  %v3012_v8 = vrot.slane %v10622_v60, 5  ;;  %v4588_v0 = vld [vmem:[#allocation2 + $0x3c] sm:$0xe]  ;;  %v9273_v26 = vld [vmem:[#allocation2 + $0x20] sm:$0x1] }
 0x2b0   : > { %v4658_v32 = vsel %vm10812_vm15, %v7685_v11, %v4657_v39  ;;  %v4667_v43 = vrot.slane %v10615_v38, 5  ;;  %v3015_v5 = vrot.slane %v9272_v18, 5  ;;  %v3019_v37 = vrot.slane %v10631_v27, 5  ;;  %v4589_v18 = vld [vmem:[#allocation2 + $0x48] sm:$0xe] }
 0x2b1   : > { %8474 = vmatmul.mubr.bf16.gmra.mrb[28].mxu0 %v7675_v1  ;;  %v4665_v29 = vsel %vm10812_vm15, %v7686_v3, %v4664_v54  ;;  %v3013_v6 = vsel %vm10812_vm15, %v7596_v63, %v3012_v8  ;;  %v3014_v31 = vrot.slane %v3012_v8, 4  ;;  %v7597_v60 = vrot.slane %v2960_v48, 9  ;;  %v2962_v1 = vld [vmem:[#allocation2 + $0x24] sm:$0xe] }
 0x2b2   : > { %8493 = vmatprep.mubr.bf16.mxu0 %v7700_v59  ;;  %v7701_v50 = vcombine.low %v4658_v32, %v4661_v19  ;;  %v4668_v61 = vsel %vm10812_vm15, %v4666_v14, %v4667_v43  ;;  %v3021_v9 = vrot.slane %v3019_v37, 4  ;;  %v4671_v38 = vrot.slane %v10625_v15, 5  ;;  %v9190_v3 = vld [vmem:[#allocation11 + $0x188] sm:$0xff]  }
 0x2b3   : > { %v3016_v27 = vsel %vm10812_vm15, %v3014_v31, %v3015_v5  ;;  %v3020_v22 = vsel %vm10812_vm15, %v7597_v60, %v3019_v37  ;;  %v7687_v39 = vrot.slane %v4587_v53, 9  ;;  %v3026_v52 = vrot.slane %v10643_v46, 5  ;;  %v9274_v37 = vld [vmem:[#allocation2 + $0x2c] sm:$0x1]  ;;  %v12036_v60 = vld [vmem:[#allocation36_spill] sm:$0xff] }
 0x2b4   : > { %v7612_v51 = vcombine.low %v3013_v6, %v3016_v27  ;;  %v3023_v2 = vsel %vm10812_vm15, %v3021_v9, %v3022_v7  ;;  %v4673_v11 = vrot.slane %v4671_v38, 4  ;;  %v4674_v54 = vrot.slane %v10634_v21, 5  ;;  %v2963_v6 = vld [vmem:[#allocation2 + $0x30] sm:$0xe]  ;;  %v9191_v31 = vld [vmem:[#allocation11 + $0x190] sm:$0xff]  }
 0x2b5   : > { %v7613_v57 = vcombine.low %v3020_v22, %v3023_v2  ;;  %v7598_v15 = vrot.slane %v2961_v16, 9  ;;  %v3028_v33 = vrot.slane %v3026_v52, 4  ;;  %v3029_v36 = vrot.slane %v9273_v26, 5  ;;  %v4590_v27 = vld [vmem:[#allocation2 + $0x54] sm:$0xe] }
 0x2b6   : > { %v7702_v41 = vcombine.low %v4665_v29, %v4668_v61  ;;  %8349 = vmatprep.mubr.bf16.mxu1 %v7612_v51  ;;  %v4672_v46 = vsel %vm10812_vm15, %v7687_v39, %v4671_v38  ;;  %v4675_v14 = vsel %vm10812_vm15, %v4673_v11, %v4674_v54  ;;  %v4678_v7 = vrot.slane %v10638_v44, 5  ;;  %v12037_v38 = vld [vmem:[#allocation34_spill] sm:$0xff]  ;;  %v9275_v51 = vld [vmem:[#allocation2 + $0x38] sm:$0x1]  ;;  %v2964_v11 = vld [vmem:[#allocation2 + $0x3c] sm:$0xe] }
 0x2b7   : > { %8350 = vmatmul.mubr.bf16.vlgmr.msra.gmra.mrb[40].mxu1 %v7613_v57  ;;  %v3027_v21 = vsel %vm10812_vm15, %v7598_v15, %v3026_v52  ;;  %v3030_v48 = vsel %vm10812_vm15, %v3028_v33, %v3029_v36  ;;  %v7688_v59 = vrot.slane %v4588_v0, 9  ;;  %v3033_v19 = vrot.slane %v10655_v35, 5  ;;  %v12038_v15 = vld [vmem:[#allocation35_spill] sm:$0xff] }
 0x2b8   : > { %v7614_v63 = vcombine.low %v3027_v21, %v3030_v48  ;;  %v4680_v8 = vrot.slane %v4678_v7, 4  ;;  %v4681_v32 = vrot.slane %v10646_v56, 5  ;;  %v7599_v43 = vrot.slane %v2962_v1, 9  ;;  %v12040_v21 = vld [vmem:[#allocation37_spill] sm:$0xff] }
 0x2b9   : > { %8494 = vmatmul.mubr.bf16.vlgmr.msra.gmra.mrb[0].mxu0 %v7701_v50  ;;  %v7703_v44 = vcombine.low %v4672_v46, %v4675_v14  ;;  %v3035_v5 = vrot.slane %v3033_v19, 4  ;;  %v3036_v53 = vrot.slane %v9274_v37, 5  ;;  %v4685_v29 = vrot.slane %v10651_v23, 5  ;;  %v2965_v37 = vld [vmem:[#allocation2 + $0x48] sm:$0xe] }
 0x2ba   : > { %8526 = vmatpush3.bf16.msra.mxu0 %v10728_v28  ;;  %8497 = vmatprep.mubr.bf16.mxu0 %v7702_v41  ;;  %v4679_v35 = vsel %vm10812_vm15, %v7688_v59, %v4678_v7  ;;  %v4682_v56 = vsel %vm10812_vm15, %v4680_v8, %v4681_v32  ;;  %v3034_v28 = vsel %vm10812_vm15, %v7599_v43, %v3033_v19  ;;  %v3040_v50 = vrot.slane %v12036_v60, 5  ;;  %v9192_v41 = vld [vmem:[#allocation11 + $0x198] sm:$0xff]   ;;  %v4591_v19 = vld [vmem:[#allocation2 + $0x60] sm:$0xe]  ;;  %v9276_v32 = vld [vmem:[#allocation2 + $0x44] sm:$0x1] }
 0x2bb   : > { %8527 = vmatprep.subr.bf16.mxu0 %v9190_v3  ;;  %8353 = vmatprep.mubr.bf16.mxu1 %v7614_v63  ;;  %v3037_v61 = vsel %vm10812_vm15, %v3035_v5, %v3036_v53  ;;  %v7689_v9 = vrot.slane %v4589_v18, 9  ;;  %v4687_v23 = vrot.slane %v4685_v29, 4  ;;  %v4688_v16 = vrot.slane %v12037_v38, 5  ;;  %v12041_v18 = vld [vmem:[#allocation38_spill] sm:$0xff]  ;;  %v9193_v60 = vld [vmem:[#allocation11 + $0x1a0] sm:$0xff]  }
 0x2bc   : > { %v7704_v22 = vcombine.low %v4679_v35, %v4682_v56  ;;  %v7600_v39 = vrot.slane %v2963_v6, 9  ;;  %v3042_v52 = vrot.slane %v3040_v50, 4  ;;  %v3043_v2 = vrot.slane %v9275_v51, 5 }
 0x2bd   : > { %v7615_v54 = vcombine.low %v3034_v28, %v3037_v61  ;;  %v10876_v0 = vsel %vm10812_vm15, %v7689_v9, %v4685_v29  ;;  %v10880_v57 = vsel %vm10812_vm15, %v4687_v23, %v4688_v16  ;;  %v4692_v33 = vrot.slane %v12038_v15, 5  ;;  %v9277_v23 = vld [vmem:[#allocation2 + $0x50] sm:$0x1]  ;;  %v4592_v16 = vld [vmem:[#allocation2 + $0x6c] sm:$0xe] }
 0x2be   : > { %8528 = vmatpush3.bf16.msra.mxu0 %v9190_v3  ;;  %v3041_v26 = vsel %vm10812_vm15, %v7600_v39, %v3040_v50  ;;  %v3044_v36 = vsel %vm10812_vm15, %v3042_v52, %v3043_v2  ;;  %v7690_v1 = vrot.slane %v4590_v27, 9  ;;  %v12039_v3 = vld [vmem:[#allocation39_spill] sm:$0xff]  ;;  %v7705_v14 = vcombine.low %v10876_v0, %v10880_v57  ;;  %v2966_v52 = vld [vmem:[#allocation2 + $0x54] sm:$0xe]  ;;  %v4593_v0 = vld [vmem:[#allocation2 + $0x78] sm:$0xe] }
 0x2bf   : > { %8529 = vmatprep.subr.bf16.mxu0 %v9191_v31  ;;  %v3047_v46 = vrot.slane %v12039_v3, 5  ;;  %8354 = vmatmul.mubr.bf16.gmra.mrb[44].mxu1 %v7615_v54  ;;  %v4694_v7 = vrot.slane %v4692_v33, 4  ;;  %v4695_v48 = vrot.slane %v12040_v21, 5  ;;  %v7601_v59 = vrot.slane %v2964_v11, 9  ;;  %v9278_v11 = vld [vmem:[#allocation2 + $0x58] sm:$0xf] }
 0x2c0   : > { %v7616_v63 = vcombine.low %v3041_v26, %v3044_v36  ;;  %v3050_v43 = vrot.slane %v9276_v32, 5  ;;  %v4699_v5 = vrot.slane %v12041_v18, 5  ;;  %v4693_v53 = vsel %vm10812_vm15, %v7690_v1, %v4692_v33  ;;  %v12042_v26 = vld [vmem:[#allocation40_spill] sm:$0xff] }
 0x2c1   : > { %8498 = vmatmul.mubr.bf16.gmra.mrb[4].mxu0 %v7703_v44  ;;  %v3049_v8 = vrot.slane %v3047_v46, 4  ;;  %v4696_v29 = vsel %vm10812_vm15, %v4694_v7, %v4695_v48  ;;  %v3048_v6 = vsel %vm10812_vm15, %v7601_v59, %v3047_v46  ;;  %v3054_v44 = vrot.slane %v10700_v49, 5 }
 0x2c2   : > { %8501 = vmatprep.mubr.bf16.mxu0 %v7704_v22  ;;  %8530 = vmatpush3.bf16.msra.mxu0 %v9191_v31  ;;  %v7691_v56 = vrot.slane %v4591_v19, 9  ;;  %v4701_v28 = vrot.slane %v4699_v5, 4  ;;  %v4702_v31 = vrot.slane %v10689_v55, 5  ;;  %v7706_v50 = vcombine.low %v4693_v53, %v4696_v29  ;;  %v2967_v19 = vld [vmem:[#allocation2 + $0x60] sm:$0xe] }
 0x2c3   : > { %8357 = vmatprep.mubr.bf16.mxu1 %v7616_v63  ;;  %8531 = vmatprep.subr.bf16.mxu0 %v9192_v41  ;;  %v3051_v35 = vsel %vm10812_vm15, %v3049_v8, %v3050_v43  ;;  %v7602_v61 = vrot.slane %v2965_v37, 9  ;;  %v3056_v9 = vrot.slane %v3054_v44, 4  ;;  %v3057_v38 = vrot.slane %v9277_v23, 5  ;;  %v9280_v63 = vld [vmem:[#allocation2 + $0x64] sm:$0xf] }
 0x2c4   : > { %v7617_v27 = vcombine.low %v3048_v6, %v3051_v35  ;;  %v10904_v49 = vsel %vm10812_vm15, %v7691_v56, %v4699_v5  ;;  %v10908_v22 = vsel %vm10812_vm15, %v4701_v28, %v4702_v31  ;;  %v4706_v39 = vrot.slane %v10695_v30, 5  ;;  %v9194_v30 = vld [vmem:[#allocation11 + $0x1a8] sm:$0xff]   ;;  %v12043_v5 = vld [vmem:[#allocation41_spill] sm:$0xff]  ;;  %v9281_v53 = vld [vmem:[#allocation2 + $0x68] sm:$0x1] }
 0x2c5   : > { %v7707_v55 = vcombine.low %v10904_v49, %v10908_v22  ;;  %v3055_v51 = vsel %vm10812_vm15, %v7602_v61, %v3054_v44  ;;  %v3058_v2 = vsel %vm10812_vm15, %v3056_v9, %v3057_v38  ;;  %v3061_v54 = vrot.slane %v9278_v11, 5  ;;  %v4594_v6 = vld [vmem:[#allocation2 + $0x84] sm:$0xe]  ;;  %v9195_v44 = vld [vmem:[#allocation11 + $0x1b0] sm:$0xff]   ;;  %v9282_v23 = vld [vmem:[#allocation2 + $0x70] sm:$0xf] }
 0x2c6   : > { %8532 = vmatpush3.bf16.msra.mxu0 %v9192_v41  ;;  %v7618_v57 = vcombine.low %v3055_v51, %v3058_v2  ;;  %v7692_v15 = vrot.slane %v4592_v16, 9  ;;  %v4708_v33 = vrot.slane %v4706_v39, 4  ;;  %v4709_v36 = vrot.slane %v12042_v26, 5  ;;  %v9279_v41 = vld [vmem:[#allocation2 + $0x5c] sm:$0x1] }
 0x2c7   : > { %8533 = vmatprep.subr.bf16.mxu0 %v9193_v60  ;;  %8358 = vmatmul.mubr.bf16.gmra.mrb[48].mxu1 %v7617_v27  ;;  %v7603_v1 = vrot.slane %v2966_v52, 9  ;;  %v3063_v3 = vrot.slane %v3061_v54, 4  ;;  %v3064_v46 = vrot.slane %v9279_v41, 5  ;;  %v4713_v7 = vrot.slane %v10709_v13, 5  ;;  %v2968_v9 = vld [vmem:[#allocation2 + $0x6c] sm:$0xe] }
 0x2c8   : > { %8361 = vmatprep.mubr.bf16.mxu1 %v7618_v57  ;;  %v4707_v21 = vsel %vm10812_vm15, %v7692_v15, %v4706_v39  ;;  %v4710_v48 = vsel %vm10812_vm15, %v4708_v33, %v4709_v36  ;;  %v7693_v59 = vrot.slane %v4593_v0, 9  ;;  %v3068_v8 = vrot.slane %v9280_v63, 5  ;;  %v4595_v51 = vld [vmem:[#allocation2 + $0x90] sm:$0xe]  ;;  %v9283_v33 = vld [vmem:[#allocation2 + $0x74] sm:$0x1] }
 0x2c9   : > { %8502 = vmatmul.mubr.bf16.gmra.mrb[8].mxu0 %v7705_v14  ;;  %v7708_v32 = vcombine.low %v4707_v21, %v4710_v48  ;;  %v3065_v43 = vsel %vm10812_vm15, %v3063_v3, %v3064_v46  ;;  %v4715_v18 = vrot.slane %v4713_v7, 4  ;;  %v4716_v13 = vrot.slane %v12043_v5, 5  ;;  %v9196_v0 = vld [vmem:[#allocation11 + $0x1b8] sm:$0xff]   ;;  %v9285_v21 = vld [vmem:[#allocation2 + $0x80] sm:$0x1] }
 0x2ca   : > { %8505 = vmatprep.mubr.bf16.mxu0 %v7706_v50  ;;  %8534 = vmatpush3.bf16.msra.mxu0 %v9193_v60  ;;  %v3062_v14 = vsel %vm10812_vm15, %v7603_v1, %v3061_v54  ;;  %v3070_v37 = vrot.slane %v3068_v8, 4  ;;  %v3071_v29 = vrot.slane %v9281_v53, 5  ;;  %v10930_v35 = vsel %vm10812_vm15, %v7693_v59, %v4713_v7  ;;  %v2969_v54 = vld [vmem:[#allocation2 + $0x78] sm:$0xe]  ;;  %v4596_v59 = vld [vmem:[#allocation2 + $0x9c] sm:$0xe] }
 0x2cb   : > { %8535 = vmatprep.subr.bf16.mxu0 %v9194_v30  ;;  %v10934_v56 = vsel %vm10812_vm15, %v4715_v18, %v4716_v13  ;;  %v7604_v28 = vrot.slane %v2967_v19, 9  ;;  %v4720_v31 = vrot.slane %v10721_v45, 5  ;;  %v7619_v60 = vcombine.low %v3062_v14, %v3065_v43  ;;  %v9286_v43 = vld [vmem:[#allocation2 + $0x88] sm:$0xf] }
 0x2cc   : > { %v7709_v50 = vcombine.low %v10930_v35, %v10934_v56  ;;  %v3072_v61 = vsel %vm10812_vm15, %v3070_v37, %v3071_v29  ;;  %v3075_v38 = vrot.slane %v9282_v23, 5  ;;  %v7694_v27 = vrot.slane %v4594_v6, 9  ;;  %v4597_v37 = vld [vmem:[#allocation2 + $0xa8] sm:$0xe]  ;;  %v2970_v6 = vld [vmem:[#allocation2 + $0x84] sm:$0xe] }
 0x2cd   : > { %v3069_v16 = vsel %vm10812_vm15, %v7604_v28, %v3068_v8  ;;  %v4722_v39 = vrot.slane %v4720_v31, 4  ;;  %v4723_v52 = vrot.slane %v10730_v62, 5  ;;  %v4727_v11 = vrot.slane %v10736_v24, 5  ;;  %v9284_v62 = vld [vmem:[#allocation2 + $0x7c] sm:$0xf] }
 0x2ce   : > { %8536 = vmatpush3.bf16.msra.mxu0 %v9194_v30  ;;  %v7620_v45 = vcombine.low %v3069_v16, %v3072_v61  ;;  %v3077_v2 = vrot.slane %v3075_v38, 4  ;;  %v10947_v57 = vsel %vm10812_vm15, %v7694_v27, %v4720_v31  ;;  %v3078_v26 = vrot.slane %v9283_v33, 5  ;;  %v2971_v31 = vld [vmem:[#allocation2 + $0x90] sm:$0xe]  ;;  %v9290_v33 = vld [vmem:[#allocation2 + $0xa0] sm:$0xf] }
 0x2cf   : > { %8537 = vmatprep.subr.bf16.mxu0 %v9195_v44  ;;  %8362 = vmatmul.mubr.bf16.gmra.mrb[52].mxu1 %v7619_v60  ;;  %v4724_v15 = vsel %vm10812_vm15, %v4722_v39, %v4723_v52  ;;  %v3082_v36 = vrot.slane %v9284_v62, 5  ;;  %v7695_v30 = vrot.slane %v4595_v51, 9  ;;  %v4729_v1 = vrot.slane %v4727_v11, 4 }
 0x2d0   : > { %8365 = vmatprep.mubr.bf16.mxu1 %v7620_v45  ;;  %v7710_v24 = vcombine.low %v10947_v57, %v4724_v15  ;;  %v4730_v3 = vrot.slane %v10744_v25, 5  ;;  %v7605_v41 = vrot.slane %v2968_v9, 9  ;;  %v7606_v46 = vrot.slane %v2969_v54, 9  ;;  %v9287_v9 = vld [vmem:[#allocation2 + $0x8c] sm:$0x1] }
 0x2d1   : > { %8506 = vmatmul.mubr.bf16.gmra.mrb[12].mxu0 %v7707_v55  ;;  %v3084_v7 = vrot.slane %v3082_v36, 4  ;;  %v3085_v48 = vrot.slane %v9285_v21, 5  ;;  %v3079_v19 = vsel %vm10812_vm15, %v3077_v2, %v3078_v26  ;;  %v10960_v49 = vsel %vm10812_vm15, %v7695_v30, %v4727_v11  ;;  %v10967_v55 = vld [vmem:[#allocation11 + $0x1c0] sm:$0xff]   ;;  %v4598_v54 = vld [vmem:[#allocation2 + $0xb4] sm:$0xe] }
 0x2d2   : > { %8509 = vmatprep.mubr.bf16.mxu0 %v7708_v32  ;;  %8538 = vmatpush3.bf16.msra.mxu0 %v9195_v44  ;;  %v10964_v22 = vsel %vm10812_vm15, %v4729_v1, %v4730_v3  ;;  %v4734_v25 = vrot.slane %v10751_v42, 5  ;;  %v3076_v63 = vsel %vm10812_vm15, %v7605_v41, %v3075_v38  ;;  %v3089_v18 = vrot.slane %v9286_v43, 5  ;;  %v9288_v38 = vld [vmem:[#allocation2 + $0x94] sm:$0xf]  ;;  %v9289_v2 = vld [vmem:[#allocation2 + $0x98] sm:$0x1] }
 0x2d3   : > { %8539 = vmatprep.subr.bf16.mxu0 %v9196_v0  ;;  %v7711_v8 = vcombine.low %v10960_v49, %v10964_v22  ;;  %v3086_v32 = vsel %vm10812_vm15, %v3084_v7, %v3085_v48  ;;  %v3083_v5 = vsel %vm10812_vm15, %v7606_v46, %v3082_v36  ;;  %v7696_v13 = vrot.slane %v4596_v59, 9  ;;  %v4599_v1 = vld [vmem:[#allocation2 + $0xc0] sm:$0xe]  ;;  %v9291_v48 = vld [vmem:[#allocation2 + $0xac] sm:$0xf] }
 0x2d4   : > { %v4736_v14 = vrot.slane %v4734_v25, 4  ;;  %v4737_v42 = vrot.slane %v10757_v34, 5  ;;  %v7621_v53 = vcombine.low %v3076_v63, %v3079_v19  ;;  %v7622_v29 = vcombine.low %v3083_v5, %v3086_v32  ;;  %v2972_v43 = vld [vmem:[#allocation2 + $0x9c] sm:$0xe]  ;;  %v9294_v22 = vld [vmem:[#allocation2 + $0xb8] sm:$0xf] }
 0x2d5   : > { %v3091_v44 = vrot.slane %v3089_v18, 4  ;;  %v4741_v28 = vrot.slane %v10764_v47, 5  ;;  %v4735_v60 = vsel %vm10812_vm15, %v7696_v13, %v4734_v25  ;;  %v3092_v23 = vrot.slane %v9287_v9, 5 }
 0x2d6   : > { %8540 = vmatpush3.bf16.msra.mxu0 %v9196_v0  ;;  %v4738_v61 = vsel %vm10812_vm15, %v4736_v14, %v4737_v42  ;;  %v3096_v16 = vrot.slane %v9288_v38, 5  ;;  %v7697_v27 = vrot.slane %v4597_v37, 9  ;;  %v4744_v47 = vrot.slane %v10770_v4, 5  ;;  %v2973_v42 = vld [vmem:[#allocation2 + $0xa8] sm:$0xe] }
 0x2d7   : > { %8573 = vmatprep.subr.bf16.mxu0 %v10967_v55  ;;  %8366 = vmatmul.mubr.bf16.gmra.mrb[56].mxu1 %v7621_v53  ;;  %v7712_v34 = vcombine.low %v4735_v60, %v4738_v61  ;;  %v4743_v39 = vrot.slane %v4741_v28, 4  ;;  %v7607_v52 = vrot.slane %v2970_v6, 9  ;;  %v7608_v51 = vrot.slane %v2971_v31, 9  ;;  %v9293_v37 = vld [vmem:[#allocation2 + $0xb0] sm:$0x1] }
 0x2d8   : > { %8369 = vmatprep.mubr.bf16.mxu1 %v7622_v29  ;;  %v3098_v45 = vrot.slane %v3096_v16, 4  ;;  %v3099_v11 = vrot.slane %v9289_v2, 5  ;;  %v3093_v0 = vsel %vm10812_vm15, %v3091_v44, %v3092_v23  ;;  %v4742_v57 = vsel %vm10812_vm15, %v7697_v27, %v4741_v28 }
 0x2d9   : > { %8510 = vmatmul.mubr.bf16.gmra.mrb[16].mxu0 %v7709_v50  ;;  %v4745_v4 = vsel %vm10812_vm15, %v4743_v39, %v4744_v47  ;;  %v4748_v35 = vrot.slane %v10777_v17, 5  ;;  %v3090_v56 = vsel %vm10812_vm15, %v7607_v52, %v3089_v18  ;;  %v3103_v26 = vrot.slane %v9290_v33, 5  ;;  %v9202_v33 = vld [vmem:[#allocation2 + $0x3c] sm:$0xff]  }
 0x2da   : > { %8513 = vmatprep.mubr.bf16.mxu0 %v7710_v24  ;;  %v7713_v50 = vcombine.low %v4742_v57, %v4745_v4  ;;  %v3100_v15 = vsel %vm10812_vm15, %v3098_v45, %v3099_v11  ;;  %v3097_v62 = vsel %vm10812_vm15, %v7608_v51, %v3096_v16  ;;  %v7698_v36 = vrot.slane %v4598_v54, 9  ;;  %v2974_v16 = vld [vmem:[#allocation2 + $0xb4] sm:$0xe]  ;;  %v9199_v57 = vld [vmem:[#allocation2 + $0x24] sm:$0xff]   ;;  %v11050_v45 = vld [vmem:[#allocation2 + $0x40] sm:$0xf] }
 0x2db   : > { %v4750_v24 = vrot.slane %v4748_v35, 4  ;;  %v4751_v30 = vrot.slane %v10779_v12, 5  ;;  %v7623_v3 = vcombine.low %v3090_v56, %v3093_v0  ;;  %v7624_v41 = vcombine.low %v3097_v62, %v3100_v15  ;;  %v1254_v12 = vld [vmem:[#allocation2 + $0xcc] sm:$0x1]  ;;  %v12045_v51 = vld [vmem:[#allocation32_spill] sm:$0xff]  ;;  %v9197_v0 = vld [vmem:[#allocation2 + $0x18] sm:$0xff]  }
 0x2dc   : > { %v4755_v17 = vrot.slane %v10790_v20, 5  ;;  %v4749_v46 = vsel %vm10812_vm15, %v7698_v36, %v4748_v35  ;;  %v3105_v21 = vrot.slane %v3103_v26, 4  ;;  %v3110_v59 = vrot.slane %v9291_v48, 5  ;;  %v9292_v20 = vld [vmem:[#allocation2 + $0xa4] sm:$0x1]  ;;  %v9200_v35 = vld [vmem:[#allocation2 + $0x30] sm:$0xff]  }
 0x2dd   : > { %v4752_v7 = vsel %vm10812_vm15, %v4750_v24, %v4751_v30  ;;  %v7699_v25 = vrot.slane %v4599_v1, 9  ;;  %v4758_v32 = vrot.slane %v10792_v40, 5  ;;  %v3106_v5 = vrot.slane %v9292_v20, 5  ;;  %v9201_v4 = vld [vmem:[#allocation11 + $0x1c8] sm:$0xff]   ;;  %v9204_v56 = vld [vmem:[#allocation11 + $0x1d0] sm:$0xff]   ;;  %v9205_v20 = vld [vmem:[#allocation2 + $0x54] sm:$0xff]  }
 0x2de   : > { %v7714_v19 = vcombine.low %v4749_v46, %v4752_v7  ;;  %v4757_v63 = vrot.slane %v4755_v17, 4  ;;  %v3112_v18 = vrot.slane %v3110_v59, 4  ;;  %v3113_v53 = vrot.slane %v9293_v37, 5  ;;  %v5469_v15 = vld [vmem:[#allocation2 + $0x18] sm:$0xf]  ;;  %v9203_v30 = vld [vmem:[#allocation2 + $0x48] sm:$0xff]  }
 0x2df   : > { %8370 = vmatmul.mubr.bf16.gmra.mrb[60].mxu1 %v7623_v3  ;;  %v4756_v13 = vsel %vm10812_vm15, %v7699_v25, %v4755_v17  ;;  %v1255_v6 = vsel %vm10073_vm3, 0, %v1254_v12  ;;  %v7609_v44 = vrot.slane %v2972_v43, 9  ;;  %v3107_v49 = vsel %vm10812_vm15, %v3105_v21, %v3106_v5  ;;  %v5472_v24 = vld [vmem:[#allocation2 + $0x24] sm:$0xf]  ;;  %v9210_v46 = vld [vmem:[#allocation11 + $0x1e0] sm:$0xff]  }
 0x2e0   : > { %8373 = vmatprep.mubr.bf16.mxu1 %v7624_v41  ;;  %v4759_v14 = vsel %vm10812_vm15, %v4757_v63, %v4758_v32  ;;  %1256 = vst [vmem:[#allocation2 + $0xcc] sm:$0x1] %v1255_v6  ;;  %v7610_v28 = vrot.slane %v2973_v42, 9  ;;  %v3114_v31 = vsel %vm10812_vm15, %v3112_v18, %v3113_v53  ;;  %v7611_v47 = vrot.slane %v2974_v16, 9  ;;  %v5473_v41 = vld [vmem:[#allocation2 + $0x28] sm:$0xf] }
 0x2e1   : > { %8514 = vmatmul.mubr.bf16.gmra.mrb[20].mxu0 %v7711_v8  ;;  %v7715_v40 = vcombine.low %v4756_v13, %v4759_v14  ;;  %v3117_v8 = vrot.slane %v9294_v22, 5  ;;  %v3104_v60 = vsel %vm10812_vm15, %v7609_v44, %v3103_v26  ;;  %v9207_v26 = vld [vmem:[#allocation11 + $0x1d8] sm:$0xff]   ;;  %v5518_v1 = vshrl.u32 %v5469_v15, 16  ;;  %v5471_v32 = vld [vmem:[#allocation2 + $0x20] sm:$0x1] }
 0x2e2   : > { %8517 = vmatprep.mubr.bf16.mxu0 %v7712_v34  ;;  %v7625_v61 = vcombine.low %v3104_v60, %v3107_v49  ;;  %v3111_v9 = vsel %vm10812_vm15, %v7610_v28, %v3110_v59  ;;  %v9295_v34 = vld [vmem:[#allocation2 + $0xbc] sm:$0x1]  ;;  %v5521_v3 = vshll.u32 %v5469_v15, 16  ;;  %v5545_v17 = vshll.u32 %v5472_v24, 16  ;;  %v5475_v63 = vld [vmem:[#allocation2 + $0x30] sm:$0xf] }
 0x2e3   : > { %v7626_v23 = vcombine.low %v3111_v9, %v3114_v31  ;;  %v3119_v38 = vrot.slane %v3117_v8, 4  ;;  %v3120_v27 = vrot.slane %v9295_v34, 5  ;;  %v3118_v11 = vsel %vm10812_vm15, %v7611_v47, %v3117_v8  ;;  %v11035_v18 = vld [vmem:[#allocation2 + $0x34] sm:$0xf]  ;;  %v9213_v5 = vld [vmem:[#allocation11 + $0x1e8] sm:$0xff]   ;;  %v9216_v28 = vld [vmem:[#allocation11 + $0x1f0] sm:$0xff]  }
 0x2e4   : > { %v5520_v48 = vrot.slane %v5518_v1, 4  ;;  %v5523_v59 = vrot.slane %v5521_v3, 5  ;;  %v5555_v25 = vshrl.u32 %v5473_v41, 16  ;;  %v5547_v43 = vrot.slane %v5545_v17, 5  ;;  %v11042_v60 = vld [vmem:[#allocation2 + $0x2c] sm:$0x1] }
 0x2e5   : > { %v3121_v52 = vsel %vm10812_vm15, %v3119_v38, %v3120_v27  ;;  %v5566_v14 = vshrl.u32 %v5475_v63, 16  ;;  %v5569_v42 = vshll.u32 %v5475_v63, 16  ;;  %v5537_v44 = vshll.u32 %v5471_v32, 16  ;;  %v11045_v16 = vld [vmem:[#allocation2 + $0x38] sm:$0x1] }
 0x2e6   : > { %v7627_v54 = vcombine.low %v3118_v11, %v3121_v52  ;;  %v5524_v37 = vor.u32 %v5523_v59, %v5520_v48  ;;  %v5557_v6 = vrot.slane %v5555_v25, 4  ;;  %v5575_v49 = vshll.u32 %v11035_v18, 16  ;;  %v5478_v47 = vld [vmem:[#allocation2 + $0x3c] sm:$0xf]  ;;  %v9219_v11 = vld [vmem:[#allocation11 + $0x1f8] sm:$0xff]  }
 0x2e7   : > { %8374 = vmatmul.mubr.bf16.gmra.mrb[64].mxu1 %v7625_v61  ;;  %v1377_v39 = vld [vmem:[#allocation2 + $0xcc] sm:$0xf]  ;;  %v5579_v22 = vshrl.u32 %v11035_v18, 16  ;;  %v5568_v61 = vrot.slane %v5566_v14, 4  ;;  %v5571_v9 = vrot.slane %v5569_v42, 5  ;;  %v5539_v34 = vrot.slane %v5537_v44, 5 }
 0x2e8   : > { %8377 = vmatprep.mubr.bf16.mxu1 %v7626_v23  ;;  %v1378_v2 = vsel %vm10118_vm9, %v12045_v51, %v1377_v39  ;;  %v5525_v23 = vrot.slane %v5524_v37, 4  ;;  %v11047_v27 = vrot.slane %v5575_v49, 5  ;;  %v5561_v51 = vshll.u32 %v11042_v60, 16  ;;  %v11058_v15 = vld [vmem:[#allocation2 + $0x4c] sm:$0xf]  ;;  %v11070_v17 = vld [vmem:[#allocation11 + $0x200] sm:$0xff]  }
 0x2e9   : > { %8518 = vmatmul.mubr.bf16.gmra.mrb[24].mxu0 %v7713_v50  ;;  %1379 = vst [vmem:[#allocation2 + $0xcc] sm:$0xf] %v1378_v2  ;;  %v5470_v50 = vld [vmem:[#allocation2 + $0x1c] sm:$0xf]  ;;  %v5581_v39 = vrot.slane %v5579_v22, 4  ;;  %v9208_v2 = vld [vmem:[#allocation2 + $0x6c] sm:$0xff]  }
 0x2ea   : > { %8521 = vmatprep.mubr.bf16.mxu0 %v7714_v19  ;;  %v5527_v62 = vshll.u32 %v5470_v50, 16  ;;  %v5531_v36 = vshrl.u32 %v5470_v50, 16  ;;  %v5551_v19 = vshll.u32 %v5473_v41, 16  ;;  %v5590_v50 = vshrl.u32 %v5478_v47, 16  ;;  %v5481_v41 = vld [vmem:[#allocation2 + $0x48] sm:$0xf] }
 0x2eb   : > { %v5563_v3 = vrot.slane %v5561_v51, 5  ;;  %v5627_v48 = vshrl.u32 %v11058_v15, 16  ;;  %v5487_v32 = vld [vmem:[#allocation2 + $0x60] sm:$0xf]  ;;  %v5614_v14 = vshrl.u32 %v5481_v41, 16  ;;  %v5617_v42 = vshll.u32 %v5481_v41, 16 }
 0x2ec   : > { %v11033_v7 = vrot.slane %v5527_v62, 5  ;;  %v5533_v21 = vrot.slane %v5531_v36, 4  ;;  %v11038_v53 = vrot.slane %v5551_v19, 5  ;;  %v5599_v62 = vshll.u32 %v11050_v45, 16  ;;  %v5490_v51 = vld [vmem:[#allocation2 + $0x6c] sm:$0xf] }
 0x2ed   : > { %v5603_v36 = vshrl.u32 %v11050_v45, 16  ;;  %v5592_v19 = vrot.slane %v5590_v50, 4  ;;  %v5629_v49 = vrot.slane %v5627_v48, 4  ;;  %v5662_v22 = vshrl.u32 %v5487_v32, 16 }
 0x2ee   : > { %v5534_v13 = vor.u32 %v5533_v21, %v11033_v7  ;;  %v5558_v38 = vor.u32 %v5557_v6, %v11038_v53  ;;  %v5623_v21 = vshll.u32 %v11058_v15, 16  ;;  %v9211_v6 = vld [vmem:[#allocation2 + $0x84] sm:$0xff]   ;;  %v6299_v58 = vrot.slane %v11042_v60, 5 }
 0x2ef   : > { %8378 = vmatmul.mubr.bf16.gmra.mrb[68].mxu1 %v7627_v54 }
 0x2f0   : > { %v5535_v31 = vrot.slane %v5534_v13, 4  ;;  %v5605_v13 = vrot.slane %v5603_v36, 4  ;;  %v11089_v44 = vrot.slane %v5623_v21, 5  ;;  %v5689_v36 = vshll.u32 %v5490_v51, 16 }
 0x2f1   : > { %8522 = vmatmul.mubr.bf16.gmra.mrb[28].mxu0 %v7715_v40  ;;  %v9206_v40 = vld [vmem:[#allocation2 + $0x60] sm:$0xff]  }
 0x2f2   : > { %8541 = vmatprep.mubr.bf16.mxu0 %v9197_v0  ;;  %v5540_v54 = vsel %vm10150_vm12, %v5535_v31, %v5539_v34  ;;  %v5572_v0 = vor.u32 %v5571_v9, %v5568_v61 }
 0x2f9   : > { %8542 = vmatmul.mubr.bf16.vlgmr.msra.gmra.mrb[0].mxu0 %v9199_v57  ;;  %v5585_v57 = vshll.u32 %v11045_v16, 16 }
 0x2fa   : > { %8574 = vmatpush3.bf16.msra.mxu0 %v10967_v55  ;;  %8545 = vmatprep.mubr.bf16.mxu0 %v9200_v35  ;;  %v5542_v55 = vshrl.u32 %v5472_v24, 16  ;;  %v5530_v35 = vsel %vm10150_vm12, %v5525_v23, %v11033_v7  ;;  %v11063_v24 = vld [vmem:[#allocation2 + $0x58] sm:$0xf] }
 0x2fb   : > { %8575 = vmatprep.subr.bf16.mxu0 %v9201_v4  ;;  %v11074_v7 = vrot.slane %v5585_v57, 5  ;;  %v5647_v25 = vshll.u32 %v11063_v24, 16  ;;  %v5651_v63 = vshrl.u32 %v11063_v24, 16 }
 0x2fc   : > { %v5544_v12 = vrot.slane %v5542_v55, 4  ;;  %v5484_v55 = vld [vmem:[#allocation2 + $0x54] sm:$0xf] }
 0x2fd   : > { %v5641_v37 = vshll.u32 %v5484_v55, 16  ;;  %v11094_v9 = vrot.slane %v5647_v25, 5  ;;  %v5653_v23 = vrot.slane %v5651_v63, 4  ;;  %v1310_v25 = vld [vmem:[#allocation2 + $0xd4] sm:$0x1]  ;;  %v9214_v63 = vld [vmem:[#allocation2 + $0x9c] sm:$0xff]  }
 0x2fe   : > { %8576 = vmatpush3.bf16.msra.mxu0 %v9201_v4  ;;  %v5548_v8 = vor.u32 %v5547_v43, %v5544_v12  ;;  %v9209_v4 = vld [vmem:[#allocation2 + $0x78] sm:$0xff]   ;;  %v11082_v43 = vld [vmem:[#allocation2 + $0x44] sm:$0x1] }
 0x2ff   : > { %8577 = vmatprep.subr.bf16.mxu0 %v9204_v56  ;;  %v5609_v61 = vshll.u32 %v11082_v43, 16 }
 0x300   : > { %v5549_v52 = vrot.slane %v5548_v8, 4  ;;  %v5665_v8 = vshll.u32 %v5487_v32, 16  ;;  %v9215_v32 = vld [vmem:[#allocation2 + $0xa8] sm:$0xff]  }
 0x301   : > { %8546 = vmatmul.mubr.bf16.gmra.mrb[4].mxu0 %v9202_v33  ;;  %v5582_v33 = vor.u32 %v5581_v39, %v11047_v27  ;;  %v11099_v39 = vld [vmem:[#allocation2 + $0x50] sm:$0x1] }
 0x302   : > { %8549 = vmatprep.mubr.bf16.mxu0 %v9203_v30  ;;  %8578 = vmatpush3.bf16.msra.mxu0 %v9204_v56  ;;  %v5559_v56 = vrot.slane %v5558_v38, 4  ;;  %v11065_v30 = vcombine.low %v5530_v35, %v5540_v54  ;;  %v5554_v1 = vsel %vm10150_vm12, %v5549_v52, %v11038_v53  ;;  %v11086_v53 = vld [vmem:[#allocation2 + $0x64] sm:$0xf]  ;;  %v11105_v35 = vld [vmem:[#allocation2 + $0x5c] sm:$0x1]  ;;  %v5667_v50 = vrot.slane %v5665_v8, 5 }
 0x303   : > { %8579 = vmatprep.subr.bf16.mxu0 %v9207_v26  ;;  %v5583_v12 = vrot.slane %v5582_v33, 4  ;;  %v5675_v52 = vshrl.u32 %v11086_v53, 16  ;;  %v5633_v33 = vshll.u32 %v11099_v39, 16 }
 0x304   : > { %v5564_v59 = vsel %vm10150_vm12, %v5559_v56, %v5563_v3  ;;  %v5664_v56 = vrot.slane %v5662_v22, 4  ;;  %v5611_v3 = vrot.slane %v5609_v61, 5  ;;  %v11123_v22 = vld [vmem:[#allocation2 + $0x74] sm:$0x1]  ;;  %v11277_v61 = vld [vmem:[#allocation2 + $0xa0] sm:$0xf] }
 0x305   : > { %v11091_v31 = vcombine.low %v5554_v1, %v5564_v59  ;;  %v5588_v38 = vsel %vm10150_vm12, %v5583_v12, %v11074_v7  ;;  %v5657_v59 = vshll.u32 %v11105_v35, 16 }
 0x306   : > { %8580 = vmatpush3.bf16.msra.mxu0 %v9207_v26  ;;  %v5593_v26 = vshll.u32 %v5478_v47, 16  ;;  %v5671_v47 = vshll.u32 %v11086_v53, 16 }
 0x307   : > { %8581 = vmatprep.subr.bf16.mxu0 %v9210_v46 }
 0x308   : > { %v11113_v41 = vrot.slane %v5671_v47, 5 }
 0x309   : > { %8550 = vmatmul.mubr.bf16.gmra.mrb[8].mxu0 %v9205_v20  ;;  %v5595_v20 = vrot.slane %v5593_v26, 5  ;;  %v5654_v26 = vor.u32 %v5653_v23, %v11094_v9  ;;  %v1311_v23 = vsel %vm10083_vm5, 0, %v1310_v25  ;;  %v11165_v25 = vld [vmem:[#allocation2 + $0x80] sm:$0x1] }
 0x30a   : > { %8553 = vmatprep.mubr.bf16.mxu0 %v9206_v40  ;;  %8582 = vmatpush3.bf16.msra.mxu0 %v9210_v46  ;;  %v11072_v46 = vrot.slane %v5572_v0, 4  ;;  %v5638_v40 = vshrl.u32 %v5484_v55, 16  ;;  %v5643_v0 = vrot.slane %v5641_v37, 5  ;;  %v5677_v55 = vrot.slane %v5675_v52, 4  ;;  %1312 = vst [vmem:[#allocation2 + $0xd4] sm:$0x1] %v1311_v23 }
 0x30b   : > { %8583 = vmatprep.subr.bf16.mxu0 %v9213_v5  ;;  %v5596_v34 = vor.u32 %v5595_v20, %v5592_v19  ;;  %v11116_v19 = vld [vmem:[#allocation2 + $0x70] sm:$0xf]  ;;  %v5691_v37 = vrot.slane %v5689_v36, 5  ;;  %v5659_v52 = vrot.slane %v5657_v59, 5  ;;  %v9217_v36 = vld [vmem:[#allocation2 + $0xb4] sm:$0xff]  }
 0x30c   : > { %v5640_v54 = vrot.slane %v5638_v40, 4  ;;  %v5578_v1 = vsel %vm10150_vm12, %v11072_v46, %v11047_v27  ;;  %v5668_v27 = vor.u32 %v5667_v50, %v5664_v56  ;;  %v5635_v46 = vrot.slane %v5633_v33, 5  ;;  %v11328_v23 = vld [vmem:[#allocation2 + $0xc4] sm:$0xf] }
 0x30d   : > { %v5597_v7 = vrot.slane %v5596_v34, 4  ;;  %v11118_v12 = vcombine.low %v5578_v1, %v5588_v38  ;;  %v5695_v8 = vshll.u32 %v11116_v19, 16 }
 0x30e   : > { %8584 = vmatpush3.bf16.msra.mxu0 %v9213_v5  ;;  %v11084_v5 = vrot.slane %v5599_v62, 5  ;;  %v5686_v62 = vshrl.u32 %v5490_v51, 16  ;;  %v5644_v48 = vor.u32 %v5643_v0, %v5640_v54  ;;  %v11139_v0 = vld [vmem:[#allocation2 + $0x7c] sm:$0xf] }
 0x30f   : > { %8585 = vmatprep.subr.bf16.mxu0 %v9216_v28  ;;  %v11146_v33 = vrot.slane %v5695_v8, 5  ;;  %v6303_v8 = vrot.slane %v11035_v18, 5  ;;  %v6306_v18 = vrot.slane %v11045_v16, 5  ;;  %v6317_v16 = vrot.slane %v11058_v15, 5 }
 0x310   : > { %v5606_v57 = vor.u32 %v5605_v13, %v11084_v5  ;;  %v5688_v40 = vrot.slane %v5686_v62, 4  ;;  %v5602_v38 = vsel %vm10150_vm12, %v5597_v7, %v11084_v5  ;;  %v5645_v47 = vrot.slane %v5644_v48, 4 }
 0x311   : > { %8554 = vmatmul.mubr.bf16.gmra.mrb[12].mxu0 %v9208_v2  ;;  %v5616_v2 = vrot.slane %v5614_v14, 4  ;;  %v11120_v14 = vld [vmem:[#allocation2 + $0x68] sm:$0x1]  ;;  %v5719_v7 = vshll.u32 %v11139_v0, 16 }
 0x312   : > { %8557 = vmatprep.mubr.bf16.mxu0 %v9209_v4  ;;  %8586 = vmatpush3.bf16.msra.mxu0 %v9216_v28  ;;  %v9212_v28 = vld [vmem:[#allocation2 + $0x90] sm:$0xff]   ;;  %v5630_v4 = vor.u32 %v5629_v49, %v11089_v44  ;;  %v5607_v20 = vrot.slane %v5606_v57, 4  ;;  %v5678_v49 = vor.u32 %v5677_v55, %v11113_v41  ;;  %v5681_v54 = vshll.u32 %v11120_v14, 16 }
 0x313   : > { %8587 = vmatprep.subr.bf16.mxu0 %v9219_v11  ;;  %v5692_v5 = vor.u32 %v5691_v37, %v5688_v40  ;;  %v5650_v55 = vsel %vm10150_vm12, %v5645_v47, %v11094_v9 }
 0x314   : > { %v5631_v13 = vrot.slane %v5630_v4, 4  ;;  %v5612_v51 = vsel %vm10150_vm12, %v5607_v20, %v5611_v3  ;;  %v5705_v4 = vshll.u32 %v11123_v22, 16  ;;  %v11144_v50 = vrot.slane %v5678_v49, 4  ;;  %v9218_v20 = vld [vmem:[#allocation2 + $0xc0] sm:$0xff]   ;;  %v1381_v49 = vld [vmem:[#allocation2 + $0xd4] sm:$0x1] }
 0x315   : > { %v11150_v1 = vcombine.low %v5602_v38, %v5612_v51  ;;  %v11163_v59 = vrot.slane %v5681_v54, 5  ;;  %v11174_v9 = vrot.slane %v5692_v5, 4  ;;  %v12048_v38 = vld [vmem:[#allocation31_spill] sm:$0xff]  ;;  %v6305_v54 = vrot.slane %v6303_v8, 4 }
 0x316   : > { %8588 = vmatpush3.bf16.msra.mxu0 %v9219_v11  ;;  %v5619_v11 = vrot.slane %v5617_v42, 5  ;;  %v5655_v42 = vrot.slane %v5654_v26, 4 }
 0x317   : > { %8621 = vmatprep.subr.bf16.mxu0 %v11070_v17 }
 0x318   : > { %v5620_v21 = vor.u32 %v5619_v11, %v5616_v2  ;;  %v5636_v2 = vsel %vm10150_vm12, %v5631_v13, %v5635_v46  ;;  %v11136_v11 = vrot.slane %v5668_v27, 4  ;;  %v5660_v57 = vsel %vm10150_vm12, %v5655_v42, %v5659_v52  ;;  %v6225_v46 = vld [vmem:[#allocation2 + $0x30] sm:$0xe]  ;;  %v6226_v52 = vld [vmem:[#allocation2 + $0x3c] sm:$0xe] }
 0x319   : > { %8558 = vmatmul.mubr.bf16.gmra.mrb[16].mxu0 %v9211_v6  ;;  %v5493_v6 = vld [vmem:[#allocation2 + $0x78] sm:$0xf]  ;;  %v11161_v48 = vcombine.low %v5650_v55, %v5660_v57  ;;  %v11176_v13 = vrot.slane %v5705_v4, 5  ;;  %v6227_v57 = vld [vmem:[#allocation2 + $0x48] sm:$0xe]  ;;  %v7775_v55 = vrot.slane %v6226_v52, 9 }
 0x31a   : > { %8561 = vmatprep.mubr.bf16.mxu0 %v9212_v28  ;;  %v5699_v28 = vshrl.u32 %v11116_v19, 16  ;;  %v5621_v34 = vrot.slane %v5620_v21, 4  ;;  %v5710_v56 = vshrl.u32 %v5493_v6, 16  ;;  %v5713_v62 = vshll.u32 %v5493_v6, 16  ;;  %v11188_v6 = vld [vmem:[#allocation2 + $0x88] sm:$0xf] }
 0x31b   : > { %v11224_v52 = vld [vmem:[#allocation2 + $0x90] sm:$0xf]  ;;  %v6234_v42 = vld [vmem:[#allocation2 + $0x9c] sm:$0xe] }
 0x31c   : > { %v11148_v26 = vrot.slane %v5699_v28, 4  ;;  %v5626_v3 = vsel %vm10150_vm12, %v5621_v34, %v11089_v44  ;;  %v11178_v27 = vrot.slane %v5710_v56, 4  ;;  %v11186_v37 = vrot.slane %v5713_v62, 5 }
 0x31d   : > { %v11159_v21 = vcombine.low %v5626_v3, %v5636_v2  ;;  %v11191_v28 = vrot.slane %v5719_v7, 5  ;;  %v12049_v34 = vrot.slane %v12048_v38, 4  ;;  %v7774_v2 = vrot.slane %v6225_v46, 9  ;;  %v6228_v7 = vld [vmem:[#allocation2 + $0x54] sm:$0xe] }
 0x31e   : > { %v6310_v62 = vrot.slane %v11050_v45, 5  ;;  %v11212_v3 = vsel %vm10812_vm15, %v6305_v54, %v6306_v18  ;;  %v6313_v46 = vrot.slane %v11082_v43, 5  ;;  %v7776_v45 = vrot.slane %v6227_v57, 9 }
 0x31f   : > { %v1382_v47 = vsel %vm10073_vm3, %v12049_v34, %v1381_v49  ;;  %v11208_v29 = vsel %vm10812_vm15, %v7774_v2, %v6303_v8  ;;  %v6319_v8 = vrot.slane %v6317_v16, 4  ;;  %v6320_v38 = vrot.slane %v11099_v39, 5 }
 0x320   : > { %1383 = vst [vmem:[#allocation2 + $0xd4] sm:$0x1] %v1382_v47  ;;  %v11220_v49 = vsel %vm10812_vm15, %v7775_v55, %v6310_v62  ;;  %v6324_v34 = vrot.slane %v11063_v24, 5  ;;  %v6229_v47 = vld [vmem:[#allocation2 + $0x60] sm:$0xe]  ;;  %v11232_v43 = vsel %vm10812_vm15, %v7776_v45, %v6317_v16  ;;  %v7777_v2 = vrot.slane %v6228_v7, 9 }
 0x321   : > { %8562 = vmatmul.mubr.bf16.gmra.mrb[20].mxu0 %v9214_v63  ;;  %v5723_v63 = vshrl.u32 %v11139_v0, 16  ;;  %v6331_v54 = vrot.slane %v11086_v53, 5  ;;  %v11239_v24 = vsel %vm10812_vm15, %v6319_v8, %v6320_v38  ;;  %v6327_v57 = vrot.slane %v11105_v35, 5  ;;  %v11246_v7 = vld [vmem:[#allocation2 + $0x94] sm:$0xf] }
 0x322   : > { %8565 = vmatprep.mubr.bf16.mxu0 %v9215_v32  ;;  %v11168_v32 = vld [vmem:[#allocation2 + $0x84] sm:$0xf]  ;;  %v6326_v18 = vrot.slane %v6324_v34, 4  ;;  %v7778_v55 = vrot.slane %v6229_v47, 9  ;;  %v6334_v53 = vrot.slane %v11120_v14, 5  ;;  %v6341_v39 = vrot.slane %v11123_v22, 5 }
 0x323   : > { %v11199_v51 = vrot.slane %v5723_v63, 4  ;;  %v6333_v16 = vrot.slane %v6331_v54, 4  ;;  %v6231_v45 = vld [vmem:[#allocation2 + $0x78] sm:$0xe]  ;;  %v11258_v8 = vld [vmem:[#allocation2 + $0x8c] sm:$0x1]  ;;  %v12076_v60 = vcombine.low %v11232_v43, %v11239_v24 }
 0x324   : > { %v11255_v35 = vsel %vm10812_vm15, %v6326_v18, %v6327_v57  ;;  %v11265_v47 = vsel %vm10812_vm15, %v7778_v55, %v6331_v54  ;;  %v11271_v18 = vld [vmem:[#allocation2 + $0x98] sm:$0x1]  ;;  %v6233_v63 = vld [vmem:[#allocation2 + $0x90] sm:$0xe]  ;;  %v7780_v54 = vrot.slane %v6231_v45, 9  ;;  %v6345_v55 = vrot.slane %v11139_v0, 5 }
 0x325   : > { %v6348_v22 = vrot.slane %v11165_v25, 5  ;;  %v11290_v38 = vld [vmem:[#allocation2 + $0xa4] sm:$0x1]  ;;  %v11292_v45 = vld [vmem:[#allocation2 + $0xac] sm:$0xf]  ;;  %v6359_v0 = vrot.slane %v11246_v7, 5 }
 0x326   : > { %v6347_v14 = vrot.slane %v6345_v55, 4  ;;  %v7783_v4 = vrot.slane %v6234_v42, 9  ;;  %v6369_v5 = vrot.slane %v11290_v38, 5  ;;  %v11346_v42 = vld [vmem:[#allocation2 + $0xc8] sm:$0x1] }
 0x329   : > { %8566 = vmatmul.mubr.bf16.gmra.mrb[24].mxu0 %v9217_v36  ;;  %v9220_v36 = vld [vmem:[#allocation2 + $0xcc] sm:$0xff]  }
 0x32a   : > { %8569 = vmatprep.mubr.bf16.mxu0 %v9218_v20  ;;  %v6312_v20 = vrot.slane %v6310_v62, 4 }
 0x32c   : > { %v11228_v15 = vsel %vm10812_vm15, %v6312_v20, %v6313_v46  ;;  %v11251_v46 = vsel %vm10812_vm15, %v7777_v2, %v6324_v34  ;;  %v11269_v34 = vsel %vm10812_vm15, %v6333_v16, %v6334_v53  ;;  %v6232_v2 = vld [vmem:[#allocation2 + $0x84] sm:$0xe]  ;;  %v6352_v16 = vrot.slane %v11188_v6, 5 }
 0x32d   : > { %v9222_v53 = vld [vmem:[#allocation11 + $0x208] sm:$0xff]   ;;  %v6355_v20 = vrot.slane %v11258_v8, 5  ;;  %v12078_v10 = vcombine.low %v11265_v47, %v11269_v34 }
 0x32e   : > { %v6354_v56 = vrot.slane %v6352_v16, 4 }
 0x331   : > { %8570 = vmatmul.mubr.bf16.gmra.mrb[28].mxu0 %v9220_v36  ;;  %v6230_v36 = vld [vmem:[#allocation2 + $0x6c] sm:$0xe] }
 0x332   : > { %8589 = vmatprep.mubr.bf16.mxu0 %v11065_v30  ;;  %v6338_v30 = vrot.slane %v11116_v19, 5  ;;  %v7779_v57 = vrot.slane %v6230_v36, 9  ;;  %v7781_v19 = vrot.slane %v6232_v2, 9 }
 0x334   : > { %v6340_v62 = vrot.slane %v6338_v30, 4  ;;  %v11283_v44 = vsel %vm10812_vm15, %v7779_v57, %v6338_v30  ;;  %v7782_v30 = vrot.slane %v6233_v63, 9  ;;  %v11298_v57 = vld [vmem:[#allocation2 + $0xb0] sm:$0x1]  ;;  %v11308_v2 = vsel %vm10812_vm15, %v7781_v19, %v6352_v16  ;;  %v9223_v19 = vld [vmem:[#allocation11 + $0x210] sm:$0xff]  }
 0x335   : > { %12050 = vst [vmem:[#allocation36_spill] sm:$0xff] %v11283_v44  ;;  %12053 = vst [vmem:[#allocation39_spill] sm:$0xff] %v11308_v2  ;;  %v6362_v63 = vrot.slane %v11271_v18, 5  ;;  %v6237_v44 = vld [vmem:[#allocation2 + $0xc0] sm:$0xe]  ;;  %v6387_v2 = vrot.slane %v11328_v23, 5 }
 0x336   : > { %v11287_v36 = vsel %vm10812_vm15, %v6340_v62, %v6341_v39  ;;  %v11300_v39 = vld [vmem:[#allocation2 + $0xb8] sm:$0xf]  ;;  %v11304_v62 = vsel %vm10812_vm15, %v7780_v54, %v6345_v55  ;;  %v6366_v54 = vrot.slane %v11277_v61, 5  ;;  %v6235_v55 = vld [vmem:[#allocation2 + $0xa8] sm:$0xe]  ;;  %v11334_v40 = vsel %vm10812_vm15, %v7782_v30, %v6359_v0 }
 0x337   : > { %12051 = vst [vmem:[#allocation34_spill] sm:$0xff] %v11287_v36  ;;  %12052 = vst [vmem:[#allocation35_spill] sm:$0xff] %v11304_v62  ;;  %v6373_v62 = vrot.slane %v11292_v45, 5  ;;  %v6376_v36 = vrot.slane %v11298_v57, 5 }
 0x338   : > { %12056 = vst [vmem:[#allocation40_spill] sm:$0xff] %v11334_v40  ;;  %v11338_v16 = vsel %vm10812_vm15, %v7783_v4, %v6366_v54  ;;  %v7786_v40 = vrot.slane %v6237_v44, 9 }
 0x339   : > { %8590 = vmatmul.mubr.bf16.vlgmr.msra.gmra.mrb[0].mxu0 %v11091_v31  ;;  %v11315_v31 = vsel %vm10812_vm15, %v6347_v14, %v6348_v22  ;;  %v6236_v14 = vld [vmem:[#allocation2 + $0xb4] sm:$0xe]  ;;  %v11326_v22 = vld [vmem:[#allocation2 + $0xbc] sm:$0x1] }
 0x33a   : > { %8622 = vmatpush3.bf16.msra.mxu0 %v11070_v17  ;;  %8593 = vmatprep.mubr.bf16.mxu0 %v11118_v12  ;;  %12054 = vst [vmem:[#allocation37_spill] sm:$0xff] %v11315_v31  ;;  %v11323_v17 = vsel %vm10812_vm15, %v6354_v56, %v6355_v20  ;;  %v6361_v12 = vrot.slane %v6359_v0, 4  ;;  %v6368_v56 = vrot.slane %v6366_v54, 4  ;;  %v7784_v31 = vrot.slane %v6235_v55, 9  ;;  %v6238_v54 = vld [vmem:[#allocation2 + $0xcc] sm:$0xe] }
 0x33b   : > { %8623 = vmatprep.subr.bf16.mxu0 %v9222_v53  ;;  %12055 = vst [vmem:[#allocation38_spill] sm:$0xff] %v11323_v17  ;;  %v7785_v30 = vrot.slane %v6236_v14, 9  ;;  %v9224_v55 = vld [vmem:[#allocation11 + $0x218] sm:$0xff]   ;;  %v6375_v0 = vrot.slane %v6373_v62, 4 }
 0x33c   : > { %v11342_v20 = vsel %vm10812_vm15, %v6361_v12, %v6362_v63  ;;  %v11352_v4 = vsel %vm10812_vm15, %v6368_v56, %v6369_v5  ;;  %v6380_v63 = vrot.slane %v11300_v39, 5  ;;  %v11355_v12 = vld [vmem:[#allocation2 + $0xd0] sm:$0xf]  ;;  %v11361_v17 = vsel %vm10812_vm15, %v7784_v31, %v6373_v62  ;;  %v11364_v5 = vld [vmem:[#allocation2 + $0xd4] sm:$0x1]  ;;  %v12085_v47 = vld [vmem:[#allocation39_spill] sm:$0xff] }
 0x33d   : > { %12057 = vst [vmem:[#allocation41_spill] sm:$0xff] %v11342_v20  ;;  %12058 = vst [vmem:[#allocation29_spill] sm:$0xff] %v11352_v4  ;;  %v6383_v20 = vrot.slane %v11326_v22, 5  ;;  %v7787_v31 = vrot.slane %v6238_v54, 9  ;;  %v6394_v62 = vrot.slane %v11355_v12, 5  ;;  %v6397_v4 = vrot.slane %v11364_v5, 5 }
 0x33e   : > { %8624 = vmatpush3.bf16.msra.mxu0 %v9222_v53  ;;  %12059 = vst [vmem:[#allocation32_spill] sm:$0xff] %v11361_v17  ;;  %v11368_v14 = vsel %vm10812_vm15, %v7785_v30, %v6380_v63  ;;  %v6382_v56 = vrot.slane %v6380_v63, 4  ;;  %v11374_v53 = vsel %vm10812_vm15, %v6375_v0, %v6376_v36  ;;  %v6390_v63 = vrot.slane %v11346_v42, 5  ;;  %v9225_v36 = vld [vmem:[#allocation11 + $0x220] sm:$0xff]  }
 0x33f   : > { %8625 = vmatprep.subr.bf16.mxu0 %v9223_v19  ;;  %12060 = vst [vmem:[#allocation33_spill] sm:$0xff] %v11374_v53  ;;  %v5771_v0 = vshrl.u32 %v11246_v7, 16  ;;  %v12061_v30 = vor.u32 %v11148_v26, %v11146_v33  ;;  %v11400_v53 = vsel %vm10812_vm15, %v7786_v40, %v6387_v2  ;;  %v12065_v40 = vshll.u32 %v11168_v32, 16  ;;  %v9229_v26 = vld [vmem:[#allocation12] sm:$0xff]  }
 0x340   : > { %v11383_v44 = vsel %vm10812_vm15, %v6382_v56, %v6383_v20  ;;  %v5716_v56 = vor.u32 %v11186_v37, %v11178_v27  ;;  %12062 = vst [vmem:[#allocation30_spill] sm:$0xff] %v11400_v53  ;;  %v9226_v53 = vld [vmem:[#allocation11 + $0x228] sm:$0xff]   ;;  %8669 = vmatprep.subr.bf16.mxu1 %v9229_v26 }
 0x341   : > { %8594 = vmatmul.mubr.bf16.gmra.mrb[4].mxu0 %v11150_v1  ;;  %v6389_v1 = vrot.slane %v6387_v2, 4  ;;  %v5703_v20 = vrot.slane %v12061_v30, 4  ;;  %v5739_v37 = vrot.slane %v12065_v40, 5  ;;  %v12066_v2 = vshll.u32 %v11188_v6, 16  ;;  %8670 = vmatpush3.bf16.msra.mxu1 %v9229_v26 }
 0x342   : > { %8597 = vmatprep.mubr.bf16.mxu0 %v11159_v21  ;;  %8626 = vmatpush3.bf16.msra.mxu0 %v9223_v19  ;;  %v11391_v21 = vsel %vm10812_vm15, %v7787_v31, %v6394_v62  ;;  %v6396_v19 = vrot.slane %v6394_v62, 4  ;;  %v5726_v31 = vor.u32 %v11199_v51, %v11191_v28  ;;  %v12064_v62 = vshrl.u32 %v11168_v32, 16  ;;  %v12086_v34 = vld [vmem:[#allocation38_spill] sm:$0xff] }
 0x343   : > { %8627 = vmatprep.subr.bf16.mxu0 %v9224_v55  ;;  %v11404_v17 = vsel %vm10812_vm15, %v6389_v1, %v6390_v63  ;;  %v11420_v30 = vrot.slane %v12066_v2, 5  ;;  %v12067_v51 = vshrl.u32 %v11188_v6, 16  ;;  %v5502_v63 = vld [vmem:[#allocation2 + $0x9c] sm:$0xf]  ;;  %v12070_v40 = vshll.u32 %v11246_v7, 16  ;;  %v9230_v6 = vld [vmem:[#allocation12 + $0x8] sm:$0xff]  }
 0x344   : > { %12063 = vst [vmem:[#allocation31_spill] sm:$0xff] %v11404_v17  ;;  %v5736_v54 = vrot.slane %v12064_v62, 4  ;;  %v11414_v27 = vsel %vm10812_vm15, %v6396_v19, %v6397_v4  ;;  %v12068_v4 = vshrl.u32 %v11224_v52, 16  ;;  %v5773_v2 = vrot.slane %v5771_v0, 4  ;;  %8671 = vmatprep.subr.bf16.mxu1 %v9230_v6 }
 0x345   : > { %v5749_v1 = vrot.slane %v12067_v51, 4  ;;  %v11432_v17 = vrot.slane %v12070_v40, 5  ;;  %v12071_v51 = vsel %vm10150_vm12, %v11144_v50, %v11163_v59  ;;  %v5717_v7 = vrot.slane %v5716_v56, 4  ;;  %v9231_v40 = vld [vmem:[#allocation12 + $0x10] sm:$0xff]   ;;  %8672 = vmatpush3.bf16.msra.mxu1 %v9230_v6 }
 0x346   : > { %8628 = vmatpush3.bf16.msra.mxu0 %v9224_v55  ;;  %v5760_v19 = vrot.slane %v12068_v4, 4  ;;  %v12069_v55 = vshll.u32 %v11224_v52, 16  ;;  %v12072_v4 = vsel %vm10150_vm12, %v11136_v11, %v11113_v41  ;;  %v5708_v52 = vsel %vm10150_vm12, %v5703_v20, %v11176_v13  ;;  %8673 = vmatprep.subr.bf16.mxu1 %v9231_v40 }
 0x347   : > { %8629 = vmatprep.subr.bf16.mxu0 %v9225_v36  ;;  %v7754_v62 = vcombine.low %v12072_v4, %v12071_v51  ;;  %v5698_v0 = vsel %vm10150_vm12, %v11174_v9, %v11146_v33  ;;  %v5727_v50 = vrot.slane %v5726_v31, 4  ;;  %v5740_v59 = vor.u32 %v5739_v37, %v5736_v54  ;;  %v9227_v4 = vld [vmem:[#allocation11 + $0x230] sm:$0xff]  }
 0x348   : > { %v5763_v32 = vrot.slane %v12069_v55, 5  ;;  %v5750_v41 = vor.u32 %v5749_v1, %v11420_v30  ;;  %v5782_v11 = vshrl.u32 %v5502_v63, 16  ;;  %v5785_v55 = vshll.u32 %v5502_v63, 16  ;;  %v5505_v31 = vld [vmem:[#allocation2 + $0xa8] sm:$0xf] }
 0x349   : > { %8598 = vmatmul.mubr.bf16.gmra.mrb[8].mxu0 %v11161_v48  ;;  %v7755_v13 = vcombine.low %v5698_v0, %v5708_v52  ;;  %v12073_v20 = vshll.u32 %v11165_v25, 16  ;;  %v5774_v51 = vor.u32 %v5773_v2, %v11432_v17  ;;  %v5722_v33 = vsel %vm10150_vm12, %v5717_v7, %v11191_v28  ;;  %v9228_v52 = vld [vmem:[#allocation11 + $0x238] sm:$0xff]   ;;  %8674 = vmatpush3.bf16.msra.mxu1 %v9231_v40 }
 0x34a   : > { %8601 = vmatprep.mubr.bf16.mxu0 %v7754_v62  ;;  %8630 = vmatpush3.bf16.msra.mxu0 %v9225_v36  ;;  %v5764_v48 = vor.u32 %v5763_v32, %v5760_v19  ;;  %v5753_v9 = vshll.u32 %v11258_v8, 16  ;;  %v5791_v36 = vshll.u32 %v11277_v61, 16  ;;  %v5795_v54 = vshrl.u32 %v11277_v61, 16  ;;  %v9232_v7 = vld [vmem:[#allocation12 + $0x18] sm:$0xff]  }
 0x34b   : > { %v5731_v56 = vrot.slane %v12073_v20, 5  ;;  %8631 = vmatprep.subr.bf16.mxu0 %v9226_v53  ;;  %v5777_v26 = vshll.u32 %v11271_v18, 16  ;;  %v5815_v37 = vshll.u32 %v11292_v45, 16  ;;  %v5819_v1 = vshrl.u32 %v11292_v45, 16  ;;  %8675 = vmatprep.subr.bf16.mxu1 %v9232_v7 }
 0x34c   : > { %v5741_v63 = vrot.slane %v5740_v59, 4  ;;  %v5751_v62 = vrot.slane %v5750_v41, 4  ;;  %v5784_v28 = vrot.slane %v5782_v11, 4  ;;  %v5787_v19 = vrot.slane %v5785_v55, 5  ;;  %v5508_v41 = vld [vmem:[#allocation2 + $0xb4] sm:$0xf] }
 0x34d   : > { %v5732_v25 = vsel %vm10150_vm12, %v5727_v50, %v5731_v56  ;;  %v5765_v8 = vrot.slane %v5764_v48, 4  ;;  %v5775_v32 = vrot.slane %v5774_v51, 4  ;;  %v5806_v61 = vshrl.u32 %v5505_v31, 16  ;;  %v9233_v48 = vld [vmem:[#allocation12 + $0x20] sm:$0xff]   ;;  %8676 = vmatpush3.bf16.msra.mxu1 %v9232_v7 }
 0x34e   : > { %8632 = vmatpush3.bf16.msra.mxu0 %v9226_v53  ;;  %v5809_v2 = vshll.u32 %v5505_v31, 16  ;;  %v7756_v0 = vcombine.low %v5722_v33, %v5732_v25  ;;  %v5755_v18 = vrot.slane %v5753_v9, 5  ;;  %v11467_v50 = vrot.slane %v5791_v36, 5  ;;  %8677 = vmatprep.subr.bf16.mxu1 %v9233_v48 }
 0x34f   : > { %8633 = vmatprep.subr.bf16.mxu0 %v9227_v4  ;;  %v5797_v20 = vrot.slane %v5795_v54, 4  ;;  %v5779_v45 = vrot.slane %v5777_v26, 5  ;;  %v11469_v6 = vrot.slane %v5815_v37, 5  ;;  %v5821_v59 = vrot.slane %v5819_v1, 4 }
 0x350   : > { %v5746_v53 = vsel %vm10150_vm12, %v5741_v63, %v11420_v30  ;;  %v5756_v11 = vsel %vm10150_vm12, %v5751_v62, %v5755_v18  ;;  %v5788_v55 = vor.u32 %v5787_v19, %v5784_v28  ;;  %v5801_v56 = vshll.u32 %v11290_v38, 16  ;;  %v9234_v62 = vld [vmem:[#allocation12 + $0x28] sm:$0xff]  }
 0x351   : > { %8602 = vmatmul.mubr.bf16.gmra.mrb[12].mxu0 %v7755_v13  ;;  %v5770_v13 = vsel %vm10150_vm12, %v5765_v8, %v11432_v17  ;;  %v5780_v40 = vsel %vm10150_vm12, %v5775_v32, %v5779_v45  ;;  %v5808_v51 = vrot.slane %v5806_v61, 4  ;;  %v5811_v33 = vrot.slane %v5809_v2, 5  ;;  %v5514_v32 = vld [vmem:[#allocation2 + $0xcc] sm:$0xf]  ;;  %8678 = vmatpush3.bf16.msra.mxu1 %v9233_v48 }
 0x352   : > { %8605 = vmatprep.mubr.bf16.mxu0 %v7756_v0  ;;  %8634 = vmatpush3.bf16.msra.mxu0 %v9227_v4  ;;  %v5798_v30 = vor.u32 %v5797_v20, %v11467_v50  ;;  %v5830_v9 = vshrl.u32 %v5508_v41, 16  ;;  %v5839_v36 = vshll.u32 %v11300_v39, 16  ;;  %v5843_v38 = vshrl.u32 %v11300_v39, 16  ;;  %v5511_v4 = vld [vmem:[#allocation2 + $0xc0] sm:$0xf] }
 0x353   : > { %8635 = vmatprep.subr.bf16.mxu0 %v9228_v52  ;;  %v5822_v54 = vor.u32 %v5821_v59, %v11469_v6  ;;  %v5833_v31 = vshll.u32 %v5508_v41, 16  ;;  %v5863_v17 = vshll.u32 %v11328_v23, 16  ;;  %v5867_v25 = vshrl.u32 %v11328_v23, 16  ;;  %8679 = vmatprep.subr.bf16.mxu1 %v9234_v62 }
 0x354   : > { %v7757_v26 = vcombine.low %v5746_v53, %v5756_v11  ;;  %v7758_v37 = vcombine.low %v5770_v13, %v5780_v40  ;;  %v5789_v1 = vrot.slane %v5788_v55, 4  ;;  %v5803_v63 = vrot.slane %v5801_v56, 5  ;;  %v9235_v53 = vld [vmem:[#allocation12 + $0x30] sm:$0xff]  }
 0x355   : > { %v5812_v28 = vor.u32 %v5811_v33, %v5808_v51  ;;  %v5825_v19 = vshll.u32 %v11298_v57, 16  ;;  %v5854_v39 = vshrl.u32 %v5511_v4, 16  ;;  %v5857_v8 = vshll.u32 %v5511_v4, 16  ;;  %8680 = vmatpush3.bf16.msra.mxu1 %v9234_v62 }
 0x356   : > { %8636 = vmatpush3.bf16.msra.mxu0 %v9228_v52  ;;  %v5799_v61 = vrot.slane %v5798_v30, 4  ;;  %v5832_v2 = vrot.slane %v5830_v9, 4  ;;  %v5841_v0 = vrot.slane %v5839_v36, 5  ;;  %v5845_v18 = vrot.slane %v5843_v38, 4  ;;  %8681 = vmatprep.subr.bf16.mxu1 %v9235_v53 }
 0x357   : > { %v5823_v23 = vrot.slane %v5822_v54, 4  ;;  %v5835_v7 = vrot.slane %v5833_v31, 5  ;;  %v5865_v20 = vrot.slane %v5863_v17, 5  ;;  %v5869_v45 = vrot.slane %v5867_v25, 4 }
 0x358   : > { %v5878_v52 = vshrl.u32 %v5514_v32, 16  ;;  %v5881_v59 = vshll.u32 %v5514_v32, 16  ;;  %v5887_v41 = vshll.u32 %v11355_v12, 16  ;;  %v5891_v57 = vshrl.u32 %v11355_v12, 16  ;;  %v9296_v32 = vld [vmem:[#allocation2 + $0x1c] sm:$0xf] }
 0x359   : > { %8606 = vmatmul.mubr.bf16.gmra.mrb[16].mxu0 %v7757_v26  ;;  %v5813_v11 = vrot.slane %v5812_v28, 4  ;;  %v5827_v55 = vrot.slane %v5825_v19, 5  ;;  %v5856_v56 = vrot.slane %v5854_v39, 4  ;;  %v5859_v13 = vrot.slane %v5857_v8, 5  ;;  %8682 = vmatpush3.bf16.msra.mxu1 %v9235_v53  ;;  %v6223_v53 = vld [vmem:[#allocation2 + $0x18] sm:$0xe] }
 0x35a   : > { %8609 = vmatprep.mubr.bf16.mxu0 %v7758_v37  ;;  %v5794_v40 = vsel %vm10150_vm12, %v5789_v1, %v11467_v50  ;;  %v5804_v48 = vsel %vm10150_vm12, %v5799_v61, %v5803_v63  ;;  %v5846_v51 = vor.u32 %v5845_v18, %v5841_v0  ;;  %v5836_v30 = vor.u32 %v5835_v7, %v5832_v2 }
 0x35b   : > { %v5828_v33 = vsel %vm10150_vm12, %v5823_v23, %v5827_v55  ;;  %v5849_v12 = vshll.u32 %v11326_v22, 16  ;;  %v5870_v9 = vor.u32 %v5869_v45, %v5865_v20  ;;  %v5880_v36 = vrot.slane %v5878_v52, 4  ;;  %v9298_v55 = vld [vmem:[#allocation2 + $0x28] sm:$0xf] }
 0x35c   : > { %v5883_v38 = vrot.slane %v5881_v59, 5  ;;  %v5889_v4 = vrot.slane %v5887_v41, 5  ;;  %v5893_v54 = vrot.slane %v5891_v57, 4  ;;  %v7759_v31 = vcombine.low %v5794_v40, %v5804_v48 }
 0x35d   : > { %v5818_v50 = vsel %vm10150_vm12, %v5813_v11, %v11469_v6  ;;  %v5860_v17 = vor.u32 %v5859_v13, %v5856_v56  ;;  %v5873_v25 = vshll.u32 %v11346_v42, 16  ;;  %v5847_v37 = vrot.slane %v5846_v51, 4  ;;  %v9297_v11 = vld [vmem:[#allocation2 + $0x20] sm:$0x1] }
 0x35e   : > { %v7760_v26 = vcombine.low %v5818_v50, %v5828_v33  ;;  %v5851_v1 = vrot.slane %v5849_v12, 5  ;;  %v5871_v22 = vrot.slane %v5870_v9, 4  ;;  %v5837_v63 = vrot.slane %v5836_v30, 4  ;;  %v6224_v30 = vld [vmem:[#allocation2 + $0x24] sm:$0xe] }
 0x35f   : > { %v5884_v62 = vor.u32 %v5883_v38, %v5880_v36  ;;  %v5894_v28 = vor.u32 %v5893_v54, %v5889_v4  ;;  %v5897_v19 = vshll.u32 %v11364_v5, 16  ;;  %v5861_v39 = vrot.slane %v5860_v17, 4 }
 0x360   : > { %v5875_v8 = vrot.slane %v5873_v25, 5  ;;  %v5852_v6 = vsel %vm10150_vm12, %v5847_v37, %v5851_v1  ;;  %v6289_v61 = vrot.slane %v9296_v32, 5  ;;  %v5842_v2 = vsel %vm10150_vm12, %v5837_v63, %v5841_v0  ;;  %v12079_v25 = vld [vmem:[#allocation36_spill] sm:$0xff]  ;;  %v12083_v37 = vld [vmem:[#allocation37_spill] sm:$0xff] }
 0x361   : > { %8610 = vmatmul.mubr.bf16.gmra.mrb[20].mxu0 %v7759_v31  ;;  %v5885_v18 = vrot.slane %v5884_v62, 4  ;;  %v5895_v23 = vrot.slane %v5894_v28, 4  ;;  %v5899_v7 = vrot.slane %v5897_v19, 5  ;;  %v7761_v45 = vcombine.low %v5842_v2, %v5852_v6  ;;  %v12088_v63 = vld [vmem:[#allocation40_spill] sm:$0xff]  ;;  %v12089_v62 = vld [vmem:[#allocation41_spill] sm:$0xff] }
 0x362   : > { %8613 = vmatprep.mubr.bf16.mxu0 %v7760_v26  ;;  %v5876_v42 = vsel %vm10150_vm12, %v5871_v22, %v5875_v8  ;;  %v5866_v5 = vsel %vm10150_vm12, %v5861_v39, %v5865_v20  ;;  %v6291_v59 = vrot.slane %v6289_v61, 4  ;;  %v6292_v0 = vrot.slane %v9297_v11, 5  ;;  %v12080_v26 = vld [vmem:[#allocation34_spill] sm:$0xff]  ;;  %v12094_v2 = vld [vmem:[#allocation33_spill] sm:$0xff] }
 0x363   : > { %v7762_v52 = vcombine.low %v5866_v5, %v5876_v42  ;;  %v5890_v41 = vsel %vm10150_vm12, %v5885_v18, %v5889_v4  ;;  %v5900_v57 = vsel %vm10150_vm12, %v5895_v23, %v5899_v7  ;;  %v6296_v56 = vrot.slane %v9298_v55, 5  ;;  %v12091_v42 = vld [vmem:[#allocation29_spill] sm:$0xff] }
 0x364   : > { %v7763_v13 = vcombine.low %v5890_v41, %v5900_v57  ;;  %v7772_v40 = vrot.slane %v6223_v53, 9  ;;  %v6293_v20 = vsel %vm10812_vm15, %v6291_v59, %v6292_v0  ;;  %v7773_v12 = vrot.slane %v6224_v30, 9  ;;  %v12097_v59 = vld [vmem:[#allocation30_spill] sm:$0xff]  ;;  %v12098_v41 = vld [vmem:[#allocation31_spill] sm:$0xff] }
 0x365   : > { %v6298_v33 = vrot.slane %v6296_v56, 4  ;;  %v12074_v4 = vcombine.low %v11208_v29, %v11212_v3  ;;  %v12075_v54 = vcombine.low %v11220_v49, %v11228_v15  ;;  %v12077_v31 = vcombine.low %v11251_v46, %v11255_v35  ;;  %v12082_v15 = vld [vmem:[#allocation35_spill] sm:$0xff] }
 0x366   : > { %v6290_v48 = vsel %vm10812_vm15, %v7772_v40, %v6289_v61  ;;  %v6297_v36 = vsel %vm10812_vm15, %v7773_v12, %v6296_v56  ;;  %v12081_v49 = vcombine.low %v12079_v25, %v12080_v26  ;;  %v12084_v43 = vcombine.low %v12082_v15, %v12083_v37  ;;  %v12093_v61 = vld [vmem:[#allocation32_spill] sm:$0xff] }
 0x367   : > { %v7788_v51 = vcombine.low %v6290_v48, %v6293_v20  ;;  %v6300_v9 = vsel %vm10812_vm15, %v6298_v33, %v6299_v58  ;;  %v12087_v22 = vcombine.low %v12085_v47, %v12086_v34  ;;  %v12090_v28 = vcombine.low %v12088_v63, %v12089_v62  ;;  %v9236_v58 = vld [vmem:[#allocation12 + $0x38] sm:$0xff]  }
 0x368   : > { %v7789_v38 = vcombine.low %v6297_v36, %v6300_v9  ;;  %v12092_v32 = vcombine.low %v11338_v16, %v12091_v42  ;;  %v12095_v18 = vcombine.low %v12093_v61, %v12094_v2  ;;  %v12099_v16 = vcombine.low %v12097_v59, %v12098_v41  ;;  %8683 = vmatprep.subr.bf16.mxu1 %v9236_v58  ;;  %v11622_v9 = vld [vmem:[%s12101_s12] ss:$0 sm:$0xff]  ;;  %s9493_s12 = sshll.u32 %s9596_s5, 4  ;;  %s9494_s12 = int_to_ptr.vmem [resolvable:$false] %s9493_s12 }
 0x369   : > { %8614 = vmatmul.mubr.bf16.gmra.mrb[24].mxu0 %v7761_v45  ;;  %v12100_v55 = vcombine.low %v11391_v21, %v11414_v27  ;;  %8684 = vmatpush3.bf16.msra.mxu1 %v9236_v58  ;;  %s9495_s20 = scalar_lea.vmem %s9494_s12, 8192  ;;  %p9496_p13 = scmp.lt.s32.totalorder %s11848_s30, %s9494_s12 }
 0x36a   : > { %8617 = vmatprep.mubr.bf16.mxu0 %v7762_v52  ;;  %v12096_v52 = vcombine.low %v11368_v14, %v11383_v44  ;;  %p9497_p5 = scmp.lt.s32.totalorder %s9495_s20, %s9489_s1 }
 0x36c   : > { %p9498_p3 = por %p9497_p5, %p9496_p13 }
 0x36e   : > { %p9499_p6 = pnand %p9498_p3, %p9492_p8 }
 0x371   : > { %8618 = vmatmul.mubr.bf16.gmra.mrb[28].mxu0 %v7763_v13 }
 0x372   : > { %8637 = vmatprep.mubr.bf16.mxu0 %v7788_v51 }
 0x379   : > { %8638 = vmatmul.mubr.bf16.vlgmr.msra.gmra.mrb[0].mxu0 %v7789_v38 }
 0x37a   : > { %8641 = vmatprep.mubr.bf16.mxu0 %v12074_v4  ;;  %v11627_v4 = vld [vmem:[%s12102_s17] ss:$0 sm:$0xff] }
 0x381   : > { %8642 = vmatmul.mubr.bf16.gmra.mrb[4].mxu0 %v12075_v54 }
 0x382   : > { %8645 = vmatprep.mubr.bf16.mxu0 %v12076_v60 }
 0x389   : > { %8646 = vmatmul.mubr.bf16.gmra.mrb[8].mxu0 %v12077_v31 }
 0x38a   : > { %8649 = vmatprep.mubr.bf16.mxu0 %v12078_v10  ;;  %v8351_v50 = vpop.f32.mrb[40].mxu1 }
 0x38b   : > { %v3285_v17 = vpop.f32.mrb[41].mxu1 }
 0x38c   : > { %v8352_v29 = vpop.f32.mrb[42].mxu1 }
 0x38d   : > { %v3288_v3 = vpop.f32.mrb[43].mxu1 }
 0x391   : > { %8650 = vmatmul.mubr.bf16.gmra.mrb[12].mxu0 %v12081_v49 }
 0x392   : > { %8653 = vmatprep.mubr.bf16.mxu0 %v12084_v43  ;;  %v8355_v24 = vpop.f32.mrb[44].mxu1 }
 0x393   : > { %v3301_v1 = vpop.f32.mrb[45].mxu1 }
 0x394   : > { %v11546_v46 = vpop.f32.mrb[46].mxu1 }
 0x395   : > { %v11548_v35 = vpop.f32.mrb[47].mxu1 }
 0x399   : > { %8654 = vmatmul.mubr.bf16.gmra.mrb[16].mxu0 %v12087_v22 }
 0x39a   : > { %8657 = vmatprep.mubr.bf16.mxu0 %v12090_v28  ;;  %v11556_v19 = vpop.f32.mrb[48].mxu1 }
 0x39b   : > { %v11558_v39 = vpop.f32.mrb[49].mxu1 }
 0x39c   : > { %v11560_v8 = vpop.f32.mrb[50].mxu1 }
 0x39d   : > { %v11562_v6 = vpop.f32.mrb[51].mxu1 }
 0x3a1   : > { %8658 = vmatmul.mubr.bf16.gmra.mrb[20].mxu0 %v12092_v32 }
 0x3a2   : > { %8661 = vmatprep.mubr.bf16.mxu0 %v12095_v18  ;;  %v11570_v23 = vpop.f32.mrb[52].mxu1 }
 0x3a3   : > { %v11572_v7 = vpop.f32.mrb[53].mxu1 }
 0x3a4   : > { %v11574_v45 = vpop.f32.mrb[54].mxu1 }
 0x3a5   : > { %v11576_v5 = vpop.f32.mrb[55].mxu1 }
 0x3a9   : > { %8662 = vmatmul.mubr.bf16.gmra.mrb[24].mxu0 %v12096_v52 }
 0x3aa   : > { %8665 = vmatprep.mubr.bf16.mxu0 %v12099_v16  ;;  %v11584_v57 = vpop.f32.mrb[56].mxu1 }
 0x3ab   : > { %v11586_v53 = vpop.f32.mrb[57].mxu1 }
 0x3ac   : > { %v11588_v11 = vpop.f32.mrb[58].mxu1 }
 0x3ad   : > { %v11590_v0 = vpop.f32.mrb[59].mxu1 }
 0x3b1   : > { %8666 = vmatmul.mubr.bf16.gmra.mrb[28].mxu0 %v12100_v55 }
 0x3b2   : > { %v11595_v56 = vpop.f32.mrb[60].mxu1 }
 0x3b3   : > { %v11597_v14 = vpop.f32.mrb[61].mxu1 }
 0x3b4   : > { %v11599_v44 = vpop.f32.mrb[62].mxu1 }
 0x3b5   : > { %v11601_v13 = vpop.f32.mrb[63].mxu1 }
 0x3ba   : > { %v11603_v40 = vpop.f32.mrb[64].mxu1 }
 0x3bb   : > { %v11605_v20 = vpop.f32.mrb[65].mxu1 }
 0x3bc   : > { %v11607_v48 = vpop.f32.mrb[66].mxu1 }
 0x3bd   : > { %v11609_v51 = vpop.f32.mrb[67].mxu1 }
 0x3c2   : > { %v11611_v33 = vpop.f32.mrb[68].mxu1 }
 0x3c3   : > { %v11613_v21 = vpop.f32.mrb[69].mxu1 }
 0x3c4   : > { %v11615_v27 = vpop.f32.mrb[70].mxu1 }
 0x3c5   : > { %v11617_v30 = vpop.f32.mrb[71].mxu1 }
 0x44c   : > { %v8639_v12 = vpop.f32.mrb[0].mxu0 }
 0x44d   : > { %v8717_v36 = vadd.f32 %v8639_v12, %v8351_v50  ;;  %v6562_v38 = vpop.f32.mrb[1].mxu0 }
 0x44e   : > { %v8718_v54 = vadd.f32 %v6562_v38, %v3285_v17  ;;  %v8640_v60 = vpop.f32.mrb[2].mxu0 }
 0x44f   : > { %v6730_v31 = vmul.f32 %v8717_v36, %v11622_v9  ;;  %v8719_v10 = vadd.f32 %v8640_v60, %v8352_v29  ;;  %v6565_v25 = vpop.f32.mrb[3].mxu0 }
 0x450   : > { %v6728_v26 = vmul.f32 %v8718_v54, %v11622_v9  ;;  %v8720_v49 = vadd.f32 %v6565_v25, %v3288_v3 }
 0x451   : > { %v6769_v15 = vadd.f32 %v11627_v4, %v6730_v31  ;;  %v6731_v37 = vmul.f32 %v8719_v10, %v11622_v9 }
 0x452   : > { %v6767_v50 = vadd.f32 %v11627_v4, %v6728_v26  ;;  %v6729_v43 = vmul.f32 %v8720_v49, %v11622_v9 }
 0x453   : > { %v6770_v47 = vadd.f32 %v11627_v4, %v6731_v37  ;;  %v6801_v22 = vmax.f32 %v6769_v15, 0.0 }
 0x454   : > { %v6768_v17 = vadd.f32 %v11627_v4, %v6729_v43  ;;  %v8643_v34 = vpop.f32.mrb[4].mxu0  ;;  %v6799_v28 = vmax.f32 %v6767_v50, 0.0 }
 0x455   : > { %v6802_v63 = vmax.f32 %v6770_v47, 0.0  ;;  %v8721_v29 = vadd.f32 %v8643_v34, %v8355_v24  ;;  %v6578_v62 = vpop.f32.mrb[5].mxu0 }
 0x456   : > { %v6800_v42 = vmax.f32 %v6768_v17, 0.0  ;;  %v8722_v3 = vadd.f32 %v6578_v62, %v3301_v1  ;;  %v8644_v32 = vpop.f32.mrb[6].mxu0 }
 0x457   : > { %v6832_v61 = vpack.c.bf16 %v6802_v63, %v6801_v22  ;;  %v6734_v2 = vmul.f32 %v8721_v29, %v11622_v9  ;;  %v8723_v18 = vadd.f32 %v8644_v32, %v11546_v46  ;;  %v6581_v52 = vpop.f32.mrb[7].mxu0 }
 0x458   : > { %v6732_v59 = vmul.f32 %v8722_v3, %v11622_v9  ;;  %v8724_v41 = vadd.f32 %v6581_v52, %v11548_v35  ;;  %v6831_v16 = vpack.c.bf16 %v6800_v42, %v6799_v28 }
 0x459   : > { %v6773_v55 = vadd.f32 %v11627_v4, %v6734_v2  ;;  %v6735_v24 = vmul.f32 %v8723_v18, %v11622_v9 }
 0x45a   : > { %v6771_v58 = vadd.f32 %v11627_v4, %v6732_v59  ;;  %v6733_v1 = vmul.f32 %v8724_v41, %v11622_v9  ;;  %8685 = vmatprep.mubr.bf16.mxu1 %v6831_v16 }
 0x45b   : > { %v6774_v12 = vadd.f32 %v11627_v4, %v6735_v24  ;;  %8686 = vmatmul.mubr.bf16.vlgmr.msra.gmra.mrb[72].mxu1 %v6832_v61  ;;  %v6805_v38 = vmax.f32 %v6773_v55, 0.0 }
 0x45c   : > { %v6772_v46 = vadd.f32 %v11627_v4, %v6733_v1  ;;  %v8647_v36 = vpop.f32.mrb[8].mxu0  ;;  %v6803_v31 = vmax.f32 %v6771_v58, 0.0 }
 0x45d   : > { %v6806_v54 = vmax.f32 %v6774_v12, 0.0  ;;  %v8725_v35 = vadd.f32 %v8647_v36, %v11556_v19  ;;  %v6594_v60 = vpop.f32.mrb[9].mxu0 }
 0x45e   : > { %v6804_v10 = vmax.f32 %v6772_v46, 0.0  ;;  %v8726_v25 = vadd.f32 %v6594_v60, %v11558_v39  ;;  %v8648_v26 = vpop.f32.mrb[10].mxu0 }
 0x45f   : > { %v6738_v49 = vmul.f32 %v8725_v35, %v11622_v9  ;;  %v8727_v15 = vadd.f32 %v8648_v26, %v11560_v8  ;;  %v6597_v37 = vpop.f32.mrb[11].mxu0  ;;  %v6834_v50 = vpack.c.bf16 %v6806_v54, %v6805_v38 }
 0x460   : > { %v6736_v43 = vmul.f32 %v8726_v25, %v11622_v9  ;;  %v8728_v47 = vadd.f32 %v6597_v37, %v11562_v6  ;;  %v6833_v17 = vpack.c.bf16 %v6804_v10, %v6803_v31 }
 0x461   : > { %v6777_v34 = vadd.f32 %v11627_v4, %v6738_v49  ;;  %v6739_v19 = vmul.f32 %v8727_v15, %v11622_v9 }
 0x462   : > { %v6775_v22 = vadd.f32 %v11627_v4, %v6736_v43  ;;  %v6737_v39 = vmul.f32 %v8728_v47, %v11622_v9  ;;  %8689 = vmatprep.mubr.bf16.mxu1 %v6833_v17 }
 0x463   : > { %v6778_v63 = vadd.f32 %v11627_v4, %v6739_v19  ;;  %8690 = vmatmul.mubr.bf16.gmra.mrb[76].mxu1 %v6834_v50  ;;  %v6809_v62 = vmax.f32 %v6777_v34, 0.0 }
 0x464   : > { %v6776_v8 = vadd.f32 %v11627_v4, %v6737_v39  ;;  %v8651_v29 = vpop.f32.mrb[12].mxu0  ;;  %v6807_v3 = vmax.f32 %v6775_v22, 0.0 }
 0x465   : > { %v6810_v28 = vmax.f32 %v6778_v63, 0.0  ;;  %v8729_v6 = vadd.f32 %v8651_v29, %v11570_v23  ;;  %v6610_v42 = vpop.f32.mrb[13].mxu0 }
 0x466   : > { %v6808_v32 = vmax.f32 %v6776_v8, 0.0  ;;  %v8730_v61 = vadd.f32 %v6610_v42, %v11572_v7  ;;  %v8652_v2 = vpop.f32.mrb[14].mxu0 }
 0x467   : > { %v6742_v18 = vmul.f32 %v8729_v6, %v11622_v9  ;;  %v8731_v52 = vadd.f32 %v8652_v2, %v11574_v45  ;;  %v6613_v59 = vpop.f32.mrb[15].mxu0  ;;  %v6836_v41 = vpack.c.bf16 %v6810_v28, %v6809_v62 }
 0x468   : > { %v6740_v16 = vmul.f32 %v8730_v61, %v11622_v9  ;;  %v8732_v55 = vadd.f32 %v6613_v59, %v11576_v5  ;;  %v6835_v24 = vpack.c.bf16 %v6808_v32, %v6807_v3 }
 0x469   : > { %v6781_v58 = vadd.f32 %v11627_v4, %v6742_v18  ;;  %v6743_v23 = vmul.f32 %v8731_v52, %v11622_v9 }
 0x46a   : > { %v6779_v1 = vadd.f32 %v11627_v4, %v6740_v16  ;;  %v6741_v7 = vmul.f32 %v8732_v55, %v11622_v9  ;;  %8693 = vmatprep.mubr.bf16.mxu1 %v6835_v24 }
 0x46b   : > { %v6782_v12 = vadd.f32 %v11627_v4, %v6743_v23  ;;  %8694 = vmatmul.mubr.bf16.gmra.mrb[80].mxu1 %v6836_v41  ;;  %v6813_v36 = vmax.f32 %v6781_v58, 0.0 }
 0x46c   : > { %v6780_v45 = vadd.f32 %v11627_v4, %v6741_v7  ;;  %v8655_v46 = vpop.f32.mrb[16].mxu0  ;;  %v6811_v35 = vmax.f32 %v6779_v1, 0.0 }
 0x46d   : > { %v6814_v38 = vmax.f32 %v6782_v12, 0.0  ;;  %v8733_v5 = vadd.f32 %v8655_v46, %v11584_v57  ;;  %v6626_v54 = vpop.f32.mrb[17].mxu0 }
 0x46e   : > { %v6812_v60 = vmax.f32 %v6780_v45, 0.0  ;;  %v8734_v31 = vadd.f32 %v6626_v54, %v11586_v53  ;;  %v8656_v10 = vpop.f32.mrb[18].mxu0 }
 0x46f   : > { %v6746_v25 = vmul.f32 %v8733_v5, %v11622_v9  ;;  %v8735_v26 = vadd.f32 %v8656_v10, %v11588_v11  ;;  %v6629_v49 = vpop.f32.mrb[19].mxu0  ;;  %v6838_v15 = vpack.c.bf16 %v6814_v38, %v6813_v36 }
 0x470   : > { %v6744_v37 = vmul.f32 %v8734_v31, %v11622_v9  ;;  %v8736_v50 = vadd.f32 %v6629_v49, %v11590_v0  ;;  %v6837_v43 = vpack.c.bf16 %v6812_v60, %v6811_v35 }
 0x471   : > { %v6785_v47 = vadd.f32 %v11627_v4, %v6746_v25  ;;  %v6747_v57 = vmul.f32 %v8735_v26, %v11622_v9 }
 0x472   : > { %v6783_v17 = vadd.f32 %v11627_v4, %v6744_v37  ;;  %v6745_v53 = vmul.f32 %v8736_v50, %v11622_v9  ;;  %8697 = vmatprep.mubr.bf16.mxu1 %v6837_v43 }
 0x473   : > { %v6786_v34 = vadd.f32 %v11627_v4, %v6747_v57  ;;  %8698 = vmatmul.mubr.bf16.gmra.mrb[84].mxu1 %v6838_v15  ;;  %v6817_v22 = vmax.f32 %v6785_v47, 0.0 }
 0x474   : > { %v6784_v11 = vadd.f32 %v11627_v4, %v6745_v53  ;;  %v8659_v19 = vpop.f32.mrb[20].mxu0  ;;  %v6815_v8 = vmax.f32 %v6783_v17, 0.0 }
 0x475   : > { %v6818_v39 = vmax.f32 %v6786_v34, 0.0  ;;  %v8737_v0 = vadd.f32 %v8659_v19, %v11595_v56  ;;  %v6642_v63 = vpop.f32.mrb[21].mxu0 }
 0x476   : > { %v6816_v29 = vmax.f32 %v6784_v11, 0.0  ;;  %v8738_v62 = vadd.f32 %v6642_v63, %v11597_v14  ;;  %v8660_v28 = vpop.f32.mrb[22].mxu0 }
 0x477   : > { %v6750_v6 = vmul.f32 %v8737_v0, %v11622_v9  ;;  %v8739_v42 = vadd.f32 %v8660_v28, %v11599_v44  ;;  %v6645_v3 = vpop.f32.mrb[23].mxu0  ;;  %v6840_v32 = vpack.c.bf16 %v6818_v39, %v6817_v22 }
 0x478   : > { %v6748_v61 = vmul.f32 %v8738_v62, %v11622_v9  ;;  %v8740_v2 = vadd.f32 %v6645_v3, %v11601_v13  ;;  %v6839_v18 = vpack.c.bf16 %v6816_v29, %v6815_v8  ;;  %v9299_v3 = vld [vmem:[%s9968_s18 + $0x8] sm:$0xff]  }
 0x479   : > { %v6789_v52 = vadd.f32 %v11627_v4, %v6750_v6  ;;  %v6751_v56 = vmul.f32 %v8739_v42, %v11622_v9 }
 0x47a   : > { %v6787_v59 = vadd.f32 %v11627_v4, %v6748_v61  ;;  %v6749_v14 = vmul.f32 %v8740_v2, %v11622_v9  ;;  %8701 = vmatprep.mubr.bf16.mxu1 %v6839_v18  ;;  %v9300_v18 = vld [vmem:[%s9968_s18] sm:$0xff]  }
 0x47b   : > { %v6790_v41 = vadd.f32 %v11627_v4, %v6751_v56  ;;  %8702 = vmatmul.mubr.bf16.gmra.mrb[88].mxu1 %v6840_v32  ;;  %v6821_v55 = vmax.f32 %v6789_v52, 0.0  ;;  %v7152_v32 = vunpack.c.l.bf16 %v9299_v3  ;;  %v7150_v52 = vunpack.c.l.bf16 %v9300_v18 }
 0x47c   : > { %v6788_v44 = vadd.f32 %v11627_v4, %v6749_v14  ;;  %v8663_v16 = vpop.f32.mrb[24].mxu0  ;;  %v6819_v23 = vmax.f32 %v6787_v59, 0.0  ;;  %v7153_v14 = vunpack.c.h.bf16 %v9299_v3 }
 0x47d   : > { %v6822_v24 = vmax.f32 %v6790_v41, 0.0  ;;  %v8741_v13 = vadd.f32 %v8663_v16, %v11603_v40  ;;  %v6658_v58 = vpop.f32.mrb[25].mxu0 }
 0x47e   : > { %v6820_v1 = vmax.f32 %v6788_v44, 0.0  ;;  %v8742_v7 = vadd.f32 %v6658_v58, %v11605_v20  ;;  %v8664_v12 = vpop.f32.mrb[26].mxu0 }
 0x47f   : > { %v6754_v45 = vmul.f32 %v8741_v13, %v11622_v9  ;;  %v8743_v46 = vadd.f32 %v8664_v12, %v11607_v48  ;;  %v6661_v36 = vpop.f32.mrb[27].mxu0  ;;  %v6842_v38 = vpack.c.bf16 %v6822_v24, %v6821_v55  ;;  %v7151_v55 = vunpack.c.h.bf16 %v9300_v18 }
 0x480   : > { %v6752_v5 = vmul.f32 %v8742_v7, %v11622_v9  ;;  %v8744_v54 = vadd.f32 %v6661_v36, %v11609_v51  ;;  %v6841_v35 = vpack.c.bf16 %v6820_v1, %v6819_v23 }
 0x481   : > { %v6793_v60 = vadd.f32 %v11627_v4, %v6754_v45  ;;  %v6755_v40 = vmul.f32 %v8743_v46, %v11622_v9 }
 0x482   : > { %v6791_v31 = vadd.f32 %v11627_v4, %v6752_v5  ;;  %v6753_v20 = vmul.f32 %v8744_v54, %v11622_v9  ;;  %8705 = vmatprep.mubr.bf16.mxu1 %v6841_v35  ;;  %v9301_v5 = vld [vmem:[%s9968_s18 + $0x18] sm:$0xff]  }
 0x483   : > { %v6794_v10 = vadd.f32 %v11627_v4, %v6755_v40  ;;  %8706 = vmatmul.mubr.bf16.gmra.mrb[92].mxu1 %v6842_v38  ;;  %v6825_v26 = vmax.f32 %v6793_v60, 0.0  ;;  %v7156_v54 = vunpack.c.l.bf16 %v9301_v5 }
 0x484   : > { %v6792_v48 = vadd.f32 %v11627_v4, %v6753_v20  ;;  %v8667_v25 = vpop.f32.mrb[28].mxu0  ;;  %v6823_v37 = vmax.f32 %v6791_v31, 0.0  ;;  %v9302_v31 = vld [vmem:[%s9968_s18 + $0x10] sm:$0xff]  }
 0x485   : > { %v6826_v49 = vmax.f32 %v6794_v10, 0.0  ;;  %v8745_v51 = vadd.f32 %v8667_v25, %v11611_v33  ;;  %v6674_v15 = vpop.f32.mrb[29].mxu0  ;;  %v7154_v20 = vunpack.c.l.bf16 %v9302_v31 }
 0x486   : > { %v6824_v50 = vmax.f32 %v6792_v48, 0.0  ;;  %v8746_v43 = vadd.f32 %v6674_v15, %v11613_v21  ;;  %v8668_v47 = vpop.f32.mrb[30].mxu0 }
 0x487   : > { %v6758_v57 = vmul.f32 %v8745_v51, %v11622_v9  ;;  %v8747_v17 = vadd.f32 %v8668_v47, %v11615_v27  ;;  %v6677_v53 = vpop.f32.mrb[31].mxu0  ;;  %v6844_v34 = vpack.c.bf16 %v6826_v49, %v6825_v26  ;;  %v7157_v26 = vunpack.c.h.bf16 %v9301_v5 }
 0x488   : > { %v6756_v11 = vmul.f32 %v8746_v43, %v11622_v9  ;;  %v8748_v19 = vadd.f32 %v6677_v53, %v11617_v30  ;;  %v6843_v22 = vpack.c.bf16 %v6824_v50, %v6823_v37  ;;  %v7155_v37 = vunpack.c.h.bf16 %v9302_v31 }
 0x489   : > { %v6797_v39 = vadd.f32 %v11627_v4, %v6758_v57  ;;  %v6759_v33 = vmul.f32 %v8747_v17, %v11622_v9 }
 0x48a   : > { %v6795_v0 = vadd.f32 %v11627_v4, %v6756_v11  ;;  %v6757_v21 = vmul.f32 %v8748_v19, %v11622_v9  ;;  %8709 = vmatprep.mubr.bf16.mxu1 %v6843_v22  ;;  %v11722_v9 = vld [vmem:[%s12103_s7] ss:$0 sm:$0xff] }
 0x48b   : > { %v6798_v63 = vadd.f32 %v11627_v4, %v6759_v33  ;;  %8710 = vmatmul.mubr.bf16.gmra.mrb[96].mxu1 %v6844_v34  ;;  %v6829_v8 = vmax.f32 %v6797_v39, 0.0  ;;  %v9303_v33 = vld [vmem:[%s9968_s18 + $0x28] sm:$0xff]  }
 0x48c   : > { %v6796_v27 = vadd.f32 %v11627_v4, %v6757_v21  ;;  %v6827_v30 = vmax.f32 %v6795_v0, 0.0  ;;  %v11727_v4 = vld [vmem:[%s12104_s26] ss:$0 sm:$0xff]  ;;  %v7160_v0 = vunpack.c.l.bf16 %v9303_v33 }
 0x48d   : > { %v6830_v29 = vmax.f32 %v6798_v63, 0.0 }
 0x48e   : > { %v6828_v62 = vmax.f32 %v6796_v27, 0.0 }
 0x48f   : > { %v6846_v28 = vpack.c.bf16 %v6830_v29, %v6829_v8  ;;  %v9304_v8 = vld [vmem:[%s9968_s18 + $0x20] sm:$0xff]  }
 0x490   : > { %v6845_v6 = vpack.c.bf16 %v6828_v62, %v6827_v30  ;;  %v7158_v29 = vunpack.c.l.bf16 %v9304_v8 }
 0x492   : > { %8713 = vmatprep.mubr.bf16.mxu1 %v6845_v6  ;;  %v7161_v6 = vunpack.c.h.bf16 %v9303_v33 }
 0x493   : > { %8714 = vmatmul.mubr.bf16.gmra.mrb[100].mxu1 %v6846_v28 }
 0x52e   : > { %v8687_v42 = vpop.f32.mrb[72].mxu1 }
 0x52f   : > { %v7081_v61 = vmul.f32 %v8687_v42, %v11722_v9  ;;  %v6945_v2 = vpop.f32.mrb[73].mxu1 }
 0x530   : > { %v7079_v56 = vmul.f32 %v11722_v9, %v6945_v2  ;;  %v8688_v59 = vpop.f32.mrb[74].mxu1 }
 0x531   : > { %v7120_v41 = vadd.f32 %v11727_v4, %v7081_v61  ;;  %v7082_v44 = vmul.f32 %v8688_v59, %v11722_v9  ;;  %v6948_v16 = vpop.f32.mrb[75].mxu1  ;;  %v7159_v61 = vunpack.c.h.bf16 %v9304_v8 }
 0x532   : > { %v7118_v24 = vadd.f32 %v11727_v4, %v7079_v56  ;;  %v7080_v13 = vmul.f32 %v11722_v9, %v6948_v16 }
 0x533   : > { %v7184_v58 = vadd.f32 %v7152_v32, %v7120_v41  ;;  %v7121_v23 = vadd.f32 %v11727_v4, %v7082_v44 }
 0x534   : > { %v7182_v1 = vadd.f32 %v7150_v52, %v7118_v24  ;;  %v7119_v7 = vadd.f32 %v11727_v4, %v7080_v13  ;;  %v9305_v13 = vld [vmem:[%s9968_s18 + $0x38] sm:$0xff]  }
 0x535   : > { %v7216_v12 = vmax.f32 %v7184_v58, 0.0  ;;  %v7185_v45 = vadd.f32 %v7153_v14, %v7121_v23  ;;  %v7164_v58 = vunpack.c.l.bf16 %v9305_v13  ;;  %v7165_v5 = vunpack.c.h.bf16 %v9305_v13 }
 0x536   : > { %v7214_v46 = vmax.f32 %v7182_v1, 0.0  ;;  %v7183_v36 = vadd.f32 %v7151_v55, %v7119_v7  ;;  %v8691_v38 = vpop.f32.mrb[76].mxu1 }
 0x537   : > { %7248 = vst [vmem:[%s11741_s14 + $0x10] sm:$0xff] %v7216_v12  ;;  %v7217_v35 = vmax.f32 %v7185_v45, 0.0  ;;  %v7085_v60 = vmul.f32 %v8691_v38, %v11722_v9  ;;  %v6961_v40 = vpop.f32.mrb[77].mxu1  ;;  %v9306_v12 = vld [vmem:[%s9968_s18 + $0x30] sm:$0xff]  }
 0x538   : > { %7246 = vst [vmem:[%s11741_s14] sm:$0xff] %v7214_v46  ;;  %v7215_v10 = vmax.f32 %v7183_v36, 0.0  ;;  %v7083_v48 = vmul.f32 %v11722_v9, %v6961_v40  ;;  %v8692_v25 = vpop.f32.mrb[78].mxu1  ;;  %v7162_v45 = vunpack.c.l.bf16 %v9306_v12  ;;  %v7163_v40 = vunpack.c.h.bf16 %v9306_v12 }
 0x539   : > { %7249 = vst [vmem:[%s11741_s14 + $0x18] sm:$0xff] %v7217_v35  ;;  %v7124_v49 = vadd.f32 %v11727_v4, %v7085_v60  ;;  %v7086_v51 = vmul.f32 %v8692_v25, %v11722_v9  ;;  %v6964_v15 = vpop.f32.mrb[79].mxu1 }
 0x53a   : > { %7247 = vst [vmem:[%s11741_s14 + $0x8] sm:$0xff] %v7215_v10  ;;  %v7122_v50 = vadd.f32 %v11727_v4, %v7083_v48  ;;  %v7084_v43 = vmul.f32 %v11722_v9, %v6964_v15 }
 0x53b   : > { %v7188_v47 = vadd.f32 %v7156_v54, %v7124_v49  ;;  %v7125_v57 = vadd.f32 %v11727_v4, %v7086_v51 }
 0x53c   : > { %v7186_v17 = vadd.f32 %v7154_v20, %v7122_v50  ;;  %v7123_v53 = vadd.f32 %v11727_v4, %v7084_v43  ;;  %v9307_v43 = vld [vmem:[%s9968_s18 + $0x48] sm:$0xff]  }
 0x53d   : > { %v7220_v34 = vmax.f32 %v7188_v47, 0.0  ;;  %v7189_v11 = vadd.f32 %v7157_v26, %v7125_v57  ;;  %v7168_v47 = vunpack.c.l.bf16 %v9307_v43  ;;  %v7169_v33 = vunpack.c.h.bf16 %v9307_v43 }
 0x53e   : > { %v7218_v19 = vmax.f32 %v7186_v17, 0.0  ;;  %v7187_v22 = vadd.f32 %v7155_v37, %v7123_v53  ;;  %v8695_v39 = vpop.f32.mrb[80].mxu1 }
 0x53f   : > { %7252 = vst [vmem:[%s11741_s14 + $0x30] sm:$0xff] %v7220_v34  ;;  %v7221_v21 = vmax.f32 %v7189_v11, 0.0  ;;  %v7089_v63 = vmul.f32 %v8695_v39, %v11722_v9  ;;  %v6977_v27 = vpop.f32.mrb[81].mxu1  ;;  %v9308_v34 = vld [vmem:[%s9968_s18 + $0x40] sm:$0xff]  }
 0x540   : > { %7250 = vst [vmem:[%s11741_s14 + $0x20] sm:$0xff] %v7218_v19  ;;  %v7219_v30 = vmax.f32 %v7187_v22, 0.0  ;;  %v7087_v62 = vmul.f32 %v11722_v9, %v6977_v27  ;;  %v8696_v28 = vpop.f32.mrb[82].mxu1  ;;  %v7166_v11 = vunpack.c.l.bf16 %v9308_v34  ;;  %v7167_v27 = vunpack.c.h.bf16 %v9308_v34 }
 0x541   : > { %7253 = vst [vmem:[%s11741_s14 + $0x38] sm:$0xff] %v7221_v21  ;;  %v7128_v42 = vadd.f32 %v11727_v4, %v7089_v63  ;;  %v7090_v3 = vmul.f32 %v8696_v28, %v11722_v9  ;;  %v6980_v32 = vpop.f32.mrb[83].mxu1 }
 0x542   : > { %7251 = vst [vmem:[%s11741_s14 + $0x28] sm:$0xff] %v7219_v30  ;;  %v7126_v2 = vadd.f32 %v11727_v4, %v7087_v62  ;;  %v7088_v18 = vmul.f32 %v11722_v9, %v6980_v32 }
 0x543   : > { %v7192_v52 = vadd.f32 %v7160_v0, %v7128_v42  ;;  %v7129_v56 = vadd.f32 %v11727_v4, %v7090_v3 }
 0x544   : > { %v7190_v59 = vadd.f32 %v7158_v29, %v7126_v2  ;;  %v7127_v14 = vadd.f32 %v11727_v4, %v7088_v18  ;;  %v9309_v18 = vld [vmem:[%s9968_s18 + $0x58] sm:$0xff]  }
 0x545   : > { %v7224_v41 = vmax.f32 %v7192_v52, 0.0  ;;  %v7193_v44 = vadd.f32 %v7161_v6, %v7129_v56  ;;  %v7172_v52 = vunpack.c.l.bf16 %v9309_v18  ;;  %v7173_v13 = vunpack.c.h.bf16 %v9309_v18 }
 0x546   : > { %v7222_v16 = vmax.f32 %v7190_v59, 0.0  ;;  %v7191_v55 = vadd.f32 %v7159_v61, %v7127_v14  ;;  %v8699_v24 = vpop.f32.mrb[84].mxu1 }
 0x547   : > { %7256 = vst [vmem:[%s11741_s14 + $0x50] sm:$0xff] %v7224_v41  ;;  %v7225_v23 = vmax.f32 %v7193_v44, 0.0  ;;  %v7093_v1 = vmul.f32 %v8699_v24, %v11722_v9  ;;  %v6993_v7 = vpop.f32.mrb[85].mxu1  ;;  %v9310_v41 = vld [vmem:[%s9968_s18 + $0x50] sm:$0xff]  }
 0x548   : > { %7254 = vst [vmem:[%s11741_s14 + $0x40] sm:$0xff] %v7222_v16  ;;  %v7223_v46 = vmax.f32 %v7191_v55, 0.0  ;;  %v7091_v36 = vmul.f32 %v11722_v9, %v6993_v7  ;;  %v8700_v38 = vpop.f32.mrb[86].mxu1  ;;  %v7170_v44 = vunpack.c.l.bf16 %v9310_v41  ;;  %v7171_v7 = vunpack.c.h.bf16 %v9310_v41 }
 0x549   : > { %7257 = vst [vmem:[%s11741_s14 + $0x58] sm:$0xff] %v7225_v23  ;;  %v7132_v54 = vadd.f32 %v11727_v4, %v7093_v1  ;;  %v7094_v35 = vmul.f32 %v8700_v38, %v11722_v9  ;;  %v6996_v60 = vpop.f32.mrb[87].mxu1 }
 0x54a   : > { %7255 = vst [vmem:[%s11741_s14 + $0x48] sm:$0xff] %v7223_v46  ;;  %v7130_v31 = vadd.f32 %v11727_v4, %v7091_v36  ;;  %v7092_v20 = vmul.f32 %v11722_v9, %v6996_v60 }
 0x54b   : > { %v7196_v10 = vadd.f32 %v7164_v58, %v7132_v54  ;;  %v7133_v48 = vadd.f32 %v11727_v4, %v7094_v35 }
 0x54c   : > { %v7194_v25 = vadd.f32 %v7162_v45, %v7130_v31  ;;  %v7131_v26 = vadd.f32 %v11727_v4, %v7092_v20  ;;  %v9311_v20 = vld [vmem:[%s9968_s18 + $0x68] sm:$0xff]  }
 0x54d   : > { %v7228_v49 = vmax.f32 %v7196_v10, 0.0  ;;  %v7197_v51 = vadd.f32 %v7165_v5, %v7133_v48  ;;  %v7176_v10 = vunpack.c.l.bf16 %v9311_v20  ;;  %v7177_v43 = vunpack.c.h.bf16 %v9311_v20 }
 0x54e   : > { %v7226_v15 = vmax.f32 %v7194_v25, 0.0  ;;  %v7195_v37 = vadd.f32 %v7163_v40, %v7131_v26  ;;  %v8703_v50 = vpop.f32.mrb[88].mxu1 }
 0x54f   : > { %7260 = vst [vmem:[%s11741_s14 + $0x70] sm:$0xff] %v7228_v49  ;;  %v7229_v57 = vmax.f32 %v7197_v51, 0.0  ;;  %v7097_v17 = vmul.f32 %v8703_v50, %v11722_v9  ;;  %v7009_v53 = vpop.f32.mrb[89].mxu1  ;;  %v9312_v49 = vld [vmem:[%s9968_s18 + $0x60] sm:$0xff]  }
 0x550   : > { %7258 = vst [vmem:[%s11741_s14 + $0x60] sm:$0xff] %v7226_v15  ;;  %v7227_v19 = vmax.f32 %v7195_v37, 0.0  ;;  %v7095_v22 = vmul.f32 %v11722_v9, %v7009_v53  ;;  %v8704_v39 = vpop.f32.mrb[90].mxu1  ;;  %v7174_v51 = vunpack.c.l.bf16 %v9312_v49  ;;  %v7175_v53 = vunpack.c.h.bf16 %v9312_v49 }
 0x551   : > { %7261 = vst [vmem:[%s11741_s14 + $0x78] sm:$0xff] %v7229_v57  ;;  %v7136_v0 = vadd.f32 %v11727_v4, %v7097_v17  ;;  %v7098_v21 = vmul.f32 %v8704_v39, %v11722_v9  ;;  %v7012_v63 = vpop.f32.mrb[91].mxu1 }
 0x552   : > { %7259 = vst [vmem:[%s11741_s14 + $0x68] sm:$0xff] %v7227_v19  ;;  %v7134_v8 = vadd.f32 %v11727_v4, %v7095_v22  ;;  %v7096_v29 = vmul.f32 %v11722_v9, %v7012_v63 }
 0x553   : > { %v7200_v30 = vadd.f32 %v7168_v47, %v7136_v0  ;;  %v7137_v62 = vadd.f32 %v11727_v4, %v7098_v21 }
 0x554   : > { %v7198_v28 = vadd.f32 %v7166_v11, %v7134_v8  ;;  %v7135_v6 = vadd.f32 %v11727_v4, %v7096_v29  ;;  %v9313_v29 = vld [vmem:[%s9968_s18 + $0x78] sm:$0xff]  }
 0x555   : > { %v7232_v42 = vmax.f32 %v7200_v30, 0.0  ;;  %v7201_v3 = vadd.f32 %v7169_v33, %v7137_v62  ;;  %v7180_v30 = vunpack.c.l.bf16 %v9313_v29  ;;  %v7181_v18 = vunpack.c.h.bf16 %v9313_v29 }
 0x556   : > { %v7230_v32 = vmax.f32 %v7198_v28, 0.0  ;;  %v7199_v61 = vadd.f32 %v7167_v27, %v7135_v6  ;;  %v8707_v2 = vpop.f32.mrb[92].mxu1 }
 0x557   : > { %7264 = vst [vmem:[%s11741_s14 + $0x90] sm:$0xff] %v7232_v42  ;;  %v7233_v56 = vmax.f32 %v7201_v3, 0.0  ;;  %v7101_v59 = vmul.f32 %v8707_v2, %v11722_v9  ;;  %v7025_v14 = vpop.f32.mrb[93].mxu1  ;;  %v9314_v42 = vld [vmem:[%s9968_s18 + $0x70] sm:$0xff]   ;;  %s7865_s18 = sshll.u32 %s12105_s27, 12 }
 0x558   : > { %7262 = vst [vmem:[%s11741_s14 + $0x80] sm:$0xff] %v7230_v32  ;;  %v7231_v16 = vmax.f32 %v7199_v61, 0.0  ;;  %v7099_v55 = vmul.f32 %v11722_v9, %v7025_v14  ;;  %v8708_v24 = vpop.f32.mrb[94].mxu1  ;;  %v7178_v3 = vunpack.c.l.bf16 %v9314_v42  ;;  %v7179_v14 = vunpack.c.h.bf16 %v9314_v42  ;;  %s11846_s16 = scalar_lea.hbm %s12107_s3, %s7865_s18 }
 0x559   : > { %7265 = vst [vmem:[%s11741_s14 + $0x98] sm:$0xff] %v7233_v56  ;;  %v7140_v58 = vadd.f32 %v11727_v4, %v7101_v59  ;;  %v7102_v23 = vmul.f32 %v8708_v24, %v11722_v9  ;;  %v7028_v1 = vpop.f32.mrb[95].mxu1 }
 0x55a   : > { %7263 = vst [vmem:[%s11741_s14 + $0x88] sm:$0xff] %v7231_v16  ;;  %v7138_v12 = vadd.f32 %v11727_v4, %v7099_v55  ;;  %v7100_v45 = vmul.f32 %v11722_v9, %v7028_v1 }
 0x55b   : > { %v7204_v46 = vadd.f32 %v7172_v52, %v7140_v58  ;;  %v7141_v36 = vadd.f32 %v11727_v4, %v7102_v23 }
 0x55c   : > { %v7202_v38 = vadd.f32 %v7170_v44, %v7138_v12  ;;  %v7139_v5 = vadd.f32 %v11727_v4, %v7100_v45 }
 0x55d   : > { %v7236_v54 = vmax.f32 %v7204_v46, 0.0  ;;  %v7205_v35 = vadd.f32 %v7173_v13, %v7141_v36 }
 0x55e   : > { %v7234_v60 = vmax.f32 %v7202_v38, 0.0  ;;  %v7203_v40 = vadd.f32 %v7171_v7, %v7139_v5  ;;  %v8711_v31 = vpop.f32.mrb[96].mxu1 }
 0x55f   : > { %7268 = vst [vmem:[%s11741_s14 + $0xb0] sm:$0xff] %v7236_v54  ;;  %v7237_v48 = vmax.f32 %v7205_v35, 0.0  ;;  %v7105_v25 = vmul.f32 %v8711_v31, %v11722_v9  ;;  %v7041_v26 = vpop.f32.mrb[97].mxu1 }
 0x560   : > { %7266 = vst [vmem:[%s11741_s14 + $0xa0] sm:$0xff] %v7234_v60  ;;  %v7235_v15 = vmax.f32 %v7203_v40, 0.0  ;;  %v7103_v37 = vmul.f32 %v11722_v9, %v7041_v26  ;;  %v8712_v50 = vpop.f32.mrb[98].mxu1 }
 0x561   : > { %7269 = vst [vmem:[%s11741_s14 + $0xb8] sm:$0xff] %v7237_v48  ;;  %v7144_v47 = vadd.f32 %v11727_v4, %v7105_v25  ;;  %v7106_v57 = vmul.f32 %v8712_v50, %v11722_v9  ;;  %v7044_v17 = vpop.f32.mrb[99].mxu1 }
 0x562   : > { %7267 = vst [vmem:[%s11741_s14 + $0xa8] sm:$0xff] %v7235_v15  ;;  %v7142_v34 = vadd.f32 %v11727_v4, %v7103_v37  ;;  %v7104_v11 = vmul.f32 %v11722_v9, %v7044_v17 }
 0x563   : > { %v7208_v19 = vadd.f32 %v7176_v10, %v7144_v47  ;;  %v7145_v22 = vadd.f32 %v11727_v4, %v7106_v57 }
 0x564   : > { %v7206_v39 = vadd.f32 %v7174_v51, %v7142_v34  ;;  %v7143_v33 = vadd.f32 %v11727_v4, %v7104_v11 }
 0x565   : > { %v7240_v0 = vmax.f32 %v7208_v19, 0.0  ;;  %v7209_v21 = vadd.f32 %v7177_v43, %v7145_v22 }
 0x566   : > { %v7238_v63 = vmax.f32 %v7206_v39, 0.0  ;;  %v7207_v27 = vadd.f32 %v7175_v53, %v7143_v33  ;;  %v8715_v8 = vpop.f32.mrb[100].mxu1 }
 0x567   : > { %7272 = vst [vmem:[%s11741_s14 + $0xd0] sm:$0xff] %v7240_v0  ;;  %v7241_v62 = vmax.f32 %v7209_v21, 0.0  ;;  %v7109_v28 = vmul.f32 %v8715_v8, %v11722_v9  ;;  %v7057_v6 = vpop.f32.mrb[101].mxu1 }
 0x568   : > { %7270 = vst [vmem:[%s11741_s14 + $0xc0] sm:$0xff] %v7238_v63  ;;  %v7239_v32 = vmax.f32 %v7207_v27, 0.0  ;;  %v7107_v61 = vmul.f32 %v11722_v9, %v7057_v6  ;;  %v8716_v2 = vpop.f32.mrb[102].mxu1 }
 0x569   : > { %7273 = vst [vmem:[%s11741_s14 + $0xd8] sm:$0xff] %v7241_v62  ;;  %v7148_v52 = vadd.f32 %v11727_v4, %v7109_v28  ;;  %v7110_v56 = vmul.f32 %v8716_v2, %v11722_v9  ;;  %v7060_v59 = vpop.f32.mrb[103].mxu1 }
 0x56a   : > { %7271 = vst [vmem:[%s11741_s14 + $0xc8] sm:$0xff] %v7239_v32  ;;  %v7146_v41 = vadd.f32 %v11727_v4, %v7107_v61  ;;  %v7108_v44 = vmul.f32 %v11722_v9, %v7060_v59 }
 0x56b   : > { %v7212_v16 = vadd.f32 %v7180_v30, %v7148_v52  ;;  %v7149_v55 = vadd.f32 %v11727_v4, %v7110_v56 }
 0x56c   : > { %v7210_v24 = vadd.f32 %v7178_v3, %v7146_v41  ;;  %v7147_v13 = vadd.f32 %v11727_v4, %v7108_v44 }
 0x56d   : > { %v7244_v58 = vmax.f32 %v7212_v16, 0.0  ;;  %v7213_v23 = vadd.f32 %v7181_v18, %v7149_v55 }
 0x56e   : > { %v7242_v1 = vmax.f32 %v7210_v24, 0.0  ;;  %v7211_v7 = vadd.f32 %v7179_v14, %v7147_v13 }
 0x56f   : > { %7276 = vst [vmem:[%s11741_s14 + $0xf0] sm:$0xff] %v7244_v58  ;;  %v7245_v12 = vmax.f32 %v7213_v23, 0.0 }
 0x570   : > { %7274 = vst [vmem:[%s11741_s14 + $0xe0] sm:$0xff] %v7242_v1  ;;  %v7243_v9 = vmax.f32 %v7211_v7, 0.0 }
 0x571   : > { %7277 = vst [vmem:[%s11741_s14 + $0xf8] sm:$0xff] %v7245_v12 }
 0x572   : > { %7275 = vst [vmem:[%s11741_s14 + $0xe8] sm:$0xff] %v7243_v9 }
 0x573   : > { %9502 = shalt.err (!%p9499_p6)
}
 0x574   : > { %s9503_s8 = scalar_lea.hbm %s11846_s16, 4096  ;;  %s9507_s24 = scalar_lea.hbm %s12107_s3, 8192 }
 0x575   : > { %p9504_p7 = scmp.ne.s32.totalorder %s11846_s16, %s9503_s8  ;;  %p9508_p4 = scmp.lt.u32.totalorder %s11846_s16, %s12107_s3 }
 0x576   : > { %p9509_p12 = scmp.lt.u32.totalorder %s9507_s24, %s9503_s8  ;;  %p9511_p11 = scmp.lt.u32.totalorder %s9503_s8, %s11846_s16 }
 0x577   : > { %p9505_p9 = pnand %p9504_p7, %p12108_p10 }
 0x578   : > { %p9510_p2 = por %p9509_p12, %p9508_p4 }
 0x579   : > { %p9506_p0 = pneg %p9505_p9 }
 0x57a   : > { %p9512_p1 = por %p9511_p11, %p9510_p2 }
 0x57c   : > { %p9513_p8 = pnand %p9512_p1, %p9506_p0 }
 0x57e   : > { %9516 = shalt.err (!%p9513_p8)
}
 0x57f   : > { %s9597_s25 = smov 128   ;;  %s9598_s26 = smov 8  }
 0x580   : > { %8991 = dma.vmem_to_hbm [thread:$0]  (%p12108_p10), %s11848_s30, 4096, %s11846_s16, %s7279_s11, %s9597_s25, %s9597_s25, %s9598_s26  }
 0x581 PF: > { %s12109_s15 = sld [smem:[#allocation20_spill]]  ;;  %s12110_s14 = sld [smem:[#allocation26_spill]] }
 0x582   : > { %s12111_s27 = sld [smem:[#allocation24_spill]] }
 0x587   : > { %s7310_s18 = sand.u32 1, %s12109_s15   ;;  %p12112_p13 = scmp.ne.s32.totalorder %s12110_s14, 0 }
 0x588   : > { %p12113_p5 = scmp.ge.s32.totalorder %s12111_s27, 2  ;;  %s7311_s19 = scalar_lea.sflag [#allocation5], %s7310_s18 }
 0x58a   : > { %p9014_p3 = pnand %p12113_p5, %p12112_p13 }
 0x58c   : > { %9558 = dma.done.wait (!%p9014_p3), %s7311_s19, 4096  }
 0x58d   : > { %9560 = vsyncadd (!%p9014_p3), %s7311_s19, 4294963200  ;;  %s33_s26 = sadd.s32 1, %s12111_s27   ;;  %s12114_s23 = sld [smem:[#allocation21_spill]] }
 0x58e   : > { %p30_p6 = scmp.ge.s32.totalorder %s33_s26, 4   ;;  %s12115_s1 = sld [smem:[#allocation28_spill]] }
 0x58f   : > { %s12116_s24 = sld [smem:[#allocation23_spill]]  ;;  %s12117_s25 = sld [smem:[#allocation27_spill]] }
 0x590   : > { %s12118_s21 = smov %s9567_s22  ;;  %32 = sbr.rel (!%p30_p6) target bundleno = 19 (0x13), region = 160 }
 0x593   : > { %s12119_s22 = smov %s12114_s23 }
 0x594   : > { %s12120_s23 = smov %s12115_s1 }
 0x597   :  { %7316 = vsyncpa [#allocation4], 1 }
 0x598   :  { %7318 = vsyncpa [#allocation4 + $0x1], 1 }
 0x599   :  { %7319 = vsyncpa [#allocation7], 1 }
 0x59a   :  { %7321 = vsyncpa [#allocation7 + $0x1], 1 }
 0x59b   :  { %7322 = vsyncpa [#allocation10], 1 }
 0x59c   :  { %7323 = vsyncpa [#allocation13], 1 }
 0x59d   :  { %7324 = vsyncpa [#allocation5], 1 }
 0x59e   :  { %7326 = vsyncpa [#allocation5 + $0x1], 1 }

</bundles_post_ra>
